<compile_context>
chip_gen: v7x
topology: tpu7x:2x2x1
jax: 0.10.0
libtpu: 0.0.40
codegen_flags: <defaults>
</compile_context>

<pallas_src>
from functools import partial

import numpy as np
import jax
import jax.numpy as jnp
from jax.experimental import pallas as pl
from jax.experimental.pallas import tpu as pltpu

NEG_SLOPE = 0.1      # LeakyReLU(0.1, True) in the reference module
BN_EPS = 1e-5
LANES = 128
_TN_DIMS = (((0,), (0,)), ((), ()))   # contract dim 0 of both operands: lhs^T @ rhs


def _round_up(n, m):
    return ((n + m - 1) // m) * m


def _leaky(x):
    return jnp.where(x >= 0.0, x, NEG_SLOPE * x)


# --------------------------------------------------------------------------- kernel

def _point_encoder_kernel(x_ref, dinv_ref, cnt_ref, w_ref, b_ref, bn_ref, o_ref,
                          *, c_in, c_out, nd_p, nd_real):
    f32 = jnp.float32
    bf16 = jnp.bfloat16
    ncur_p = x_ref.shape[0]

    def bias(k):                       # [1, 128] f32
        return b_ref[pl.ds(k, 1), :]

    def mm(a, k):                      # bf16 x bf16 -> f32 on the MXU
        return jnp.dot(a.astype(bf16), w_ref[k], preferred_element_type=f32)

    x = x_ref[...]                                        # [Ncur_p, 128] bf16: feats | 1 | 0

    # --- one-hot scatter matrix (padded dinv == -1 never matches an iota row)
    oh = (jax.lax.broadcasted_iota(jnp.int32, (nd_p, ncur_p), 0)
          == dinv_ref[...]).astype(bf16)                  # [Nd_p, Ncur_p]

    # --- downsample(): scatter_mean(features, dinv); counts fall out of the ones column
    sums = jnp.dot(oh, x, preferred_element_type=f32)     # [Nd_p, 128]
    cnt_d = jnp.maximum(sums[:, c_in:c_in + 1], 1.0)
    v_mean = sums / cnt_d

    # --- layer_in: Linear(c_in -> c_out) + LeakyReLU(0.1)
    identity = _leaky(mm(x, 0) + bias(0))                 # [Ncur_p, 128]

    # --- BatchNorm1d (training-mode batch stats over the Nd real rows only, two-pass var)
    row_mask = (jax.lax.broadcasted_iota(jnp.int32, (nd_p, 1), 0) < nd_real).astype(f32)
    inv_n = 1.0 / float(nd_real)

    def bn(h, k):
        mean = jnp.sum(h * row_mask, axis=0, keepdims=True) * inv_n
        d = (h - mean) * row_mask
        var = jnp.sum(d * d, axis=0, keepdims=True) * inv_n
        gamma = bn_ref[pl.ds(2 * k, 1), :]
        beta = bn_ref[pl.ds(2 * k + 1, 1), :]
        return (h - mean) * jax.lax.rsqrt(var + BN_EPS) * gamma + beta

    # --- PPmodel: Lin -> LReLU -> BN -> Lin -> LReLU -> BN -> Lin -> LReLU
    h = _leaky(mm(v_mean, 1) + bias(1))
    h = bn(h, 0)
    h = _leaky(mm(h, 2) + bias(2))
    h = bn(h, 1)
    h = _leaky(mm(h, 3) + bias(3))                        # [Nd_p, 128]

    # --- W_lo0[C:] applied BEFORE the [inv] gather (Nd_p rows instead of Ncur_p rows)
    h5 = mm(h, 5)                                         # [Nd_p, 128] f32

    # --- gather back to current voxels: oh^T @ h5 (re-uses the one scatter one-hot;
    #     no second [Ncur_p, Nd_p] one-hot is materialized)
    h_g5 = jax.lax.dot_general(oh, h5.astype(bf16), _TN_DIMS,
                               preferred_element_type=f32)          # [Ncur_p, 128]

    # --- layer_out[0] on the implicit concat: identity @ W_lo0[:C] + (gather @ W_lo0[C:])
    #     The ones column comes from the baked bias lane c_out (padded weight cols are 0).
    t = _leaky(mm(identity, 4) + h_g5 + bias(4))          # [Ncur_p, 128]; lane c_out == 1

    # --- per-point gather + scatter_mean folded into one weighted matmul with the
    #     (scale voxel x current voxel) pair-count matrix; per-scale-voxel point counts
    #     come from lane c_out of the same MXU pass.
    cnt = cnt_ref[...]                                    # [Nsc_p, Ncur_p] bf16 or f32
    v = jnp.dot(cnt, t.astype(cnt.dtype), preferred_element_type=f32)   # [Nsc_p, 128]
    n_pts = jnp.maximum(v[:, c_out:c_out + 1], 1.0)
    v = v / n_pts

    # --- layer_out[2] (linear) commutes with the weighted mean -> applied on Nsc rows only
    o_ref[...] = mm(v, 6) + bias(5)                       # lane-dense (128-wide) store


# ------------------------------------------------------------------ parameters

def init_point_encoder_params(key, c_in, c_out):
    """Raw (unpadded) parameters, mirroring nn.Linear / nn.BatchNorm1d defaults."""
    def lin(k, fin, fout):
        kw, kb = jax.random.split(k)
        bound = 1.0 / float(np.sqrt(fin))
        w = jax.random.uniform(kw, (fin, fout), jnp.float32, -bound, bound)
        b = jax.random.uniform(kb, (1, fout), jnp.float32, -bound, bound)
        return w, b

    ks = jax.random.split(key, 6)
    half = c_out // 2
    w_in, b_in = lin(ks[0], c_in, c_out)
    w_pp0, b_pp0 = lin(ks[1], c_in, half)
    w_pp1, b_pp1 = lin(ks[2], half, half)
    w_pp2, b_pp2 = lin(ks[3], half, c_out)
    w_lo0, b_lo0 = lin(ks[4], 2 * c_out, c_out)
    w_lo1, b_lo1 = lin(ks[5], c_out, c_out)
    return {
        "w_in": w_in, "b_in": b_in,
        "w_pp0": w_pp0, "b_pp0": b_pp0,
        "w_pp1": w_pp1, "b_pp1": b_pp1,
        "w_pp2": w_pp2, "b_pp2": b_pp2,
        "w_lo0": w_lo0, "b_lo0": b_lo0,
        "w_lo1": w_lo1, "b_lo1": b_lo1,
        "g0": jnp.ones((1, half), jnp.float32), "be0": jnp.zeros((1, half), jnp.float32),
        "g1": jnp.ones((1, half), jnp.float32), "be1": jnp.zeros((1, half), jnp.float32),
    }


def pack_point_encoder_params(raw, c_in, c_out):
    """Pad to 128 lanes, split lo0 into (identity, gathered) halves, bake the ones column
    into b_lo0 lane c_out, stack, and cast MXU weights to bf16."""
    assert c_in < LANES and c_out < LANES

    def pad_w(w):
        buf = jnp.zeros((LANES, LANES), jnp.float32)
        return buf.at[:w.shape[0], :w.shape[1]].set(w)

    def pad_row(v):
        buf = jnp.zeros((LANES,), jnp.float32)
        v = v.reshape(-1)
        return buf.at[:v.shape[0]].set(v)

    w_lo0 = raw["w_lo0"]
    w_stack = jnp.stack([
        pad_w(raw["w_in"]), pad_w(raw["w_pp0"]), pad_w(raw["w_pp1"]), pad_w(raw["w_pp2"]),
        pad_w(w_lo0[:c_out]), pad_w(w_lo0[c_out:]), pad_w(raw["w_lo1"]),
    ]).astype(jnp.bfloat16)                                   # [7, 128, 128] bf16

    # ones column baked into the lo0 bias: padded weight columns at lane c_out are zero
    # and leaky(1.0) == 1.0, so lane c_out of the lo0 output is exactly 1 for every row.
    b_lo0_p = pad_row(raw["b_lo0"]).at[c_out].set(1.0)

    zeros = jnp.zeros((LANES,), jnp.float32)
    b_stack = jnp.stack([
        pad_row(raw["b_in"]), pad_row(raw["b_pp0"]), pad_row(raw["b_pp1"]),
        pad_row(raw["b_pp2"]), b_lo0_p, pad_row(raw["b_lo1"]),
        zeros, zeros,
    ])                                                        # [8, 128] f32
    bn_stack = jnp.stack([
        pad_row(raw["g0"]), pad_row(raw["be0"]), pad_row(raw["g1"]), pad_row(raw["be1"]),
        zeros, zeros, zeros, zeros,
    ])                                                        # [8, 128] f32
    return {"w": w_stack, "b": b_stack, "bn": bn_stack, "c_in": c_in, "c_out": c_out}


# ------------------------------------------------------------------ forward wrapper

def point_encoder_forward(packed, features, cur_coors, pinv_cur, pinv_scale,
                          num_scale, scale):
    """point_encoder.forward (sample_points=False).  Returns v_feat [num_scale, c_out].

    features   : [Ncur, c_in]  per current-scale-voxel features.
    cur_coors  : [Ncur, 4]     (batch, x, y, z) of current-scale voxels.
    pinv_cur   : [Npts]        points -> current-scale voxel index.
    pinv_scale : [Npts]        points -> target-scale voxel index (scale_{scale} coors_inv).
    """
    c_in, c_out = packed["c_in"], packed["c_out"]
    ncur = int(features.shape[0])

    # ---- host-side index bookkeeping (torch.unique / torch_scatter glue; no grad)
    cur_coors = np.asarray(cur_coors)
    assert cur_coors.shape[0] == ncur
    key = np.concatenate([cur_coors[:, :1], cur_coors[:, 1:] // scale], axis=1)
    _, dinv = np.unique(key, axis=0, return_inverse=True)
    dinv = dinv.reshape(-1).astype(np.int32)
    nd = int(dinv.max()) + 1

    pinv_cur = np.asarray(pinv_cur).reshape(-1).astype(np.int64)
    pinv_scale = np.asarray(pinv_scale).reshape(-1).astype(np.int64)
    pair_counts = np.zeros((num_scale, ncur), np.float32)
    np.add.at(pair_counts, (pinv_scale, pinv_cur), 1.0)       # N(scale_voxel, cur_voxel)

    # ---- pad to lane/sublane-friendly sizes
    ncur_p = _round_up(ncur, LANES)       # lane axis of the one-hot / cnt matrices
    nd_p = _round_up(nd, LANES)
    nsc_p = _round_up(num_scale, 8)

    dinv_pad = np.full((1, ncur_p), -1, np.int32)
    dinv_pad[0, :ncur] = dinv
    dinv_row = jnp.asarray(dinv_pad)

    # bf16 represents small integer counts exactly (<= 256); dense clouds fall back to f32
    max_pair = float(pair_counts.max()) if pair_counts.size else 0.0
    cnt_dtype = jnp.bfloat16 if max_pair <= 256.0 else jnp.float32
    cnt_pad = np.zeros((nsc_p, ncur_p), np.float32)
    cnt_pad[:num_scale, :ncur] = pair_counts
    cnt = jnp.asarray(cnt_pad).astype(cnt_dtype)

    x_pad = jnp.zeros((ncur_p, LANES), jnp.float32)
    x_pad = x_pad.at[:ncur, :c_in].set(jnp.asarray(features, jnp.float32))
    x_pad = x_pad.at[:ncur, c_in].set(1.0)                    # ones column -> counts on MXU
    x_pad = x_pad.astype(jnp.bfloat16)                        # bf16 on the wire

    kernel = partial(_point_encoder_kernel, c_in=c_in, c_out=c_out,
                     nd_p=nd_p, nd_real=nd)

    # ---- scoped-VMEM budget from the actual buffer sizes (+ in-kernel intermediates)
    cnt_bytes = 2 if cnt_dtype == jnp.bfloat16 else 4
    io_bytes = 2 * (ncur_p * LANES * 2                        # x (double-buffered)
                    + 8 * ncur_p * 4                          # dinv row (sublane-padded)
                    + nsc_p * ncur_p * cnt_bytes              # pair counts
                    + 7 * LANES * LANES * 2                   # weights
                    + 2 * 8 * LANES * 4                       # biases + BN params
                    + nsc_p * LANES * 4)                      # output
    tmp_bytes = (nd_p * ncur_p * 2                            # one-hot (bf16)
                 + 3 * ncur_p * LANES * 4                     # identity / gathered / lo0
                 + 8 * nd_p * LANES * 4)                      # downsample + PPmodel acts
    vmem_limit = int(min(64 << 20, max(32 << 20, 2 * (io_bytes + tmp_bytes))))

    out = pl.pallas_call(
        kernel,
        out_shape=jax.ShapeDtypeStruct((nsc_p, LANES), jnp.float32),
        grid=(1,),
        in_specs=[
            pl.BlockSpec((ncur_p, LANES), lambda i: (0, 0)),
            pl.BlockSpec((1, ncur_p), lambda i: (0, 0)),
            pl.BlockSpec((nsc_p, ncur_p), lambda i: (0, 0)),
            pl.BlockSpec((7, LANES, LANES), lambda i: (0, 0, 0)),
            pl.BlockSpec((8, LANES), lambda i: (0, 0)),
            pl.BlockSpec((8, LANES), lambda i: (0, 0)),
        ],
        out_specs=pl.BlockSpec((nsc_p, LANES), lambda i: (0, 0)),
        compiler_params=pltpu.CompilerParams(
            dimension_semantics=("arbitrary",),
            vmem_limit_bytes=vmem_limit),
    )(x_pad, dinv_row, cnt, packed["w"], packed["b"], packed["bn"])

    return out[:num_scale, :c_out]


# ------------------------------------------------------------------ pure-JAX reference

def _reference_point_encoder(raw, features, cur_coors, pinv_cur, pinv_scale,
                             num_scale, scale):
    """Literal (f32) transcription of the PyTorch forward, for a correctness check."""
    cur_coors = np.asarray(cur_coors)
    key = np.concatenate([cur_coors[:, :1], cur_coors[:, 1:] // scale], axis=1)
    _, dinv = np.unique(key, axis=0, return_inverse=True)
    dinv = jnp.asarray(dinv.reshape(-1).astype(np.int32))
    nd = int(dinv.max()) + 1

    def seg_mean(x, idx, n):
        s = jnp.zeros((n, x.shape[1]), jnp.float32).at[idx].add(x)
        c = jnp.zeros((n, 1), jnp.float32).at[idx].add(1.0)
        return s / jnp.maximum(c, 1.0)

    def bn(h, g, b):
        m = jnp.mean(h, axis=0, keepdims=True)
        v = jnp.mean((h - m) ** 2, axis=0, keepdims=True)
        return (h - m) * jax.lax.rsqrt(v + BN_EPS) * g + b

    f = jnp.asarray(features, jnp.float32)
    down = seg_mean(f, dinv, nd)
    identity = _leaky(f @ raw["w_in"] + raw["b_in"])
    h = _leaky(down @ raw["w_pp0"] + raw["b_pp0"]); h = bn(h, raw["g0"], raw["be0"])
    h = _leaky(h @ raw["w_pp1"] + raw["b_pp1"]);    h = bn(h, raw["g1"], raw["be1"])
    h = _leaky(h @ raw["w_pp2"] + raw["b_pp2"])
    out = jnp.concatenate([identity, h[dinv]], axis=1)
    t = out[jnp.asarray(np.asarray(pinv_cur).reshape(-1).astype(np.int32))]
    t = _leaky(t @ raw["w_lo0"] + raw["b_lo0"])
    t = t @ raw["w_lo1"] + raw["b_lo1"]
    return seg_mean(t, jnp.asarray(np.asarray(pinv_scale).reshape(-1).astype(np.int32)),
                    num_scale)


# ------------------------------------------------------------------------------ main

if __name__ == "__main__":
    key = jax.random.PRNGKey(0)
    k_coor, k_feat, k_par = jax.random.split(key, 3)

    N_PTS = 256       # points across 2 batches
    C = 64            # in_channels == out_channels (SPVCNN hidden size)
    SCALE = 2

    # synthetic per-point voxel coordinates: (batch, x, y, z) on a small grid
    xyz = np.asarray(jax.random.randint(k_coor, (N_PTS, 3), 0, 8)).astype(np.int64)
    batch = np.concatenate([np.zeros(N_PTS // 2, np.int64), np.ones(N_PTS // 2, np.int64)])
    pts_coors = np.concatenate([batch[:, None], xyz], axis=1)

    # data_dict['spconv_points_coors'] / ['spconv_points_coors_inv']
    cur_coors, pinv_cur = np.unique(pts_coors, axis=0, return_inverse=True)
    pinv_cur = pinv_cur.reshape(-1)
    ncur = cur_coors.shape[0]

    # data_dict['spconv_points_scale_2']['coors_inv']
    key2 = np.concatenate([pts_coors[:, :1], pts_coors[:, 1:] // SCALE], axis=1)
    _, pinv_scale = np.unique(key2, axis=0, return_inverse=True)
    pinv_scale = pinv_scale.reshape(-1)
    nscale = int(pinv_scale.max()) + 1

    features = jax.random.normal(k_feat, (ncur, C), jnp.float32)

    raw = init_point_encoder_params(k_par, C, C)
    packed = pack_point_encoder_params(raw, C, C)

    v_feat = point_encoder_forward(packed, features, cur_coors, pinv_cur,
                                   pinv_scale, nscale, SCALE)
    v_feat = jax.block_until_ready(v_feat)

    ref = jax.block_until_ready(
        _reference_point_encoder(raw, features, cur_coors, pinv_cur,
                                 pinv_scale, nscale, SCALE))
    err = float(jnp.max(jnp.abs(v_feat - ref)))
    if not np.isfinite(err) or err > 0.25:      # bf16-MXU tolerance; typical err ~1e-2
        raise RuntimeError(f"kernel mismatch vs reference: max abs err = {err}")

    print("KERNEL_OK")
</pallas_src>

<mosaic_0001>
module attributes {stable_mosaic.version = 11 : i64} {
  func.func @_point_encoder_kernel(%arg0: i32, %arg1: memref<256x128xbf16, #tpu.memory_space<vmem>>, %arg2: memref<1x256xi32, #tpu.memory_space<vmem>>, %arg3: memref<112x256xbf16, #tpu.memory_space<vmem>>, %arg4: memref<7x128x128xbf16, #tpu.memory_space<vmem>>, %arg5: memref<8x128xf32, #tpu.memory_space<vmem>>, %arg6: memref<8x128xf32, #tpu.memory_space<vmem>>, %arg7: memref<112x128xf32, #tpu.memory_space<vmem>>) attributes {dimension_semantics = [#tpu.dimension_semantics<arbitrary>], iteration_bounds = array<i64: 1>, scalar_prefetch = 0 : i64, scratch_operands = 0 : i64, tpu.core_type = #tpu.core_type<tc>, window_params = [{pipeline_mode = #tpu.pipeline_mode<synchronous>, transform_indices = @transform_0, window_bounds = array<i64: 256, 128>}, {pipeline_mode = #tpu.pipeline_mode<synchronous>, transform_indices = @transform_1, window_bounds = array<i64: 1, 256>}, {pipeline_mode = #tpu.pipeline_mode<synchronous>, transform_indices = @transform_2, window_bounds = array<i64: 112, 256>}, {pipeline_mode = #tpu.pipeline_mode<synchronous>, transform_indices = @transform_3, window_bounds = array<i64: 7, 128, 128>}, {pipeline_mode = #tpu.pipeline_mode<synchronous>, transform_indices = @transform_4, window_bounds = array<i64: 8, 128>}, {pipeline_mode = #tpu.pipeline_mode<synchronous>, transform_indices = @transform_5, window_bounds = array<i64: 8, 128>}, {pipeline_mode = #tpu.pipeline_mode<synchronous>, transform_indices = @transform_6, window_bounds = array<i64: 112, 128>}]} {
    %c0 = arith.constant 0 : index
    %c0_0 = arith.constant 0 : index
    %0 = vector.load %arg1[%c0, %c0_0] : memref<256x128xbf16, #tpu.memory_space<vmem>>, vector<256x128xbf16>
    %1 = tpu.iota {dimensions = array<i32: 0>} : vector<128x256xi32>
    %c0_1 = arith.constant 0 : index
    %c0_2 = arith.constant 0 : index
    %2 = vector.load %arg2[%c0_1, %c0_2] : memref<1x256xi32, #tpu.memory_space<vmem>>, vector<1x256xi32>
    %3 = vector.broadcast %2 : vector<1x256xi32> to vector<128x256xi32>
    %4 = arith.cmpi eq, %1, %3 : vector<128x256xi32>
    %5 = arith.extui %4 : vector<128x256xi1> to vector<128x256xi32>
    %6 = arith.sitofp %5 : vector<128x256xi32> to vector<128x256xf32>
    %7 = arith.truncf %6 : vector<128x256xf32> to vector<128x256xbf16>
    %cst = arith.constant dense<0.000000e+00> : vector<128x128xf32>
    %8 = tpu.matmul %7, %0, %cst {dimension_numbers = #tpu.dot_dimension_numbers<[1], [0], [0], [1], [0, 0, 1, 1], [], []>} : vector<128x256xbf16>, vector<256x128xbf16>, vector<128x128xf32> -> vector<128x128xf32>
    %9 = vector.extract_strided_slice %8 {offsets = [0, 64], sizes = [128, 1], strides = [1, 1]} : vector<128x128xf32> to vector<128x1xf32>
    %cst_3 = arith.constant 1.000000e+00 : f32
    %10 = vector.broadcast %cst_3 : f32 to vector<128x1xf32>
    %11 = arith.maximumf %9, %10 : vector<128x1xf32>
    %12 = vector.broadcast %11 : vector<128x1xf32> to vector<128x128xf32>
    %13 = arith.divf %8, %12 : vector<128x128xf32>
    %c0_4 = arith.constant 0 : index
    %c0_5 = arith.constant 0 : index
    %c0_6 = arith.constant 0 : index
    %14 = vector.load %arg4[%c0_4, %c0_5, %c0_6] : memref<7x128x128xbf16, #tpu.memory_space<vmem>>, vector<1x128x128xbf16>
    %15 = vector.shape_cast %14 : vector<1x128x128xbf16> to vector<128x128xbf16>
    %cst_7 = arith.constant dense<0.000000e+00> : vector<256x128xf32>
    %16 = tpu.matmul %0, %15, %cst_7 {dimension_numbers = #tpu.dot_dimension_numbers<[1], [0], [0], [1], [0, 0, 1, 1], [], []>} : vector<256x128xbf16>, vector<128x128xbf16>, vector<256x128xf32> -> vector<256x128xf32>
    %c0_8 = arith.constant 0 : index
    %c0_9 = arith.constant 0 : index
    %17 = vector.load %arg5[%c0_8, %c0_9] : memref<8x128xf32, #tpu.memory_space<vmem>>, vector<1x128xf32>
    %18 = vector.broadcast %17 : vector<1x128xf32> to vector<256x128xf32>
    %19 = arith.addf %16, %18 : vector<256x128xf32>
    %cst_10 = arith.constant 0.000000e+00 : f32
    %20 = vector.broadcast %cst_10 : f32 to vector<256x128xf32>
    %21 = arith.cmpf oge, %19, %20 : vector<256x128xf32>
    %cst_11 = arith.constant 1.000000e-01 : f32
    %22 = vector.broadcast %cst_11 : f32 to vector<256x128xf32>
    %23 = arith.mulf %22, %19 : vector<256x128xf32>
    %24 = arith.select %21, %19, %23 : vector<256x128xi1>, vector<256x128xf32>
    %25 = tpu.iota {dimensions = array<i32: 0>} : vector<128x1xi32>
    %c108_i32 = arith.constant 108 : i32
    %26 = vector.broadcast %c108_i32 : i32 to vector<128x1xi32>
    %27 = arith.cmpi slt, %25, %26 : vector<128x1xi32>
    %28 = arith.extui %27 : vector<128x1xi1> to vector<128x1xi32>
    %29 = arith.sitofp %28 : vector<128x1xi32> to vector<128x1xf32>
    %30 = arith.truncf %13 : vector<128x128xf32> to vector<128x128xbf16>
    %c1 = arith.constant 1 : index
    %c0_12 = arith.constant 0 : index
    %c0_13 = arith.constant 0 : index
    %31 = vector.load %arg4[%c1, %c0_12, %c0_13] : memref<7x128x128xbf16, #tpu.memory_space<vmem>>, vector<1x128x128xbf16>
    %32 = vector.shape_cast %31 : vector<1x128x128xbf16> to vector<128x128xbf16>
    %cst_14 = arith.constant dense<0.000000e+00> : vector<128x128xf32>
    %33 = tpu.matmul %30, %32, %cst_14 {dimension_numbers = #tpu.dot_dimension_numbers<[1], [0], [0], [1], [0, 0, 1, 1], [], []>} : vector<128x128xbf16>, vector<128x128xbf16>, vector<128x128xf32> -> vector<128x128xf32>
    %c1_15 = arith.constant 1 : index
    %c0_16 = arith.constant 0 : index
    %34 = vector.load %arg5[%c1_15, %c0_16] : memref<8x128xf32, #tpu.memory_space<vmem>>, vector<1x128xf32>
    %35 = vector.broadcast %34 : vector<1x128xf32> to vector<128x128xf32>
    %36 = arith.addf %33, %35 : vector<128x128xf32>
    %cst_17 = arith.constant 0.000000e+00 : f32
    %37 = vector.broadcast %cst_17 : f32 to vector<128x128xf32>
    %38 = arith.cmpf oge, %36, %37 : vector<128x128xf32>
    %cst_18 = arith.constant 1.000000e-01 : f32
    %39 = vector.broadcast %cst_18 : f32 to vector<128x128xf32>
    %40 = arith.mulf %39, %36 : vector<128x128xf32>
    %41 = arith.select %38, %36, %40 : vector<128x128xi1>, vector<128x128xf32>
    %42 = vector.broadcast %29 : vector<128x1xf32> to vector<128x128xf32>
    %43 = arith.mulf %41, %42 : vector<128x128xf32>
    %cst_19 = arith.constant dense<0.000000e+00> : vector<128xf32>
    %44 = vector.multi_reduction <add>, %43, %cst_19 [0] : vector<128x128xf32> to vector<128xf32>
    %45 = vector.shape_cast %44 : vector<128xf32> to vector<1x128xf32>
    %cst_20 = arith.constant 0.00925925932 : f32
    %46 = vector.broadcast %cst_20 : f32 to vector<1x128xf32>
    %47 = arith.mulf %45, %46 : vector<1x128xf32>
    %48 = vector.broadcast %47 : vector<1x128xf32> to vector<128x128xf32>
    %49 = arith.subf %41, %48 : vector<128x128xf32>
    %50 = vector.broadcast %29 : vector<128x1xf32> to vector<128x128xf32>
    %51 = arith.mulf %49, %50 : vector<128x128xf32>
    %52 = arith.mulf %51, %51 : vector<128x128xf32>
    %cst_21 = arith.constant dense<0.000000e+00> : vector<128xf32>
    %53 = vector.multi_reduction <add>, %52, %cst_21 [0] : vector<128x128xf32> to vector<128xf32>
    %54 = vector.shape_cast %53 : vector<128xf32> to vector<1x128xf32>
    %cst_22 = arith.constant 0.00925925932 : f32
    %55 = vector.broadcast %cst_22 : f32 to vector<1x128xf32>
    %56 = arith.mulf %54, %55 : vector<1x128xf32>
    %c0_23 = arith.constant 0 : index
    %c0_24 = arith.constant 0 : index
    %57 = vector.load %arg6[%c0_23, %c0_24] : memref<8x128xf32, #tpu.memory_space<vmem>>, vector<1x128xf32>
    %c1_25 = arith.constant 1 : index
    %c0_26 = arith.constant 0 : index
    %58 = vector.load %arg6[%c1_25, %c0_26] : memref<8x128xf32, #tpu.memory_space<vmem>>, vector<1x128xf32>
    %59 = vector.broadcast %47 : vector<1x128xf32> to vector<128x128xf32>
    %60 = arith.subf %41, %59 : vector<128x128xf32>
    %cst_27 = arith.constant 9.99999974E-6 : f32
    %61 = vector.broadcast %cst_27 : f32 to vector<1x128xf32>
    %62 = arith.addf %56, %61 : vector<1x128xf32>
    %63 = math.rsqrt %62 : vector<1x128xf32>
    %64 = vector.broadcast %63 : vector<1x128xf32> to vector<128x128xf32>
    %65 = arith.mulf %60, %64 : vector<128x128xf32>
    %66 = vector.broadcast %57 : vector<1x128xf32> to vector<128x128xf32>
    %67 = arith.mulf %65, %66 : vector<128x128xf32>
    %68 = vector.broadcast %58 : vector<1x128xf32> to vector<128x128xf32>
    %69 = arith.addf %67, %68 : vector<128x128xf32>
    %70 = arith.truncf %69 : vector<128x128xf32> to vector<128x128xbf16>
    %c2 = arith.constant 2 : index
    %c0_28 = arith.constant 0 : index
    %c0_29 = arith.constant 0 : index
    %71 = vector.load %arg4[%c2, %c0_28, %c0_29] : memref<7x128x128xbf16, #tpu.memory_space<vmem>>, vector<1x128x128xbf16>
    %72 = vector.shape_cast %71 : vector<1x128x128xbf16> to vector<128x128xbf16>
    %cst_30 = arith.constant dense<0.000000e+00> : vector<128x128xf32>
    %73 = tpu.matmul %70, %72, %cst_30 {dimension_numbers = #tpu.dot_dimension_numbers<[1], [0], [0], [1], [0, 0, 1, 1], [], []>} : vector<128x128xbf16>, vector<128x128xbf16>, vector<128x128xf32> -> vector<128x128xf32>
    %c2_31 = arith.constant 2 : index
    %c0_32 = arith.constant 0 : index
    %74 = vector.load %arg5[%c2_31, %c0_32] : memref<8x128xf32, #tpu.memory_space<vmem>>, vector<1x128xf32>
    %75 = vector.broadcast %74 : vector<1x128xf32> to vector<128x128xf32>
    %76 = arith.addf %73, %75 : vector<128x128xf32>
    %cst_33 = arith.constant 0.000000e+00 : f32
    %77 = vector.broadcast %cst_33 : f32 to vector<128x128xf32>
    %78 = arith.cmpf oge, %76, %77 : vector<128x128xf32>
    %cst_34 = arith.constant 1.000000e-01 : f32
    %79 = vector.broadcast %cst_34 : f32 to vector<128x128xf32>
    %80 = arith.mulf %79, %76 : vector<128x128xf32>
    %81 = arith.select %78, %76, %80 : vector<128x128xi1>, vector<128x128xf32>
    %82 = vector.broadcast %29 : vector<128x1xf32> to vector<128x128xf32>
    %83 = arith.mulf %81, %82 : vector<128x128xf32>
    %cst_35 = arith.constant dense<0.000000e+00> : vector<128xf32>
    %84 = vector.multi_reduction <add>, %83, %cst_35 [0] : vector<128x128xf32> to vector<128xf32>
    %85 = vector.shape_cast %84 : vector<128xf32> to vector<1x128xf32>
    %cst_36 = arith.constant 0.00925925932 : f32
    %86 = vector.broadcast %cst_36 : f32 to vector<1x128xf32>
    %87 = arith.mulf %85, %86 : vector<1x128xf32>
    %88 = vector.broadcast %87 : vector<1x128xf32> to vector<128x128xf32>
    %89 = arith.subf %81, %88 : vector<128x128xf32>
    %90 = vector.broadcast %29 : vector<128x1xf32> to vector<128x128xf32>
    %91 = arith.mulf %89, %90 : vector<128x128xf32>
    %92 = arith.mulf %91, %91 : vector<128x128xf32>
    %cst_37 = arith.constant dense<0.000000e+00> : vector<128xf32>
    %93 = vector.multi_reduction <add>, %92, %cst_37 [0] : vector<128x128xf32> to vector<128xf32>
    %94 = vector.shape_cast %93 : vector<128xf32> to vector<1x128xf32>
    %cst_38 = arith.constant 0.00925925932 : f32
    %95 = vector.broadcast %cst_38 : f32 to vector<1x128xf32>
    %96 = arith.mulf %94, %95 : vector<1x128xf32>
    %c2_39 = arith.constant 2 : index
    %c0_40 = arith.constant 0 : index
    %97 = vector.load %arg6[%c2_39, %c0_40] : memref<8x128xf32, #tpu.memory_space<vmem>>, vector<1x128xf32>
    %c3 = arith.constant 3 : index
    %c0_41 = arith.constant 0 : index
    %98 = vector.load %arg6[%c3, %c0_41] : memref<8x128xf32, #tpu.memory_space<vmem>>, vector<1x128xf32>
    %99 = vector.broadcast %87 : vector<1x128xf32> to vector<128x128xf32>
    %100 = arith.subf %81, %99 : vector<128x128xf32>
    %cst_42 = arith.constant 9.99999974E-6 : f32
    %101 = vector.broadcast %cst_42 : f32 to vector<1x128xf32>
    %102 = arith.addf %96, %101 : vector<1x128xf32>
    %103 = math.rsqrt %102 : vector<1x128xf32>
    %104 = vector.broadcast %103 : vector<1x128xf32> to vector<128x128xf32>
    %105 = arith.mulf %100, %104 : vector<128x128xf32>
    %106 = vector.broadcast %97 : vector<1x128xf32> to vector<128x128xf32>
    %107 = arith.mulf %105, %106 : vector<128x128xf32>
    %108 = vector.broadcast %98 : vector<1x128xf32> to vector<128x128xf32>
    %109 = arith.addf %107, %108 : vector<128x128xf32>
    %110 = arith.truncf %109 : vector<128x128xf32> to vector<128x128xbf16>
    %c3_43 = arith.constant 3 : index
    %c0_44 = arith.constant 0 : index
    %c0_45 = arith.constant 0 : index
    %111 = vector.load %arg4[%c3_43, %c0_44, %c0_45] : memref<7x128x128xbf16, #tpu.memory_space<vmem>>, vector<1x128x128xbf16>
    %112 = vector.shape_cast %111 : vector<1x128x128xbf16> to vector<128x128xbf16>
    %cst_46 = arith.constant dense<0.000000e+00> : vector<128x128xf32>
    %113 = tpu.matmul %110, %112, %cst_46 {dimension_numbers = #tpu.dot_dimension_numbers<[1], [0], [0], [1], [0, 0, 1, 1], [], []>} : vector<128x128xbf16>, vector<128x128xbf16>, vector<128x128xf32> -> vector<128x128xf32>
    %c3_47 = arith.constant 3 : index
    %c0_48 = arith.constant 0 : index
    %114 = vector.load %arg5[%c3_47, %c0_48] : memref<8x128xf32, #tpu.memory_space<vmem>>, vector<1x128xf32>
    %115 = vector.broadcast %114 : vector<1x128xf32> to vector<128x128xf32>
    %116 = arith.addf %113, %115 : vector<128x128xf32>
    %cst_49 = arith.constant 0.000000e+00 : f32
    %117 = vector.broadcast %cst_49 : f32 to vector<128x128xf32>
    %118 = arith.cmpf oge, %116, %117 : vector<128x128xf32>
    %cst_50 = arith.constant 1.000000e-01 : f32
    %119 = vector.broadcast %cst_50 : f32 to vector<128x128xf32>
    %120 = arith.mulf %119, %116 : vector<128x128xf32>
    %121 = arith.select %118, %116, %120 : vector<128x128xi1>, vector<128x128xf32>
    %122 = arith.truncf %121 : vector<128x128xf32> to vector<128x128xbf16>
    %c5 = arith.constant 5 : index
    %c0_51 = arith.constant 0 : index
    %c0_52 = arith.constant 0 : index
    %123 = vector.load %arg4[%c5, %c0_51, %c0_52] : memref<7x128x128xbf16, #tpu.memory_space<vmem>>, vector<1x128x128xbf16>
    %124 = vector.shape_cast %123 : vector<1x128x128xbf16> to vector<128x128xbf16>
    %cst_53 = arith.constant dense<0.000000e+00> : vector<128x128xf32>
    %125 = tpu.matmul %122, %124, %cst_53 {dimension_numbers = #tpu.dot_dimension_numbers<[1], [0], [0], [1], [0, 0, 1, 1], [], []>} : vector<128x128xbf16>, vector<128x128xbf16>, vector<128x128xf32> -> vector<128x128xf32>
    %126 = arith.truncf %125 : vector<128x128xf32> to vector<128x128xbf16>
    %cst_54 = arith.constant dense<0.000000e+00> : vector<256x128xf32>
    %127 = tpu.matmul %7, %126, %cst_54 {dimension_numbers = #tpu.dot_dimension_numbers<[0], [0], [1], [1], [0, 1, 1, 1], [], []>} : vector<128x256xbf16>, vector<128x128xbf16>, vector<256x128xf32> -> vector<256x128xf32>
    %128 = arith.truncf %24 : vector<256x128xf32> to vector<256x128xbf16>
    %c4 = arith.constant 4 : index
    %c0_55 = arith.constant 0 : index
    %c0_56 = arith.constant 0 : index
    %129 = vector.load %arg4[%c4, %c0_55, %c0_56] : memref<7x128x128xbf16, #tpu.memory_space<vmem>>, vector<1x128x128xbf16>
    %130 = vector.shape_cast %129 : vector<1x128x128xbf16> to vector<128x128xbf16>
    %cst_57 = arith.constant dense<0.000000e+00> : vector<256x128xf32>
    %131 = tpu.matmul %128, %130, %cst_57 {dimension_numbers = #tpu.dot_dimension_numbers<[1], [0], [0], [1], [0, 0, 1, 1], [], []>} : vector<256x128xbf16>, vector<128x128xbf16>, vector<256x128xf32> -> vector<256x128xf32>
    %132 = arith.addf %131, %127 : vector<256x128xf32>
    %c4_58 = arith.constant 4 : index
    %c0_59 = arith.constant 0 : index
    %133 = vector.load %arg5[%c4_58, %c0_59] : memref<8x128xf32, #tpu.memory_space<vmem>>, vector<1x128xf32>
    %134 = vector.broadcast %133 : vector<1x128xf32> to vector<256x128xf32>
    %135 = arith.addf %132, %134 : vector<256x128xf32>
    %cst_60 = arith.constant 0.000000e+00 : f32
    %136 = vector.broadcast %cst_60 : f32 to vector<256x128xf32>
    %137 = arith.cmpf oge, %135, %136 : vector<256x128xf32>
    %cst_61 = arith.constant 1.000000e-01 : f32
    %138 = vector.broadcast %cst_61 : f32 to vector<256x128xf32>
    %139 = arith.mulf %138, %135 : vector<256x128xf32>
    %140 = arith.select %137, %135, %139 : vector<256x128xi1>, vector<256x128xf32>
    %c0_62 = arith.constant 0 : index
    %c0_63 = arith.constant 0 : index
    %141 = vector.load %arg3[%c0_62, %c0_63] : memref<112x256xbf16, #tpu.memory_space<vmem>>, vector<112x256xbf16>
    %142 = arith.truncf %140 : vector<256x128xf32> to vector<256x128xbf16>
    %cst_64 = arith.constant dense<0.000000e+00> : vector<112x128xf32>
    %143 = tpu.matmul %141, %142, %cst_64 {dimension_numbers = #tpu.dot_dimension_numbers<[1], [0], [0], [1], [0, 0, 1, 1], [], []>} : vector<112x256xbf16>, vector<256x128xbf16>, vector<112x128xf32> -> vector<112x128xf32>
    %144 = vector.extract_strided_slice %143 {offsets = [0, 64], sizes = [112, 1], strides = [1, 1]} : vector<112x128xf32> to vector<112x1xf32>
    %cst_65 = arith.constant 1.000000e+00 : f32
    %145 = vector.broadcast %cst_65 : f32 to vector<112x1xf32>
    %146 = arith.maximumf %144, %145 : vector<112x1xf32>
    %147 = vector.broadcast %146 : vector<112x1xf32> to vector<112x128xf32>
    %148 = arith.divf %143, %147 : vector<112x128xf32>
    %149 = arith.truncf %148 : vector<112x128xf32> to vector<112x128xbf16>
    %c6 = arith.constant 6 : index
    %c0_66 = arith.constant 0 : index
    %c0_67 = arith.constant 0 : index
    %150 = vector.load %arg4[%c6, %c0_66, %c0_67] : memref<7x128x128xbf16, #tpu.memory_space<vmem>>, vector<1x128x128xbf16>
    %151 = vector.shape_cast %150 : vector<1x128x128xbf16> to vector<128x128xbf16>
    %cst_68 = arith.constant dense<0.000000e+00> : vector<112x128xf32>
    %152 = tpu.matmul %149, %151, %cst_68 {dimension_numbers = #tpu.dot_dimension_numbers<[1], [0], [0], [1], [0, 0, 1, 1], [], []>} : vector<112x128xbf16>, vector<128x128xbf16>, vector<112x128xf32> -> vector<112x128xf32>
    %c5_69 = arith.constant 5 : index
    %c0_70 = arith.constant 0 : index
    %153 = vector.load %arg5[%c5_69, %c0_70] : memref<8x128xf32, #tpu.memory_space<vmem>>, vector<1x128xf32>
    %154 = vector.broadcast %153 : vector<1x128xf32> to vector<112x128xf32>
    %155 = arith.addf %152, %154 : vector<112x128xf32>
    %c0_71 = arith.constant 0 : index
    %c0_72 = arith.constant 0 : index
    %156 = vector.load %arg7[%c0_71, %c0_72] : memref<112x128xf32, #tpu.memory_space<vmem>>, vector<112x128xf32>
    tpu.vector_store %arg7[%c0_71, %c0_72], %155 {strides = array<i32>} : memref<112x128xf32, #tpu.memory_space<vmem>>, vector<112x128xf32>,
    return
  }
  func.func @transform_0(%arg0: i32) -> (i32, i32) {
    %c0_i32 = arith.constant 0 : i32
    %c0_i32_0 = arith.constant 0 : i32
    %c0_i32_1 = arith.constant 0 : i32
    return %c0_i32, %c0_i32_0 : i32, i32
  }
  func.func @transform_1(%arg0: i32) -> (i32, i32) {
    %c0_i32 = arith.constant 0 : i32
    %c0_i32_0 = arith.constant 0 : i32
    %c0_i32_1 = arith.constant 0 : i32
    return %c0_i32, %c0_i32_0 : i32, i32
  }
  func.func @transform_2(%arg0: i32) -> (i32, i32) {
    %c0_i32 = arith.constant 0 : i32
    %c0_i32_0 = arith.constant 0 : i32
    %c0_i32_1 = arith.constant 0 : i32
    return %c0_i32, %c0_i32_0 : i32, i32
  }
  func.func @transform_3(%arg0: i32) -> (i32, i32, i32) {
    %c0_i32 = arith.constant 0 : i32
    %c0_i32_0 = arith.constant 0 : i32
    %c0_i32_1 = arith.constant 0 : i32
    %c0_i32_2 = arith.constant 0 : i32
    return %c0_i32, %c0_i32_0, %c0_i32_1 : i32, i32, i32
  }
  func.func @transform_4(%arg0: i32) -> (i32, i32) {
    %c0_i32 = arith.constant 0 : i32
    %c0_i32_0 = arith.constant 0 : i32
    %c0_i32_1 = arith.constant 0 : i32
    return %c0_i32, %c0_i32_0 : i32, i32
  }
  func.func @transform_5(%arg0: i32) -> (i32, i32) {
    %c0_i32 = arith.constant 0 : i32
    %c0_i32_0 = arith.constant 0 : i32
    %c0_i32_1 = arith.constant 0 : i32
    return %c0_i32, %c0_i32_0 : i32, i32
  }
  func.func @transform_6(%arg0: i32) -> (i32, i32) {
    %c0_i32 = arith.constant 0 : i32
    %c0_i32_0 = arith.constant 0 : i32
    %c0_i32_1 = arith.constant 0 : i32
    return %c0_i32, %c0_i32_0 : i32, i32
  }
}

</mosaic_0001>

<bundles_post_ra>
// kernel: tpu_custom_call.1
= control target key start
LH: loop header
LB: loop body
LE: loop exit
PB: predicated region body
PF: predicated region fallthrough
CT: control target
= control target key end

     0   :  { %11 = vsyncpa [#allocation3], 0  ;;  %s5575_s0 = inlined_call_operand.hbm [shape: bf16[256,128], index: 0, kind: input, shape index: {}]   ;;  %s5576_s1 = inlined_call_operand.vmem [shape: s32[1,256], index: 1, kind: input, shape index: {}]   ;;  %s5577_s2 = inlined_call_operand.hbm [shape: bf16[112,256], index: 2, kind: input, shape index: {}]   ;;  %s5578_s3 = inlined_call_operand.hbm [shape: bf16[7,128,128], index: 3, kind: input, shape index: {}]   ;;  %s5579_s4 = inlined_call_operand.vmem [shape: f32[8,128], index: 4, kind: input, shape index: {}]   ;;  %s5580_s5 = inlined_call_operand.vmem [shape: f32[8,128], index: 5, kind: input, shape index: {}]   ;;  %s5581_s6 = inlined_call_operand.hbm [shape: f32[112,128], index: 6, kind: output, shape index: {}]  }
   0x1   :  { %12 = vsyncpa [#allocation6], 0 }
   0x2   :  { %13 = vsyncpa [#allocation4], 0  ;;  %s4233_s21 = smov [#allocation5]   ;;  %s4139_s25 = scalar_lea.hbm %s5577_s2, 1792 }
   0x3   :  { %s33_s22 = sshll.u32 %s4233_s21, 4  ;;  %p4140_p0 = scmp.ne.s32.totalorder %s5577_s2, %s4139_s25  ;;  %s34_s22 = int_to_ptr.vmem [resolvable:$true] %s33_s22 }
   0x4   :  { %p4143_p1 = scmp.lt.u32.totalorder %s4139_s25, %s5577_s2 }
   0x6   :  { %p4145_p2 = pnand %p4143_p1, %p4140_p0 }
   0x8   :  { %4148 = shalt.err (!%p4145_p2)
}
   0x9   :  { %s4149_s30 = scalar_lea.vmem %s34_s22, 1792  ;;  %p4154_p4 = scmp.lt.s32.totalorder %s34_s22, %s34_s22 }
   0xa   :  { %p4150_p3 = scmp.ne.s32.totalorder %s34_s22, %s4149_s30  ;;  %p4155_p5 = scmp.lt.s32.totalorder %s4149_s30, %s4149_s30 }
   0xc   :  { %p4156_p6 = por %p4155_p5, %p4154_p4 }
   0xe   :  { %p4157_p7 = pnand %p4156_p6, %p4150_p3 }
  0x10   :  { %4160 = shalt.err (!%p4157_p7)
}
  0x11   :  { %s4234_s7 = smov 128   ;;  %s4235_s8 = smov 8  }
  0x12   :  { %39 = dma.hbm_to_vmem [thread:$0]  %s5577_s2, 1792, %s34_s22, [#allocation6], %s4234_s7, %s4234_s7, %s4235_s8  }
  0x13   :  { %s4236_s11 = smov [#allocation2]   ;;  %s4161_s15 = scalar_lea.hbm %s5575_s0, 2048 }
  0x14   :  { %s19_s12 = sshll.u32 %s4236_s11, 4  ;;  %p4162_p8 = scmp.ne.s32.totalorder %s5575_s0, %s4161_s15  ;;  %s20_s12 = int_to_ptr.vmem [resolvable:$true] %s19_s12 }
  0x15   :  { %p4165_p9 = scmp.lt.u32.totalorder %s4161_s15, %s5575_s0 }
  0x17   :  { %p4167_p10 = pnand %p4165_p9, %p4162_p8 }
  0x19   :  { %4170 = shalt.err (!%p4167_p10)
}
  0x1a   :  { %s4171_s20 = scalar_lea.vmem %s20_s12, 2048  ;;  %p4176_p12 = scmp.lt.s32.totalorder %s20_s12, %s20_s12 }
  0x1b   :  { %p4172_p11 = scmp.ne.s32.totalorder %s20_s12, %s4171_s20  ;;  %p4177_p13 = scmp.lt.s32.totalorder %s4171_s20, %s4171_s20 }
  0x1d   :  { %p4178_p0 = por %p4177_p13, %p4176_p12 }
  0x1f   :  { %p4179_p1 = pnand %p4178_p0, %p4172_p11 }
  0x21   :  { %4182 = shalt.err (!%p4179_p1)
}
  0x22   :  { %s4237_s2 = smov 64   ;;  %s4238_s21 = smov 4  }
  0x23   :  { %25 = dma.hbm_to_vmem [thread:$0]  %s5575_s0, 2048, %s20_s12, [#allocation3], %s4237_s2, %s4237_s2, %s4238_s21  }
  0x24   :  { %s4239_s24 = smov [#allocation7]   ;;  %s4183_s28 = scalar_lea.hbm %s5578_s3, 7168 }
  0x25   :  { %s45_s25 = sshll.u32 %s4239_s24, 4  ;;  %p4184_p2 = scmp.ne.s32.totalorder %s5578_s3, %s4183_s28  ;;  %s46_s25 = int_to_ptr.vmem [resolvable:$true] %s45_s25 }
  0x26   :  { %p4187_p3 = scmp.lt.u32.totalorder %s4183_s28, %s5578_s3 }
  0x28   :  { %p4189_p4 = pnand %p4187_p3, %p4184_p2 }
  0x2a   :  { %4192 = shalt.err (!%p4189_p4)
}
  0x2b   :  { %s4193_s11 = scalar_lea.vmem %s46_s25, 7168  ;;  %p4198_p6 = scmp.lt.s32.totalorder %s46_s25, %s46_s25 }
  0x2c   :  { %p4194_p5 = scmp.ne.s32.totalorder %s46_s25, %s4193_s11  ;;  %p4199_p7 = scmp.lt.s32.totalorder %s4193_s11, %s4193_s11 }
  0x2e   :  { %p4200_p8 = por %p4199_p7, %p4198_p6 }
  0x30   :  { %p4201_p9 = pnand %p4200_p8, %p4194_p5 }
  0x32   :  { %4204 = shalt.err (!%p4201_p9)
}
  0x33   :  { %51 = dma.hbm_to_vmem [thread:$0]  %s5578_s3, 7168, %s46_s25, [#allocation6], %s4237_s2, %s4237_s2, %s4238_s21  }
  0x34   :  { %4227 = dma.done.wait [#allocation3], 2048  }
  0x35   :  { %4228 = vsyncadd [#allocation3], 4294965248 }
  0x36   :  { %4229 = dma.done.wait [#allocation6], 8960  }
  0x37   :  { %4230 = vsyncadd [#allocation6], 4294958336  ;;  %v98_v0 = vlaneseq  ;;  %v3977_v1 = vld [vmem:[#allocation2 + $0x40] sm:$0xff]   ;;  %v3979_v4 = vld [vmem:[#allocation2 + $0x48] sm:$0xff]   ;;  %v5598_v35 = vmov 0.0  }
  0x38   :  { %v3978_v2 = vld [vmem:[#allocation2] sm:$0xff]   ;;  %3342 = vmatprep.subr.bf16.mxu0 %v3977_v1  ;;  %v3980_v5 = vld [vmem:[#allocation2 + $0x8] sm:$0xff]   ;;  %v3981_v6 = vld [vmem:[#allocation2 + $0x50] sm:$0xff]   ;;  %v4241_v40 = vmov 1.0|1.0  }
  0x39   :  { %v4319_v3 = vshrl.u32 %v98_v0, 7  ;;  %3343 = vmatpush3.bf16.msra.mxu0 %v3978_v2  ;;  %3631 = vmatprep.mubr.bf16.mxu1 %v3978_v2  ;;  %v4332_v12 = vld [vmem:[#allocation2 + $0x10] sm:$0xff]   ;;  %v3983_v14 = vld [vmem:[#allocation2 + $0x58] sm:$0xff]   ;;  %v4358_v22 = vld [vmem:[#allocation2 + $0x60] sm:$0xff]  }
  0x3a   :  { %3344 = vmatprep.subr.bf16.mxu0 %v3979_v4  ;;  %v4353_v20 = vld [vmem:[#allocation2 + $0x18] sm:$0xff]   ;;  %v4369_v26 = vld [vmem:[#allocation2 + $0x20] sm:$0xff]   ;;  %v4375_v28 = vld [vmem:[#allocation2 + $0x68] sm:$0xff]  }
  0x3b   :  { %v4322_v7 = vadd.s32 8, %v4319_v3  ;;  %v118_v8 = vsub.s32 0, %v4319_v3  ;;  %v122_v9 = vsub.s32 1, %v4319_v3  ;;  %v4327_v10 = vadd.s32 16, %v4319_v3  ;;  %v115_v30 = vld [vmem:[%s5576_s1] sm:$0x3] }
  0x3c   :  { %v4330_v11 = vadd.s32 24, %v4319_v3  ;;  %v4335_v13 = vadd.s32 32, %v4319_v3  ;;  %v4338_v15 = vadd.s32 40, %v4319_v3  ;;  %v4341_v16 = vadd.s32 48, %v4319_v3  ;;  %v4384_v31 = vld [vmem:[#allocation2 + $0x28] sm:$0xff]   ;;  %v4390_v34 = vld [vmem:[#allocation2 + $0x70] sm:$0xff]  }
  0x3d   :  { %3345 = vmatpush3.bf16.msra.mxu0 %v3980_v5  ;;  %v4344_v17 = vadd.s32 56, %v4319_v3  ;;  %v4347_v18 = vadd.s32 64, %v4319_v3  ;;  %v4350_v19 = vadd.s32 72, %v4319_v3  ;;  %v4356_v21 = vadd.s32 80, %v4319_v3  ;;  %v4412_v38 = vld [vmem:[#allocation2 + $0x30] sm:$0xff]   ;;  %v4431_v43 = vld [vmem:[#allocation2 + $0x78] sm:$0xff]  }
  0x3e   :  { %3346 = vmatprep.subr.bf16.mxu0 %v3981_v6  ;;  %v4361_v23 = vadd.s32 88, %v4319_v3  ;;  %v4364_v24 = vadd.s32 96, %v4319_v3  ;;  %v4367_v25 = vadd.s32 104, %v4319_v3  ;;  %v4372_v27 = vadd.s32 112, %v4319_v3  ;;  %v4479_v51 = vld [vmem:[#allocation2 + $0x38] sm:$0xff]  }
  0x3f   :  { %v4378_v29 = vadd.s32 120, %v4319_v3  ;;  %v4386_v32 = vrot.slane %v115_v30, %v118_v8  ;;  %v4388_v33 = vrot.slane %v115_v30, %v122_v9 }
  0x41   :  { %3347 = vmatpush3.bf16.msra.mxu0 %v4332_v12  ;;  %vm125_vm0 = vcmp.eq.s32.totalorder %v4319_v3, %v4388_v33  ;;  %vm127_vm1 = vcmp.eq.s32.totalorder %v4322_v7, %v4388_v33  ;;  %vm5588_vm2 = vcmp.eq.s32.totalorder %v4319_v3, %v4386_v32  ;;  %vm5587_vm3 = vcmp.eq.s32.totalorder %v4322_v7, %v4386_v32 }
  0x42   :  { %3348 = vmatprep.subr.bf16.mxu0 %v3983_v14  ;;  %v4403_v36 = vsel %vm125_vm0, 1.0, %v5598_v35  ;;  %v4406_v37 = vsel %vm127_vm1, 1.0, %v5598_v35  ;;  %vm3229_vm4 = vmpackc.low %vm127_vm1, %vm125_vm0  ;;  %vm129_vm5 = vcmp.eq.s32.totalorder %v4327_v10, %v4388_v33  ;;  %vm131_vm6 = vcmp.eq.s32.totalorder %v4330_v11, %v4388_v33 }
  0x43   :  { %3230 = vmatprep.mubr.msk.bf16.mxu0 %vm3229_vm4, %v4241_v40  ;;  %v4421_v41 = vsel %vm129_vm5, 1.0, %v5598_v35  ;;  %v4427_v42 = vsel %vm131_vm6, 1.0, %v5598_v35  ;;  %vm128_vm7 = vcmp.eq.s32.totalorder %v4327_v10, %v4386_v32  ;;  %vm130_vm8 = vcmp.eq.s32.totalorder %v4330_v11, %v4386_v32 }
  0x44   :  { %v4441_v45 = vsel %vm128_vm7, 1.0, %v5598_v35  ;;  %vm133_vm9 = vcmp.eq.s32.totalorder %v4335_v13, %v4388_v33  ;;  %v4450_v46 = vsel %vm130_vm8, 1.0, %v5598_v35  ;;  %vm135_vm10 = vcmp.eq.s32.totalorder %v4338_v15, %v4388_v33 }
  0x45   :  { %3349 = vmatpush3.bf16.msra.mxu0 %v4353_v20  ;;  %v4458_v47 = vsel %vm133_vm9, 1.0, %v5598_v35  ;;  %vm132_vm11 = vcmp.eq.s32.totalorder %v4335_v13, %v4386_v32  ;;  %v4469_v49 = vsel %vm135_vm10, 1.0, %v5598_v35  ;;  %vm134_vm12 = vcmp.eq.s32.totalorder %v4338_v15, %v4386_v32  ;;  %v3993_v15 = vld [vmem:[#allocation7 + $0x40] sm:$0xff]  }
  0x46   :  { %3350 = vmatprep.subr.bf16.mxu0 %v4358_v22  ;;  %v4477_v50 = vsel %vm132_vm11, 1.0, %v5598_v35  ;;  %v4487_v53 = vsel %vm134_vm12, 1.0, %v5598_v35  ;;  %vm137_vm13 = vcmp.eq.s32.totalorder %v4341_v16, %v4388_v33  ;;  %vm139_vm14 = vcmp.eq.s32.totalorder %v4344_v17, %v4388_v33 }
  0x47   :  { %v4499_v55 = vsel %vm137_vm13, 1.0, %v5598_v35  ;;  %v4505_v56 = vsel %vm139_vm14, 1.0, %v5598_v35  ;;  %vm5582_vm15 = vcmp.eq.s32.totalorder %v4341_v16, %v4386_v32  ;;  %vm5583_vm0 = vcmp.eq.s32.totalorder %v4344_v17, %v4386_v32 }
  0x48   :  { %v4518_v58 = vsel %vm5582_vm15, 1.0, %v5598_v35  ;;  %vm5584_vm1 = vcmp.eq.s32.totalorder %v4347_v18, %v4388_v33  ;;  %v4527_v59 = vsel %vm5583_vm0, 1.0, %v5598_v35  ;;  %vm5586_vm4 = vcmp.eq.s32.totalorder %v4350_v19, %v4388_v33 }
  0x49   :  { %3351 = vmatpush3.bf16.msra.mxu0 %v4369_v26  ;;  %v4535_v60 = vsel %vm5584_vm1, 1.0, %v5598_v35  ;;  %vm5585_vm15 = vcmp.eq.s32.totalorder %v4347_v18, %v4386_v32  ;;  %v4545_v62 = vsel %vm5586_vm4, 1.0, %v5598_v35  ;;  %vm142_vm0 = vcmp.eq.s32.totalorder %v4350_v19, %v4386_v32  ;;  %vm4561_vm1 = vmpackc.low %vm5587_vm3, %vm5588_vm2 }
  0x4a   :  { %3352 = vmatprep.subr.bf16.mxu0 %v4375_v28  ;;  %v4553_v63 = vsel %vm5585_vm15, 1.0, %v5598_v35  ;;  %v4571_v2 = vsel %vm142_vm0, 1.0, %v5598_v35  ;;  %vm145_vm15 = vcmp.eq.s32.totalorder %v4356_v21, %v4388_v33  ;;  %vm5589_vm4 = vcmp.eq.s32.totalorder %v4361_v23, %v4388_v33  ;;  %vm4584_vm3 = vmpackc.low %vm131_vm6, %vm129_vm5 }
  0x4b   :  { %v4594_v6 = vsel %vm145_vm15, 1.0, %v5598_v35  ;;  %v4600_v8 = vsel %vm5589_vm4, 1.0, %v5598_v35  ;;  %vm5590_vm5 = vcmp.eq.s32.totalorder %v4356_v21, %v4386_v32  ;;  %vm146_vm6 = vcmp.eq.s32.totalorder %v4361_v23, %v4386_v32 }
  0x4c   :  { %v4612_v14 = vsel %vm5590_vm5, 1.0, %v5598_v35  ;;  %vm5591_vm2 = vcmp.eq.s32.totalorder %v4364_v24, %v4388_v33  ;;  %v4620_v30 = vsel %vm146_vm6, 1.0, %v5598_v35  ;;  %vm151_vm4 = vcmp.eq.s32.totalorder %v4367_v25, %v4388_v33 }
  0x4d   :  { %3353 = vmatpush3.bf16.msra.mxu0 %v4384_v31  ;;  %5629 = vst [vmem:[#allocation12_spill] sm:$0xff] %v4612_v14  ;;  %5630 = vst [vmem:[#allocation13_spill] sm:$0xff] %v4620_v30  ;;  %v4628_v5 = vsel %vm5591_vm2, 1.0, %v5598_v35  ;;  %vm5592_vm5 = vcmp.eq.s32.totalorder %v4364_v24, %v4386_v32  ;;  %v4641_v54 = vsel %vm151_vm4, 1.0, %v5598_v35  ;;  %vm5593_vm2 = vcmp.eq.s32.totalorder %v4367_v25, %v4386_v32 }
  0x4e   :  { %3354 = vmatprep.subr.bf16.mxu0 %v4390_v34  ;;  %v4649_v48 = vsel %vm5592_vm5, 1.0, %v5598_v35  ;;  %v4660_v61 = vsel %vm5593_vm2, 1.0, %v5598_v35  ;;  %vm5596_vm5 = vcmp.eq.s32.totalorder %v4378_v29, %v4388_v33  ;;  %vm5594_vm2 = vcmp.eq.s32.totalorder %v4372_v27, %v4386_v32 }
  0x4f   :  { %5631 = vst [vmem:[#allocation14_spill] sm:$0xff] %v4649_v48  ;;  %5632 = vst [vmem:[#allocation15_spill] sm:$0xff] %v4660_v61  ;;  %v4684_v9 = vsel %vm5596_vm5, 1.0, %v5598_v35  ;;  %v4696_v11 = vsel %vm5594_vm2, 1.0, %v5598_v35  ;;  %vm5638_vm5 = vcmp.eq.s32.totalorder %v4350_v19, %v4388_v33  ;;  %v4242_v13 = vmov 64  }
  0x50   :  { %5633 = vst [vmem:[#allocation16_spill] sm:$0xff] %v4696_v11  ;;  %vm3239_vm2 = vmpackc.low %vm134_vm12, %vm132_vm11  ;;  %vm5636_vm11 = vcmp.eq.s32.totalorder %v4344_v17, %v4386_v32  ;;  %3975 = vset.pattern.permute.xlu0 %v4242_v13  ;;  %3976 = vset.pattern.permute.xlu1 %v4242_v13 }
  0x51   :  { %3355 = vmatpush3.bf16.msra.mxu0 %v4412_v38 }
  0x52   :  { %3356 = vmatprep.subr.bf16.mxu0 %v4431_v43 }
  0x55   :  { %3357 = vmatpush3.bf16.msra.mxu0 %v4479_v51 }
  0x56   :  { %3663 = vmatprep.subr.bf16.mxu0 %v3993_v15 }
  0x58   :  { %3232 = vmatmul.mubr.msk.bf16.vlgmr.msra.gmra.mrb[0].mxu0 %vm4561_vm1, %v4241_v40  ;;  %vm5597_vm1 = vcmp.eq.s32.totalorder %v4372_v27, %v4388_v33 }
  0x59   :  { %3234 = vmatprep.mubr.msk.bf16.mxu0 %vm4584_vm3, %v4241_v40  ;;  %vm3235_vm3 = vmpackc.low %vm130_vm8, %vm128_vm7  ;;  %v4678_v0 = vsel %vm5597_vm1, 1.0, %v5598_v35  ;;  %vm5595_vm7 = vcmp.eq.s32.totalorder %v4378_v29, %v4386_v32  ;;  %3664 = vmatpush3.bf16.msra.mxu0 %v3993_v15 }
  0x5a   :  { %vm3237_vm8 = vmpackc.low %vm135_vm10, %vm133_vm9  ;;  %v4708_v4 = vsel %vm5595_vm7, 1.0, %v5598_v35  ;;  %vm5635_vm10 = vcmp.eq.s32.totalorder %v4341_v16, %v4386_v32  ;;  %vm5637_vm7 = vcmp.eq.s32.totalorder %v4347_v18, %v4388_v33  ;;  %v3994_v16 = vld [vmem:[#allocation7 + $0x48] sm:$0xff]  }
  0x5b   :  { %5634 = vst [vmem:[#allocation17_spill] sm:$0xff] %v4708_v4  ;;  %vm3241_vm9 = vmpackc.low %vm139_vm14, %vm137_vm13  ;;  %vm5639_vm13 = vcmp.eq.s32.totalorder %v4347_v18, %v4386_v32  ;;  %3665 = vmatprep.subr.bf16.mxu0 %v3994_v16 }
  0x5c   :  { %vm3243_vm12 = vmpackc.low %vm5636_vm11, %vm5635_vm10  ;;  %vm5646_vm10 = vcmp.eq.s32.totalorder %v4378_v29, %v4388_v33 }
  0x5d   :  { %vm3245_vm1 = vmpackc.low %vm5638_vm5, %vm5637_vm7  ;;  %vm5640_vm5 = vcmp.eq.s32.totalorder %v4361_v23, %v4388_v33  ;;  %3666 = vmatpush3.bf16.msra.mxu0 %v3994_v16 }
  0x5e   :  { %vm3247_vm14 = vmpackc.low %vm142_vm0, %vm5639_vm13  ;;  %vm5642_vm0 = vcmp.eq.s32.totalorder %v4364_v24, %v4388_v33 }
  0x5f   :  { %vm3253_vm7 = vmpackc.low %vm151_vm4, %vm5642_vm0  ;;  %vm5647_vm4 = vcmp.eq.s32.totalorder %v4372_v27, %v4386_v32 }
  0x60   :  { %3236 = vmatmul.mubr.msk.bf16.gmra.mrb[4].mxu0 %vm3235_vm3, %v4241_v40 }
  0x61   :  { %3238 = vmatprep.mubr.msk.bf16.mxu0 %vm3237_vm8, %v4241_v40  ;;  %vm5644_vm8 = vcmp.eq.s32.totalorder %v4367_v25, %v4386_v32 }
  0x68   :  { %3240 = vmatmul.mubr.msk.bf16.gmra.mrb[8].mxu0 %vm3239_vm2, %v4241_v40  ;;  %vm3249_vm2 = vmpackc.low %vm5640_vm5, %vm145_vm15  ;;  %vm5643_vm15 = vcmp.eq.s32.totalorder %v4364_v24, %v4386_v32 }
  0x69   :  { %3242 = vmatprep.mubr.msk.bf16.mxu0 %vm3241_vm9, %v4241_v40  ;;  %vm3255_vm9 = vmpackc.low %vm5644_vm8, %vm5643_vm15 }
  0x70   :  { %3244 = vmatmul.mubr.msk.bf16.gmra.mrb[12].mxu0 %vm3243_vm12, %v4241_v40  ;;  %vm5648_vm12 = vcmp.eq.s32.totalorder %v4378_v29, %v4386_v32  ;;  %v3995_v29 = vld [vmem:[#allocation7 + $0x50] sm:$0xff]  }
  0x71   :  { %3246 = vmatprep.mubr.msk.bf16.mxu0 %vm3245_vm1, %v4241_v40  ;;  %vm5641_vm1 = vcmp.eq.s32.totalorder %v4356_v21, %v4386_v32  ;;  %vm3259_vm13 = vmpackc.low %vm5648_vm12, %vm5647_vm4  ;;  %3667 = vmatprep.subr.bf16.mxu0 %v3995_v29 }
  0x72   :  { %vm3251_vm3 = vmpackc.low %vm146_vm6, %vm5641_vm1  ;;  %vm5645_vm6 = vcmp.eq.s32.totalorder %v4372_v27, %v4388_v33  ;;  %3668 = vmatpush3.bf16.msra.mxu0 %v3995_v29 }
  0x73   :  { %vm3257_vm11 = vmpackc.low %vm5646_vm10, %vm5645_vm6 }
  0x78   :  { %3248 = vmatmul.mubr.msk.bf16.gmra.mrb[16].mxu0 %vm3247_vm14, %v4241_v40 }
  0x79   :  { %3250 = vmatprep.mubr.msk.bf16.mxu0 %vm3249_vm2, %v4241_v40 }
  0x80   :  { %3252 = vmatmul.mubr.msk.bf16.gmra.mrb[20].mxu0 %vm3251_vm3, %v4241_v40 }
  0x81   :  { %3254 = vmatprep.mubr.msk.bf16.mxu0 %vm3253_vm7, %v4241_v40 }
  0x88   :  { %3256 = vmatmul.mubr.msk.bf16.gmra.mrb[24].mxu0 %vm3255_vm9, %v4241_v40 }
  0x89   :  { %3258 = vmatprep.mubr.msk.bf16.mxu0 %vm3257_vm11, %v4241_v40  ;;  %vm896_vm11 = vcmp.lt.s32.totalorder %v4367_v25, 108 }
  0x90   :  { %3260 = vmatmul.mubr.msk.bf16.gmra.mrb[28].mxu0 %vm3259_vm13, %v4241_v40 }
 0x12b   :  { %v3358_v17 = vpop.f32.mrb[0].mxu0 }
 0x12c   :  { %v3359_v18 = vpop.f32.mrb[1].mxu0 }
 0x12d   :  { %v4791_v19 = vadd.f32 %v3359_v18, %v3358_v17  ;;  %v3361_v21 = vpop.f32.mrb[2].mxu0  ;;  %v3996_v17 = vld [vmem:[#allocation7 + $0x58] sm:$0xff]  }
 0x12e   :  { %v3362_v23 = vpop.f32.mrb[3].mxu0  ;;  %3669 = vmatprep.subr.bf16.mxu0 %v3996_v17 }
 0x12f   :  { %v4793_v24 = vadd.f32 %v3362_v23, %v3361_v21  ;;  %v429_v27 = vmax.f32 %v4791_v19, 1.0  ;;  %3670 = vmatpush3.bf16.msra.mxu0 %v3996_v17  ;;  %v3997_v23 = vld [vmem:[#allocation7 + $0x60] sm:$0xff]  }
 0x130   :  { %3671 = vmatprep.subr.bf16.mxu0 %v3997_v23 }
 0x131   :  { %447 = vperm.xlu0 %3975, %v429_v27   ;;  %v430_v33 = vmax.f32 %v4793_v24, 1.0 }
 0x133   :  { %v3364_v40 = vpop.f32.mrb[4].mxu0  ;;  %3672 = vmatpush3.bf16.msra.mxu0 %v3997_v23 }
 0x134   :  { %v3365_v13 = vpop.f32.mrb[5].mxu0 }
 0x135   :  { %v4797_v15 = vadd.f32 %v3365_v13, %v3364_v40  ;;  %v3367_v16 = vpop.f32.mrb[6].mxu0  ;;  %452 = vperm.xlu0 %3975, %v430_v33   ;;  %v3998_v13 = vld [vmem:[#allocation7 + $0x68] sm:$0xff]  }
 0x136   :  { %v3368_v18 = vpop.f32.mrb[7].mxu0  ;;  %3673 = vmatprep.subr.bf16.mxu0 %v3998_v13 }
 0x137   :  { %v4799_v10 = vadd.f32 %v3368_v18, %v3367_v16  ;;  %v431_v21 = vmax.f32 %v4797_v15, 1.0  ;;  %3674 = vmatpush3.bf16.msra.mxu0 %v3998_v13 }
 0x139   :  { %457 = vperm.xlu1 %3976, %v431_v21   ;;  %v432_v27 = vmax.f32 %v4799_v10, 1.0  ;;  %v3999_v21 = vld [vmem:[#allocation7 + $0x70] sm:$0xff]  }
 0x13a   :  { %3675 = vmatprep.subr.bf16.mxu0 %v3999_v21 }
 0x13b   :  { %v3370_v35 = vpop.f32.mrb[8].mxu0  ;;  %3676 = vmatpush3.bf16.msra.mxu0 %v3999_v21 }
 0x13c   :  { %v3371_v1 = vpop.f32.mrb[9].mxu0 }
 0x13d   :  { %v4803_v29 = vadd.f32 %v3371_v1, %v3370_v35  ;;  %v3373_v40 = vpop.f32.mrb[10].mxu0  ;;  %462 = vperm.xlu1 %3976, %v432_v27   ;;  %v4000_v27 = vld [vmem:[#allocation7 + $0x78] sm:$0xff]  }
 0x13e   :  { %v3374_v33 = vpop.f32.mrb[11].mxu0  ;;  %3677 = vmatprep.subr.bf16.mxu0 %v4000_v27 }
 0x13f   :  { %v433_v16 = vmax.f32 %v4803_v29, 1.0  ;;  %v4806_v18 = vadd.f32 %v3374_v33, %v3373_v40  ;;  %3678 = vmatpush3.bf16.msra.mxu0 %v4000_v27 }
 0x141   :  { %v434_v17 = vmax.f32 %v4806_v18, 1.0  ;;  %467 = vperm.xlu0 %3975, %v433_v16  }
 0x143   :  { %v3376_v57 = vpop.f32.mrb[12].mxu0  ;;  %472 = vperm.xlu1 %3976, %v434_v17  }
 0x144   :  { %v3377_v52 = vpop.f32.mrb[13].mxu0 }
 0x145   :  { %v4809_v35 = vadd.f32 %v3377_v52, %v3376_v57  ;;  %v3379_v1 = vpop.f32.mrb[14].mxu0 }
 0x146   :  { %v3380_v23 = vpop.f32.mrb[15].mxu0 }
 0x147   :  { %v435_v44 = vmax.f32 %v4809_v35, 1.0  ;;  %v4812_v40 = vadd.f32 %v3380_v23, %v3379_v1 }
 0x149   :  { %v436_v33 = vmax.f32 %v4812_v40, 1.0  ;;  %477 = vperm.xlu0 %3975, %v435_v44  }
 0x14b   :  { %v3382_v13 = vpop.f32.mrb[16].mxu0  ;;  %482 = vperm.xlu1 %3976, %v436_v33  }
 0x14c   :  { %v3383_v16 = vpop.f32.mrb[17].mxu0 }
 0x14d   :  { %v4815_v17 = vadd.f32 %v3383_v16, %v3382_v13  ;;  %v3385_v52 = vpop.f32.mrb[18].mxu0 }
 0x14e   :  { %v3386_v57 = vpop.f32.mrb[19].mxu0 }
 0x14f   :  { %v437_v21 = vmax.f32 %v4815_v17, 1.0  ;;  %v4818_v39 = vadd.f32 %v3386_v57, %v3385_v52 }
 0x151   :  { %v438_v11 = vmax.f32 %v4818_v39, 1.0  ;;  %487 = vperm.xlu0 %3975, %v437_v21  }
 0x153   :  { %v3388_v1 = vpop.f32.mrb[20].mxu0  ;;  %492 = vperm.xlu1 %3976, %v438_v11  }
 0x154   :  { %v3389_v23 = vpop.f32.mrb[21].mxu0 }
 0x155   :  { %v4821_v4 = vadd.f32 %v3389_v23, %v3388_v1  ;;  %v3391_v44 = vpop.f32.mrb[22].mxu0 }
 0x156   :  { %v3392_v27 = vpop.f32.mrb[23].mxu0 }
 0x157   :  { %v439_v33 = vmax.f32 %v4821_v4, 1.0  ;;  %v4824_v13 = vadd.f32 %v3392_v27, %v3391_v44 }
 0x159   :  { %v440_v16 = vmax.f32 %v4824_v13, 1.0  ;;  %497 = vperm.xlu0 %3975, %v439_v33  }
 0x15b   :  { %v3394_v48 = vpop.f32.mrb[24].mxu0  ;;  %502 = vperm.xlu1 %3976, %v440_v16  }
 0x15c   :  { %v3395_v52 = vpop.f32.mrb[25].mxu0 }
 0x15d   :  { %v4827_v57 = vadd.f32 %v3395_v52, %v3394_v48  ;;  %v3397_v21 = vpop.f32.mrb[26].mxu0 }
 0x15e   :  { %v3398_v61 = vpop.f32.mrb[27].mxu0 }
 0x15f   :  { %v441_v11 = vmax.f32 %v4827_v57, 1.0  ;;  %v4830_v1 = vadd.f32 %v3398_v61, %v3397_v21  ;;  %v5649_v61 = vpack.c.bf16 %v4406_v37, %v4403_v36  ;;  %v5650_v21 = vpack.c.bf16 %v4427_v42, %v4421_v41 }
 0x160   :  { %v5654_v36 = vpack.c.bf16 %v4600_v8, %v4594_v6  ;;  %v5655_v37 = vpack.c.bf16 %v4641_v54, %v4628_v5  ;;  %v5656_v41 = vpack.c.bf16 %v4684_v9, %v4678_v0 }
 0x161   :  { %v442_v23 = vmax.f32 %v4830_v1, 1.0  ;;  %507 = vperm.xlu0 %3975, %v441_v11   ;;  %v5653_v11 = vpack.c.bf16 %v4545_v62, %v4535_v60 }
 0x163   :  { %v3400_v14 = vpop.f32.mrb[28].mxu0  ;;  %512 = vperm.xlu1 %3976, %v442_v23  }
 0x164   :  { %v3401_v44 = vpop.f32.mrb[29].mxu0 }
 0x165   :  { %v4833_v27 = vadd.f32 %v3401_v44, %v3400_v14  ;;  %v3403_v33 = vpop.f32.mrb[30].mxu0  ;;  %v5651_v14 = vpack.c.bf16 %v4469_v49, %v4458_v47 }
 0x166   :  { %v3404_v30 = vpop.f32.mrb[31].mxu0 }
 0x167   :  { %v443_v16 = vmax.f32 %v4833_v27, 1.0  ;;  %v4836_v48 = vadd.f32 %v3404_v30, %v3403_v33  ;;  %v5652_v30 = vpack.c.bf16 %v4505_v56, %v4499_v55 }
 0x169   :  { %v444_v52 = vmax.f32 %v4836_v48, 1.0  ;;  %517 = vperm.xlu0 %3975, %v443_v16  }
 0x16b   :  { %522 = vperm.xlu1 %3976, %v444_v52  }
 0x18e   :  { %2130 = vxpose.xlu1.c.b16.start [1/8] %v5649_v61, 128 }
 0x192   :  { %2131 = vxpose.xlu1.c.b16.cont [2/8] %v5650_v21, 128 }
 0x196   :  { %2132 = vxpose.xlu1.c.b16.cont [3/8] %v5651_v14, 128 }
 0x19a   :  { %2133 = vxpose.xlu1.c.b16.cont [4/8] %v5652_v30, 128 }
 0x19e   :  { %2134 = vxpose.xlu1.c.b16.cont [5/8] %v5653_v11, 128 }
 0x1a2   :  { %2135 = vxpose.xlu1.c.b16.cont [6/8] %v5654_v36, 128 }
 0x1a6   :  { %2136 = vxpose.xlu1.c.b16.cont [7/8] %v5655_v37, 128 }
 0x1aa   :  { %2137 = vxpose.xlu1.c.b16.end [8/8] %v5656_v41, 128 }
 0x1b0   :  { %v448_v42 = vpop.permute.xlu0 %447 }
 0x1b1   :  { %4070 = vrcp.f32 %v448_v42 }
 0x1b4   :  { %v453_v47 = vpop.permute.xlu0 %452 }
 0x1b5   :  { %4072 = vrcp.f32 %v453_v47 }
 0x1b8   :  { %v458_v49 = vpop.permute.xlu1 %457 }
 0x1b9   :  { %4074 = vrcp.f32 %v458_v49 }
 0x1bb   :  { %v4071_v56 = vpop.eup %4070 }
 0x1bc   :  { %v463_v55 = vpop.permute.xlu1 %462  ;;  %v526_v6 = vmul.f32 %v4071_v56, %v4791_v19 }
 0x1bd   :  { %4076 = vrcp.f32 %v463_v55 }
 0x1bf   :  { %v4073_v60 = vpop.eup %4072 }
 0x1c0   :  { %v468_v62 = vpop.permute.xlu0 %467  ;;  %v528_v54 = vmul.f32 %v4073_v60, %v4793_v24 }
 0x1c1   :  { %4078 = vrcp.f32 %v468_v62 }
 0x1c2   :  { %v473_v5 = vpop.permute.xlu1 %472  ;;  %v931_v8 = vpack.c.bf16 %v528_v54, %v526_v6 }
 0x1c3   :  { %4080 = vrcp.f32 %v473_v5  ;;  %v4075_v9 = vpop.eup %4074 }
 0x1c4   :  { %3679 = vmatprep.mubr.bf16.mxu0 %v931_v8  ;;  %v530_v23 = vmul.f32 %v4075_v9, %v4797_v15 }
 0x1c7   :  { %v4077_v0 = vpop.eup %4076 }
 0x1c8   :  { %v532_v44 = vmul.f32 %v4077_v0, %v4799_v10  ;;  %v478_v33 = vpop.permute.xlu0 %477 }
 0x1c9   :  { %4082 = vrcp.f32 %v478_v33 }
 0x1ca   :  { %v483_v16 = vpop.permute.xlu1 %482  ;;  %v932_v52 = vpack.c.bf16 %v532_v44, %v530_v23 }
 0x1cb   :  { %v4079_v61 = vpop.eup %4078  ;;  %4084 = vrcp.f32 %v483_v16 }
 0x1cc   :  { %3680 = vmatmul.mubr.bf16.vlgmr.msra.gmra.mrb[32].mxu0 %v932_v52  ;;  %v534_v24 = vmul.f32 %v4079_v61, %v4803_v29  ;;  %v4001_v61 = vld [vmem:[#allocation7] sm:$0xff]  }
 0x1cd   :  { %v4081_v19 = vpop.eup %4080  ;;  %3615 = vmatprep.subr.bf16.mxu1 %v4001_v61 }
 0x1ce   :  { %v536_v21 = vmul.f32 %v4081_v19, %v4806_v18  ;;  %3616 = vmatpush3.bf16.msra.mxu1 %v4001_v61  ;;  %v4002_v19 = vld [vmem:[#allocation7 + $0x8] sm:$0xff]  }
 0x1cf   :  { %3617 = vmatprep.subr.bf16.mxu1 %v4002_v19 }
 0x1d0   :  { %v488_v14 = vpop.permute.xlu0 %487  ;;  %v933_v30 = vpack.c.bf16 %v536_v21, %v534_v24  ;;  %v4003_v24 = vld [vmem:[#allocation7 + $0x10] sm:$0xff]   ;;  %v4008_v21 = vld [vmem:[#allocation7 + $0x38] sm:$0xff]  }
 0x1d1   :  { %4086 = vrcp.f32 %v488_v14  ;;  %v4134_v14 = vld [vmem:[#allocation2 + $0x8] sm:$0xff]  }
 0x1d2   :  { %v493_v11 = vpop.permute.xlu1 %492  ;;  %3683 = vmatprep.mubr.bf16.mxu0 %v933_v30  ;;  %3618 = vmatpush3.bf16.msra.mxu1 %v4002_v19  ;;  %v4135_v30 = vld [vmem:[#allocation2 + $0x40] sm:$0xff]  }
 0x1d3   :  { %v4083_v15 = vpop.eup %4082  ;;  %4088 = vrcp.f32 %v493_v11  ;;  %3619 = vmatprep.subr.bf16.mxu1 %v4003_v24  ;;  %v4136_v11 = vld [vmem:[#allocation2 + $0x48] sm:$0xff]  }
 0x1d4   :  { %v538_v36 = vmul.f32 %v4083_v15, %v4809_v35  ;;  %v4137_v15 = vld [vmem:[#allocation2 + $0x50] sm:$0xff]  }
 0x1d5   :  { %v4085_v10 = vpop.eup %4084 }
 0x1d6   :  { %v540_v37 = vmul.f32 %v4085_v10, %v4812_v40  ;;  %3620 = vmatpush3.bf16.msra.mxu1 %v4003_v24  ;;  %v4009_v10 = vld [vmem:[#allocation7 + $0x80] sm:$0xff]  }
 0x1d8   :  { %v498_v41 = vpop.permute.xlu0 %497  ;;  %v934_v42 = vpack.c.bf16 %v540_v37, %v538_v36  ;;  %v4138_v36 = vld [vmem:[#allocation2 + $0x58] sm:$0xff]  }
 0x1d9   :  { %4090 = vrcp.f32 %v498_v41 }
 0x1da   :  { %v503_v47 = vpop.permute.xlu1 %502  ;;  %3684 = vmatmul.mubr.bf16.gmra.mrb[36].mxu0 %v934_v42  ;;  %v4012_v42 = vld [vmem:[#allocation7 + $0x98] sm:$0xff]  }
 0x1db   :  { %v4087_v29 = vpop.eup %4086  ;;  %4092 = vrcp.f32 %v503_v47 }
 0x1dc   :  { %v542_v49 = vmul.f32 %v4087_v29, %v4815_v17 }
 0x1dd   :  { %v4089_v18 = vpop.eup %4088 }
 0x1de   :  { %v544_v55 = vmul.f32 %v4089_v18, %v4818_v39 }
 0x1e0   :  { %v508_v56 = vpop.permute.xlu0 %507  ;;  %v935_v60 = vpack.c.bf16 %v544_v55, %v542_v49 }
 0x1e1   :  { %4094 = vrcp.f32 %v508_v56  ;;  %v4013_v56 = vld [vmem:[#allocation7 + $0xa0] sm:$0xff]  }
 0x1e2   :  { %v513_v62 = vpop.permute.xlu1 %512  ;;  %3687 = vmatprep.mubr.bf16.mxu0 %v935_v60 }
 0x1e3   :  { %v4091_v35 = vpop.eup %4090  ;;  %4096 = vrcp.f32 %v513_v62 }
 0x1e4   :  { %v546_v6 = vmul.f32 %v4091_v35, %v4821_v4 }
 0x1e5   :  { %v4093_v40 = vpop.eup %4092 }
 0x1e6   :  { %v548_v54 = vmul.f32 %v4093_v40, %v4824_v13 }
 0x1e8   :  { %v518_v5 = vpop.permute.xlu0 %517  ;;  %v936_v8 = vpack.c.bf16 %v548_v54, %v546_v6 }
 0x1e9   :  { %4098 = vrcp.f32 %v518_v5 }
 0x1ea   :  { %v523_v9 = vpop.permute.xlu1 %522  ;;  %3688 = vmatmul.mubr.bf16.gmra.mrb[40].mxu0 %v936_v8 }
 0x1eb   :  { %v4095_v17 = vpop.eup %4094  ;;  %4100 = vrcp.f32 %v523_v9  ;;  %v4015_v9 = vld [vmem:[#allocation7 + $0xb0] sm:$0xff]  }
 0x1ec   :  { %v550_v0 = vmul.f32 %v4095_v17, %v4827_v57  ;;  %v4004_v57 = vld [vmem:[#allocation7 + $0x18] sm:$0xff]  }
 0x1ed   :  { %v4097_v39 = vpop.eup %4096  ;;  %3621 = vmatprep.subr.bf16.mxu1 %v4004_v57  ;;  %v4016_v17 = vld [vmem:[#allocation7 + $0xb8] sm:$0xff]  }
 0x1ee   :  { %v552_v23 = vmul.f32 %v4097_v39, %v4830_v1  ;;  %3622 = vmatpush3.bf16.msra.mxu1 %v4004_v57  ;;  %v4005_v1 = vld [vmem:[#allocation7 + $0x20] sm:$0xff]  }
 0x1ef   :  { %3623 = vmatprep.subr.bf16.mxu1 %v4005_v1 }
 0x1f0   :  { %v937_v44 = vpack.c.bf16 %v552_v23, %v550_v0 }
 0x1f2   :  { %3691 = vmatprep.mubr.bf16.mxu0 %v937_v44  ;;  %3624 = vmatpush3.bf16.msra.mxu1 %v4005_v1 }
 0x1f3   :  { %v4099_v33 = vpop.eup %4098 }
 0x1f4   :  { %v554_v4 = vmul.f32 %v4099_v33, %v4833_v27  ;;  %v4006_v27 = vld [vmem:[#allocation7 + $0x28] sm:$0xff]  }
 0x1f5   :  { %v4101_v16 = vpop.eup %4100  ;;  %3625 = vmatprep.subr.bf16.mxu1 %v4006_v27 }
 0x1f6   :  { %v556_v13 = vmul.f32 %v4101_v16, %v4836_v48  ;;  %3626 = vmatpush3.bf16.msra.mxu1 %v4006_v27  ;;  %v4007_v48 = vld [vmem:[#allocation7 + $0x30] sm:$0xff]  }
 0x1f7   :  { %3627 = vmatprep.subr.bf16.mxu1 %v4007_v48 }
 0x1f8   :  { %v938_v52 = vpack.c.bf16 %v556_v13, %v554_v4 }
 0x1fa   :  { %3692 = vmatmul.mubr.bf16.gmra.mrb[44].mxu0 %v938_v52  ;;  %3628 = vmatpush3.bf16.msra.mxu1 %v4007_v48 }
 0x1fb   :  { %3629 = vmatprep.subr.bf16.mxu1 %v4008_v21 }
 0x1fe   :  { %3630 = vmatpush3.bf16.msra.mxu1 %v4008_v21 }
 0x1ff   :  { %3695 = vmatprep.subr.bf16.mxu1 %v4009_v10 }
 0x201   :  { %3632 = vmatmul.mubr.bf16.vlgmr.msra.gmra.mrb[0].mxu1 %v4134_v14 }
 0x202   :  { %3635 = vmatprep.mubr.bf16.mxu1 %v4332_v12  ;;  %3696 = vmatpush3.bf16.msra.mxu1 %v4009_v10  ;;  %v4010_v12 = vld [vmem:[#allocation7 + $0x88] sm:$0xff]  }
 0x203   :  { %3697 = vmatprep.subr.bf16.mxu1 %v4010_v12 }
 0x206   :  { %3698 = vmatpush3.bf16.msra.mxu1 %v4010_v12 }
 0x209   :  { %3636 = vmatmul.mubr.bf16.gmra.mrb[4].mxu1 %v4353_v20  ;;  %v4011_v20 = vld [vmem:[#allocation7 + $0x90] sm:$0xff]  }
 0x20a   :  { %3639 = vmatprep.mubr.bf16.mxu1 %v4369_v26  ;;  %v4889_v26 = vld [vmem:[%s5579_s4 + $0x1] ss:$0 sm:$0xff]  ;;  %3699 = vmatprep.subr.bf16.mxu1 %v4011_v20 }
 0x20b   :  { %3700 = vmatpush3.bf16.msra.mxu1 %v4011_v20 }
 0x20c   :  { %3701 = vmatprep.subr.bf16.mxu1 %v4012_v42 }
 0x20f   :  { %3702 = vmatpush3.bf16.msra.mxu1 %v4012_v42 }
 0x210   :  { %3703 = vmatprep.subr.bf16.mxu1 %v4013_v56 }
 0x211   :  { %3640 = vmatmul.mubr.bf16.gmra.mrb[8].mxu1 %v4384_v31 }
 0x212   :  { %3643 = vmatprep.mubr.bf16.mxu1 %v4412_v38 }
 0x213   :  { %3704 = vmatpush3.bf16.msra.mxu1 %v4013_v56 }
 0x219   :  { %3644 = vmatmul.mubr.bf16.gmra.mrb[12].mxu1 %v4479_v51 }
 0x21a   :  { %3647 = vmatprep.mubr.bf16.mxu1 %v4135_v30 }
 0x221   :  { %3648 = vmatmul.mubr.bf16.gmra.mrb[16].mxu1 %v4136_v11 }
 0x222   :  { %3651 = vmatprep.mubr.bf16.mxu1 %v4137_v15 }
 0x229   :  { %3652 = vmatmul.mubr.bf16.gmra.mrb[20].mxu1 %v4138_v36 }
 0x22a   :  { %3655 = vmatprep.mubr.bf16.mxu1 %v4358_v22 }
 0x231   :  { %3656 = vmatmul.mubr.bf16.gmra.mrb[24].mxu1 %v4375_v28 }
 0x232   :  { %3659 = vmatprep.mubr.bf16.mxu1 %v4390_v34  ;;  %v4014_v34 = vld [vmem:[#allocation7 + $0xa8] sm:$0xff]  }
 0x233   :  { %3705 = vmatprep.subr.bf16.mxu1 %v4014_v34 }
 0x234   :  { %3706 = vmatpush3.bf16.msra.mxu1 %v4014_v34 }
 0x235   :  { %3707 = vmatprep.subr.bf16.mxu1 %v4015_v9 }
 0x238   :  { %3708 = vmatpush3.bf16.msra.mxu1 %v4015_v9 }
 0x239   :  { %3660 = vmatmul.mubr.bf16.gmra.mrb[28].mxu1 %v4431_v43  ;;  %3709 = vmatprep.subr.bf16.mxu1 %v4016_v17 }
 0x23c   :  { %3710 = vmatpush3.bf16.msra.mxu1 %v4016_v17 }
 0x29f   :  { %v3681_v31 = vpop.f32.mrb[32].mxu0 }
 0x2a0   :  { %v1043_v38 = vpop.f32.mrb[33].mxu0  ;;  %v1052_v51 = vadd.f32 %v3681_v31, %v4889_v26 }
 0x2a1   :  { %v1044_v37 = vadd.f32 %v4889_v26, %v1043_v38  ;;  %v3682_v41 = vpop.f32.mrb[34].mxu0 }
 0x2a2   :  { %v1046_v47 = vpop.f32.mrb[35].mxu0  ;;  %v1055_v29 = vadd.f32 %v3682_v41, %v4889_v26  ;;  %v1124_v49 = vmul.f32 0.1, %v1052_v51  ;;  %vm1108_vm2 = vcmp.ge.f32.partialorder %v1052_v51, 0.0 }
 0x2a3   :  { %v1122_v22 = vmul.f32 0.1, %v1044_v37  ;;  %v1047_v18 = vadd.f32 %v4889_v26, %v1046_v47  ;;  %vm1106_vm14 = vcmp.ge.f32.partialorder %v1044_v37, 0.0 }
 0x2a4   :  { %v1125_v62 = vmul.f32 0.1, %v1055_v29  ;;  %vm1109_vm1 = vcmp.ge.f32.partialorder %v1055_v29, 0.0  ;;  %v4903_v40 = vsel %vm1108_vm2, %v1052_v51, %v1124_v49 }
 0x2a5   :  { %vm1107_vm5 = vcmp.ge.f32.partialorder %v1047_v18, 0.0  ;;  %v1123_v55 = vmul.f32 0.1, %v1047_v18  ;;  %v4897_v60 = vsel %vm1106_vm14, %v1044_v37, %v1122_v22 }
 0x2a6   :  { %v4907_v54 = vsel %vm1109_vm1, %v1055_v29, %v1125_v62 }
 0x2a7   :  { %v4899_v35 = vsel %vm1107_vm5, %v1047_v18, %v1123_v55 }
 0x2a8   :  { %v1170_v28 = vadd.f32 %v4899_v35, %v4897_v60 }
 0x2aa   :  { %v1171_v6 = vadd.f32 %v1170_v28, %v4903_v40 }
 0x2ac   :  { %v1172_v5 = vadd.f32 %v1171_v6, %v4907_v54 }
 0x2ad   :  { %v3685_v8 = vpop.f32.mrb[36].mxu0 }
 0x2ae   :  { %v1059_v39 = vpop.f32.mrb[37].mxu0  ;;  %v1068_v0 = vadd.f32 %v3685_v8, %v4889_v26 }
 0x2af   :  { %v1060_v23 = vadd.f32 %v4889_v26, %v1059_v39  ;;  %v3686_v44 = vpop.f32.mrb[38].mxu0 }
 0x2b0   :  { %v1062_v33 = vpop.f32.mrb[39].mxu0  ;;  %v1071_v16 = vadd.f32 %v3686_v44, %v4889_v26  ;;  %v1128_v13 = vmul.f32 0.1, %v1068_v0  ;;  %vm1112_vm7 = vcmp.ge.f32.partialorder %v1068_v0, 0.0 }
 0x2b1   :  { %vm1110_vm3 = vcmp.ge.f32.partialorder %v1060_v23, 0.0  ;;  %v1126_v43 = vmul.f32 0.1, %v1060_v23  ;;  %v1063_v4 = vadd.f32 %v4889_v26, %v1062_v33 }
 0x2b2   :  { %v1129_v24 = vmul.f32 0.1, %v1071_v16  ;;  %vm1113_vm15 = vcmp.ge.f32.partialorder %v1071_v16, 0.0  ;;  %v4920_v27 = vsel %vm1112_vm7, %v1068_v0, %v1128_v13 }
 0x2b3   :  { %v4914_v52 = vsel %vm1110_vm3, %v1060_v23, %v1126_v43  ;;  %vm1111_vm0 = vcmp.ge.f32.partialorder %v1063_v4, 0.0  ;;  %v1127_v61 = vmul.f32 0.1, %v1063_v4  ;;  %v5657_v23 = vmov 0.0  }
 0x2b4   :  { %v1173_v19 = vadd.f32 %v1172_v5, %v4914_v52  ;;  %v4923_v21 = vsel %vm1113_vm15, %v1071_v16, %v1129_v24  ;;  %v4936_v44 = vsel %vm896_vm11, 1.0, %v5657_v23 }
 0x2b5   :  { %v4917_v57 = vsel %vm1111_vm0, %v1063_v4, %v1127_v61 }
 0x2b6   :  { %v1174_v1 = vadd.f32 %v1173_v19, %v4917_v57 }
 0x2b8   :  { %v1175_v48 = vadd.f32 %v1174_v1, %v4920_v27 }
 0x2ba   :  { %v1176_v14 = vadd.f32 %v1175_v48, %v4923_v21 }
 0x2bd   :  { %v3689_v30 = vpop.f32.mrb[40].mxu0 }
 0x2be   :  { %v1075_v11 = vpop.f32.mrb[41].mxu0  ;;  %v1084_v15 = vadd.f32 %v3689_v30, %v4889_v26 }
 0x2bf   :  { %v1076_v10 = vadd.f32 %v4889_v26, %v1075_v11  ;;  %v3690_v12 = vpop.f32.mrb[42].mxu0 }
 0x2c0   :  { %v1078_v36 = vpop.f32.mrb[43].mxu0  ;;  %v1087_v31 = vadd.f32 %v3690_v12, %v4889_v26  ;;  %v1132_v51 = vmul.f32 0.1, %v1084_v15  ;;  %vm1116_vm6 = vcmp.ge.f32.partialorder %v1084_v15, 0.0 }
 0x2c1   :  { %vm1114_vm8 = vcmp.ge.f32.partialorder %v1076_v10, 0.0  ;;  %v1130_v20 = vmul.f32 0.1, %v1076_v10  ;;  %v1079_v38 = vadd.f32 %v4889_v26, %v1078_v36 }
 0x2c2   :  { %v1133_v47 = vmul.f32 0.1, %v1087_v31  ;;  %vm1117_vm10 = vcmp.ge.f32.partialorder %v1087_v31, 0.0  ;;  %v1148_v18 = vsel %vm1116_vm6, %v1084_v15, %v1132_v51 }
 0x2c3   :  { %v1146_v37 = vsel %vm1114_vm8, %v1076_v10, %v1130_v20  ;;  %vm1115_vm9 = vcmp.ge.f32.partialorder %v1079_v38, 0.0  ;;  %v1131_v41 = vmul.f32 0.1, %v1079_v38 }
 0x2c4   :  { %v1177_v42 = vadd.f32 %v1176_v14, %v1146_v37  ;;  %v1149_v55 = vsel %vm1117_vm10, %v1087_v31, %v1133_v47 }
 0x2c5   :  { %v1147_v22 = vsel %vm1115_vm9, %v1079_v38, %v1131_v41 }
 0x2c6   :  { %v1178_v29 = vadd.f32 %v1177_v42, %v1147_v22 }
 0x2c8   :  { %v1179_v49 = vadd.f32 %v1178_v29, %v1148_v18 }
 0x2ca   :  { %v1180_v56 = vadd.f32 %v1179_v49, %v1149_v55 }
 0x2cd   :  { %v3693_v62 = vpop.f32.mrb[44].mxu0 }
 0x2ce   :  { %v1100_v28 = vadd.f32 %v3693_v62, %v4889_v26  ;;  %v1091_v34 = vpop.f32.mrb[45].mxu0 }
 0x2cf   :  { %v1092_v6 = vadd.f32 %v4889_v26, %v1091_v34  ;;  %v3694_v5 = vpop.f32.mrb[46].mxu0 }
 0x2d0   :  { %v1103_v8 = vadd.f32 %v3694_v5, %v4889_v26  ;;  %v1094_v9 = vpop.f32.mrb[47].mxu0  ;;  %v1136_v17 = vmul.f32 0.1, %v1100_v28  ;;  %vm1120_vm12 = vcmp.ge.f32.partialorder %v1100_v28, 0.0 }
 0x2d1   :  { %vm1118_vm4 = vcmp.ge.f32.partialorder %v1092_v6, 0.0  ;;  %v1134_v39 = vmul.f32 0.1, %v1092_v6  ;;  %v1095_v0 = vadd.f32 %v4889_v26, %v1094_v9 }
 0x2d2   :  { %v1137_v43 = vmul.f32 0.1, %v1103_v8  ;;  %vm1121_vm14 = vcmp.ge.f32.partialorder %v1103_v8, 0.0  ;;  %v1152_v13 = vsel %vm1120_vm12, %v1100_v28, %v1136_v17 }
 0x2d3   :  { %v1150_v33 = vsel %vm1118_vm4, %v1092_v6, %v1134_v39  ;;  %vm1119_vm13 = vcmp.ge.f32.partialorder %v1095_v0, 0.0  ;;  %v1135_v16 = vmul.f32 0.1, %v1095_v0  ;;  %v1168_v24 = vmul.f32 0.0, %v1152_v13 }
 0x2d4   :  { %v1181_v4 = vadd.f32 %v1180_v56, %v1150_v33  ;;  %v1153_v19 = vsel %vm1121_vm14, %v1103_v8, %v1137_v43 }
 0x2d5   :  { %v1151_v25 = vsel %vm1119_vm13, %v1095_v0, %v1135_v16  ;;  %v1169_v48 = vmul.f32 0.0, %v1153_v19 }
 0x2d6   :  { %v1167_v61 = vmul.f32 %v4936_v44, %v1151_v25 }
 0x2d8   :  { %v1182_v1 = vadd.f32 %v1181_v4, %v1167_v61 }
 0x2da   :  { %v1183_v14 = vadd.f32 %v1182_v1, %v1168_v24 }
 0x2dc   :  { %v1184_v26 = vadd.f32 %v1183_v14, %v1169_v48 }
 0x2de   :  { %v1185_v30 = vrot.slane %v1184_v26, 4 }
 0x2e0   :  { %v1186_v11 = vadd.f32 %v1185_v30, %v1184_v26 }
 0x2e2   :  { %v1187_v15 = vrot.slane %v1186_v11, 2 }
 0x2e4   :  { %v1188_v10 = vadd.f32 %v1187_v15, %v1186_v11 }
 0x2e6   :  { %v1189_v12 = vrot.slane %v1188_v10, 1 }
 0x2e8   :  { %v1190_v36 = vadd.f32 %v1189_v12, %v1188_v10 }
 0x2ea   :  { %v1191_v20 = vmul.f32 0.009259259, %v1190_v36 }
 0x2ec   :  { %v1192_v31 = vsub.f32 %v4897_v60, %v1191_v20  ;;  %v1193_v38 = vsub.f32 %v4899_v35, %v1191_v20  ;;  %v1194_v51 = vsub.f32 %v4903_v40, %v1191_v20  ;;  %v4943_v41 = vsub.f32 %v4907_v54, %v1191_v20 }
 0x2ed   :  { %v4946_v42 = vsub.f32 %v4914_v52, %v1191_v20  ;;  %v4949_v47 = vsub.f32 %v4917_v57, %v1191_v20  ;;  %v4952_v29 = vsub.f32 %v4920_v27, %v1191_v20  ;;  %v4955_v49 = vsub.f32 %v4923_v21, %v1191_v20 }
 0x2ee   :  { %v4957_v60 = vsub.f32 %v1146_v37, %v1191_v20  ;;  %v4959_v35 = vsub.f32 %v1147_v22, %v1191_v20  ;;  %v4961_v40 = vsub.f32 %v1148_v18, %v1191_v20  ;;  %v4963_v54 = vsub.f32 %v1149_v55, %v1191_v20 }
 0x2ef   :  { %v4965_v56 = vsub.f32 %v1150_v33, %v1191_v20  ;;  %v1205_v52 = vsub.f32 %v1151_v25, %v1191_v20  ;;  %v4967_v62 = vsub.f32 %v1152_v13, %v1191_v20  ;;  %v4969_v57 = vsub.f32 %v1153_v19, %v1191_v20 }
 0x2f0   :  { %v1224_v27 = vmul.f32 %v1192_v31, %v1192_v31  ;;  %v1225_v28 = vmul.f32 %v1193_v38, %v1193_v38  ;;  %v1226_v34 = vmul.f32 %v1194_v51, %v1194_v51  ;;  %v1227_v37 = vmul.f32 %v4943_v41, %v4943_v41 }
 0x2f1   :  { %v1228_v18 = vmul.f32 %v4946_v42, %v4946_v42  ;;  %v1229_v6 = vmul.f32 %v4949_v47, %v4949_v47  ;;  %v1230_v8 = vmul.f32 %v4952_v29, %v4952_v29  ;;  %v1231_v17 = vmul.f32 %v4955_v49, %v4955_v49 }
 0x2f2   :  { %v1240_v21 = vadd.f32 %v1225_v28, %v1224_v27  ;;  %v1232_v0 = vmul.f32 %v4957_v60, %v4957_v60  ;;  %v1233_v43 = vmul.f32 %v4959_v35, %v4959_v35  ;;  %v1234_v4 = vmul.f32 %v4961_v40, %v4961_v40 }
 0x2f3   :  { %v1221_v25 = vmul.f32 %v4936_v44, %v1205_v52  ;;  %v1235_v61 = vmul.f32 %v4963_v54, %v4963_v54  ;;  %v1222_v24 = vmul.f32 0.0, %v4967_v62  ;;  %v1236_v1 = vmul.f32 %v4965_v56, %v4965_v56 }
 0x2f4   :  { %v1241_v22 = vadd.f32 %v1240_v21, %v1226_v34  ;;  %v1223_v14 = vmul.f32 0.0, %v4969_v57 }
 0x2f5   :  { %v1237_v26 = vmul.f32 %v1221_v25, %v1221_v25  ;;  %v1238_v11 = vmul.f32 %v1222_v24, %v1222_v24 }
 0x2f6   :  { %v1242_v55 = vadd.f32 %v1241_v22, %v1227_v37  ;;  %v1239_v10 = vmul.f32 %v1223_v14, %v1223_v14 }
 0x2f8   :  { %v1243_v5 = vadd.f32 %v1242_v55, %v1228_v18 }
 0x2fa   :  { %v1244_v9 = vadd.f32 %v1243_v5, %v1229_v6  ;;  %v3280_v6 = vld [vmem:[%s5580_s5] ss:$0 sm:$0xff] }
 0x2fc   :  { %v1245_v39 = vadd.f32 %v1244_v9, %v1230_v8 }
 0x2fe   :  { %v1246_v33 = vadd.f32 %v1245_v39, %v1231_v17  ;;  %v3281_v39 = vld [vmem:[%s5580_s5 + $0x1] ss:$0 sm:$0xff] }
 0x300   :  { %v1247_v16 = vadd.f32 %v1246_v33, %v1232_v0 }
 0x302   :  { %v1248_v13 = vadd.f32 %v1247_v16, %v1233_v43 }
 0x304   :  { %v1249_v19 = vadd.f32 %v1248_v13, %v1234_v4 }
 0x306   :  { %v1250_v48 = vadd.f32 %v1249_v19, %v1235_v61 }
 0x308   :  { %v1251_v30 = vadd.f32 %v1250_v48, %v1236_v1 }
 0x30a   :  { %v1252_v15 = vadd.f32 %v1251_v30, %v1237_v26 }
 0x30c   :  { %v1253_v12 = vadd.f32 %v1252_v15, %v1238_v11 }
 0x30e   :  { %v1254_v36 = vadd.f32 %v1253_v12, %v1239_v10 }
 0x310   :  { %v1255_v20 = vrot.slane %v1254_v36, 4 }
 0x312   :  { %v1256_v27 = vadd.f32 %v1255_v20, %v1254_v36 }
 0x314   :  { %v1257_v28 = vrot.slane %v1256_v27, 2 }
 0x316   :  { %v1258_v34 = vadd.f32 %v1257_v28, %v1256_v27 }
 0x318   :  { %v1259_v21 = vrot.slane %v1258_v34, 1 }
 0x31a   :  { %v1260_v37 = vadd.f32 %v1259_v21, %v1258_v34 }
 0x31c   :  { %v1261_v22 = vmul.f32 0.009259259, %v1260_v37 }
 0x31e   :  { %v1264_v18 = vadd.f32 1e-05, %v1261_v22 }
 0x320   :  { %4102 = vrsqrt.f32 %v1264_v18 }
 0x32a   :  { %v4103_v55 = vpop.eup %4102 }
 0x32b   :  { %v1279_v5 = vmul.f32 %v4103_v55, %v1205_v52  ;;  %v1266_v8 = vmul.f32 %v4103_v55, %v1192_v31  ;;  %v1267_v9 = vmul.f32 %v4103_v55, %v1193_v38  ;;  %v1268_v17 = vmul.f32 %v4103_v55, %v1194_v51 }
 0x32c   :  { %v1269_v0 = vmul.f32 %v4103_v55, %v4943_v41  ;;  %v1270_v33 = vmul.f32 %v4103_v55, %v4946_v42  ;;  %v1271_v43 = vmul.f32 %v4103_v55, %v4949_v47  ;;  %v1272_v16 = vmul.f32 %v4103_v55, %v4952_v29 }
 0x32d   :  { %v1286_v4 = vmul.f32 %v3280_v6, %v1266_v8  ;;  %v1287_v13 = vmul.f32 %v3280_v6, %v1267_v9  ;;  %v1288_v25 = vmul.f32 %v3280_v6, %v1268_v17  ;;  %v1273_v52 = vmul.f32 %v4103_v55, %v4955_v49 }
 0x32e   :  { %v1289_v31 = vmul.f32 %v3280_v6, %v1269_v0  ;;  %v1290_v38 = vmul.f32 %v3280_v6, %v1270_v33  ;;  %v1291_v51 = vmul.f32 %v3280_v6, %v1271_v43  ;;  %v1292_v61 = vmul.f32 %v3280_v6, %v1272_v16 }
 0x32f   :  { %v1306_v19 = vadd.f32 %v3281_v39, %v1286_v4  ;;  %v1307_v24 = vadd.f32 %v3281_v39, %v1287_v13  ;;  %v1308_v1 = vadd.f32 %v3281_v39, %v1288_v25  ;;  %v1293_v48 = vmul.f32 %v3280_v6, %v1273_v52 }
 0x330   :  { %v1309_v41 = vadd.f32 %v3281_v39, %v1289_v31  ;;  %v1310_v14 = vadd.f32 %v3281_v39, %v1290_v38  ;;  %v1311_v42 = vadd.f32 %v3281_v39, %v1291_v51  ;;  %v1312_v26 = vadd.f32 %v3281_v39, %v1292_v61 }
 0x331   :  { %v1322_v47 = vpack.c.bf16 %v1307_v24, %v1306_v19  ;;  %v1313_v30 = vadd.f32 %v3281_v39, %v1293_v48  ;;  %v1274_v29 = vmul.f32 %v4103_v55, %v4957_v60  ;;  %v1275_v11 = vmul.f32 %v4103_v55, %v4959_v35 }
 0x332   :  { %v1323_v15 = vpack.c.bf16 %v1309_v41, %v1308_v1  ;;  %v1324_v49 = vpack.c.bf16 %v1311_v42, %v1310_v14  ;;  %v1276_v10 = vmul.f32 %v4103_v55, %v4961_v40  ;;  %v1277_v12 = vmul.f32 %v4103_v55, %v4963_v54 }
 0x333   :  { %3711 = vmatprep.mubr.bf16.mxu1 %v1322_v47  ;;  %v1325_v36 = vpack.c.bf16 %v1313_v30, %v1312_v26  ;;  %v1294_v20 = vmul.f32 %v3280_v6, %v1274_v29  ;;  %v1295_v27 = vmul.f32 %v3280_v6, %v1275_v11  ;;  %v1278_v28 = vmul.f32 %v4103_v55, %v4965_v56 }
 0x334   :  { %3712 = vmatmul.mubr.bf16.vlgmr.msra.gmra.mrb[32].mxu1 %v1323_v15  ;;  %v1296_v34 = vmul.f32 %v3280_v6, %v1276_v10  ;;  %v1297_v21 = vmul.f32 %v3280_v6, %v1277_v12  ;;  %v1299_v37 = vmul.f32 %v3280_v6, %v1279_v5  ;;  %v1280_v60 = vmul.f32 %v4103_v55, %v4967_v62  ;;  %v5015_v62 = vld [vmem:[%s5579_s4] ss:$0 sm:$0xff] }
 0x335   :  { %3715 = vmatprep.mubr.bf16.mxu1 %v1324_v49  ;;  %v1314_v35 = vadd.f32 %v3281_v39, %v1294_v20  ;;  %v1315_v22 = vadd.f32 %v3281_v39, %v1295_v27  ;;  %v1298_v18 = vmul.f32 %v3280_v6, %v1278_v28  ;;  %v1281_v40 = vmul.f32 %v4103_v55, %v4969_v57  ;;  %v3633_v57 = vpop.f32.mrb[0].mxu1 }
 0x336   :  { %v1316_v8 = vadd.f32 %v3281_v39, %v1296_v34  ;;  %v1317_v54 = vadd.f32 %v3281_v39, %v1297_v21  ;;  %v1319_v9 = vadd.f32 %v3281_v39, %v1299_v37  ;;  %v1300_v17 = vmul.f32 %v3280_v6, %v1280_v60  ;;  %v660_v25 = vpop.f32.mrb[1].mxu1 }
 0x337   :  { %v1326_v0 = vpack.c.bf16 %v1315_v22, %v1314_v35  ;;  %v1318_v33 = vadd.f32 %v3281_v39, %v1298_v18  ;;  %v1301_v43 = vmul.f32 %v3280_v6, %v1281_v40  ;;  %v669_v55 = vadd.f32 %v3633_v57, %v5015_v62  ;;  %v3634_v52 = vpop.f32.mrb[2].mxu1 }
 0x338   :  { %v1327_v56 = vpack.c.bf16 %v1317_v54, %v1316_v8  ;;  %v1320_v16 = vadd.f32 %v3281_v39, %v1300_v17  ;;  %v672_v31 = vadd.f32 %v3634_v52, %v5015_v62  ;;  %v661_v14 = vadd.f32 %v5015_v62, %v660_v25 }
 0x339   :  { %v1328_v4 = vpack.c.bf16 %v1319_v9, %v1318_v33  ;;  %v1321_v13 = vadd.f32 %v3281_v39, %v1301_v43  ;;  %vm789_vm5 = vcmp.ge.f32.partialorder %v669_v55, 0.0  ;;  %v821_v6 = vmul.f32 0.1, %v669_v55  ;;  %v663_v39 = vpop.f32.mrb[3].mxu1 }
 0x33a   :  { %vm790_vm2 = vcmp.ge.f32.partialorder %v672_v31, 0.0  ;;  %v822_v51 = vmul.f32 0.1, %v672_v31  ;;  %v3637_v24 = vpop.f32.mrb[4].mxu1  ;;  %v664_v42 = vadd.f32 %v5015_v62, %v663_v39  ;;  %v819_v47 = vmul.f32 0.1, %v661_v14 }
 0x33b   :  { %v1329_v5 = vpack.c.bf16 %v1321_v13, %v1320_v16  ;;  %v5019_v38 = vsel %vm789_vm5, %v669_v55, %v821_v6  ;;  %v676_v1 = vpop.f32.mrb[5].mxu1  ;;  %vm787_vm1 = vcmp.ge.f32.partialorder %v661_v14, 0.0  ;;  %v685_v20 = vadd.f32 %v3637_v24, %v5015_v62 }
 0x33c   :  { %3716 = vmatmul.mubr.bf16.gmra.mrb[36].mxu1 %v1325_v36  ;;  %v5021_v61 = vsel %vm790_vm2, %v672_v31, %v822_v51  ;;  %v3638_v48 = vpop.f32.mrb[6].mxu1  ;;  %v820_v30 = vmul.f32 0.1, %v664_v42  ;;  %vm788_vm3 = vcmp.ge.f32.partialorder %v664_v42, 0.0  ;;  %v677_v49 = vadd.f32 %v5015_v62, %v676_v1 }
 0x33d   :  { %3719 = vmatprep.mubr.bf16.mxu1 %v1326_v0  ;;  %v679_v41 = vpop.f32.mrb[7].mxu1  ;;  %v5029_v12 = vsel %vm787_vm1, %v661_v14, %v819_v47  ;;  %v688_v28 = vadd.f32 %v3638_v48, %v5015_v62  ;;  %v825_v35 = vmul.f32 0.1, %v685_v20  ;;  %vm793_vm15 = vcmp.ge.f32.partialorder %v685_v20, 0.0 }
 0x33e   :  { %v3641_v26 = vpop.f32.mrb[8].mxu1  ;;  %v680_v10 = vadd.f32 %v5015_v62, %v679_v41  ;;  %v5031_v36 = vsel %vm788_vm3, %v664_v42, %v820_v30  ;;  %v823_v21 = vmul.f32 0.1, %v677_v49  ;;  %vm791_vm0 = vcmp.ge.f32.partialorder %v677_v49, 0.0 }
 0x33f   :  { %v692_v29 = vpop.f32.mrb[9].mxu1  ;;  %v826_v18 = vmul.f32 0.1, %v688_v28  ;;  %vm794_vm8 = vcmp.ge.f32.partialorder %v688_v28, 0.0  ;;  %v701_v0 = vadd.f32 %v3641_v26, %v5015_v62  ;;  %v5046_v43 = vsel %vm793_vm15, %v685_v20, %v825_v35 }
 0x340   :  { %v3642_v11 = vpop.f32.mrb[10].mxu1  ;;  %v824_v37 = vmul.f32 0.1, %v680_v10  ;;  %vm792_vm7 = vcmp.ge.f32.partialorder %v680_v10, 0.0  ;;  %v693_v8 = vadd.f32 %v5015_v62, %v692_v29  ;;  %v5039_v9 = vsel %vm791_vm0, %v677_v49, %v823_v21 }
 0x341   :  { %v695_v15 = vpop.f32.mrb[11].mxu1  ;;  %v5049_v16 = vsel %vm794_vm8, %v688_v28, %v826_v18  ;;  %v829_v25 = vmul.f32 0.1, %v701_v0  ;;  %vm797_vm10 = vcmp.ge.f32.partialorder %v701_v0, 0.0 }
 0x342   :  { %v3645_v34 = vpop.f32.mrb[12].mxu1  ;;  %v696_v54 = vadd.f32 %v5015_v62, %v695_v15  ;;  %v5041_v17 = vsel %vm792_vm7, %v680_v10, %v824_v37  ;;  %vm795_vm9 = vcmp.ge.f32.partialorder %v693_v8, 0.0 }
 0x343   :  { %v708_v60 = vpop.f32.mrb[13].mxu1  ;;  %v717_v48 = vadd.f32 %v3645_v34, %v5015_v62  ;;  %v5062_v14 = vsel %vm797_vm10, %v701_v0, %v829_v25 }
 0x344   :  { %3720 = vmatmul.mubr.bf16.gmra.mrb[40].mxu1 %v1327_v56  ;;  %v3646_v22 = vpop.f32.mrb[14].mxu1  ;;  %v704_v56 = vadd.f32 %v3642_v11, %v5015_v62  ;;  %v828_v57 = vmul.f32 0.1, %v696_v54  ;;  %vm796_vm6 = vcmp.ge.f32.partialorder %v696_v54, 0.0  ;;  %v709_v39 = vadd.f32 %v5015_v62, %v708_v60 }
 0x345   :  { %3723 = vmatprep.mubr.bf16.mxu1 %v1328_v4  ;;  %v711_v40 = vpop.f32.mrb[15].mxu1  ;;  %v720_v42 = vadd.f32 %v3646_v22, %v5015_v62  ;;  %v833_v49 = vmul.f32 0.1, %v717_v48  ;;  %vm801_vm13 = vcmp.ge.f32.partialorder %v717_v48, 0.0 }
 0x346   :  { %v3649_v4 = vpop.f32.mrb[16].mxu1  ;;  %v830_v6 = vmul.f32 0.1, %v704_v56  ;;  %vm798_vm11 = vcmp.ge.f32.partialorder %v704_v56, 0.0  ;;  %v712_v51 = vadd.f32 %v5015_v62, %v711_v40  ;;  %v5057_v1 = vsel %vm796_vm6, %v696_v54, %v828_v57 }
 0x347   :  { %v724_v55 = vpop.f32.mrb[17].mxu1  ;;  %v831_v29 = vmul.f32 0.1, %v709_v39  ;;  %vm799_vm4 = vcmp.ge.f32.partialorder %v709_v39, 0.0  ;;  %v834_v20 = vmul.f32 0.1, %v720_v42  ;;  %v733_v35 = vadd.f32 %v3649_v4, %v5015_v62 }
 0x348   :  { %v3650_v52 = vpop.f32.mrb[18].mxu1  ;;  %v5065_v26 = vsel %vm798_vm11, %v704_v56, %v830_v6  ;;  %v832_v11 = vmul.f32 0.1, %v712_v51  ;;  %vm800_vm12 = vcmp.ge.f32.partialorder %v712_v51, 0.0  ;;  %vm802_vm14 = vcmp.ge.f32.partialorder %v720_v42, 0.0 }
 0x349   :  { %v727_v31 = vpop.f32.mrb[19].mxu1  ;;  %v725_v34 = vadd.f32 %v5015_v62, %v724_v55  ;;  %v5071_v37 = vsel %vm799_vm4, %v709_v39, %v831_v29  ;;  %v5078_v18 = vsel %vm801_vm13, %v717_v48, %v833_v49  ;;  %v736_v40 = vadd.f32 %v3650_v52, %v5015_v62 }
 0x34a   :  { %v3653_v47 = vpop.f32.mrb[20].mxu1  ;;  %v728_v21 = vadd.f32 %v5015_v62, %v727_v31  ;;  %5658 = vst [vmem:[#allocation18_spill] sm:$0xff] %v5071_v37  ;;  %v5073_v60 = vsel %vm800_vm12, %v712_v51, %v832_v11  ;;  %5659 = vst [vmem:[#allocation19_spill] sm:$0xff] %v5078_v18  ;;  %v837_v55 = vmul.f32 0.1, %v733_v35  ;;  %vm805_vm1 = vcmp.ge.f32.partialorder %v733_v35, 0.0 }
 0x34b   :  { %v740_v15 = vpop.f32.mrb[21].mxu1  ;;  %v835_v56 = vmul.f32 0.1, %v725_v34  ;;  %vm803_vm5 = vcmp.ge.f32.partialorder %v725_v34, 0.0  ;;  %v838_v25 = vmul.f32 0.1, %v736_v40  ;;  %v749_v48 = vadd.f32 %v3653_v47, %v5015_v62 }
 0x34c   :  { %3724 = vmatmul.mubr.bf16.gmra.mrb[44].mxu1 %v1329_v5  ;;  %v827_v5 = vmul.f32 0.1, %v693_v8  ;;  %v3654_v10 = vpop.f32.mrb[22].mxu1  ;;  %vm804_vm2 = vcmp.ge.f32.partialorder %v728_v21, 0.0  ;;  %vm806_vm3 = vcmp.ge.f32.partialorder %v736_v40, 0.0  ;;  %v741_v31 = vadd.f32 %v5015_v62, %v740_v15 }
 0x34d   :  { %v743_v28 = vpop.f32.mrb[23].mxu1  ;;  %v5087_v39 = vsel %vm803_vm5, %v725_v34, %v835_v56  ;;  %v5094_v29 = vsel %vm805_vm1, %v733_v35, %v837_v55  ;;  %v752_v11 = vadd.f32 %v3654_v10, %v5015_v62  ;;  %v5097_v49 = vsel %vm806_vm3, %v736_v40, %v838_v25 }
 0x34e   :  { %v5055_v24 = vsel %vm795_vm9, %v693_v8, %v827_v5  ;;  %v5081_v8 = vsel %vm802_vm14, %v720_v42, %v834_v20  ;;  %v3657_v54 = vpop.f32.mrb[24].mxu1  ;;  %v836_v5 = vmul.f32 0.1, %v728_v21  ;;  %v744_v52 = vadd.f32 %v5015_v62, %v743_v28  ;;  %5661 = vst [vmem:[#allocation21_spill] sm:$0xff] %v5087_v39  ;;  %5663 = vst [vmem:[#allocation23_spill] sm:$0xff] %v5094_v29  ;;  %v4027_v29 = vld [vmem:[#allocation7 + $0x150] sm:$0xff]  }
 0x34f   :  { %5660 = vst [vmem:[#allocation20_spill] sm:$0xff] %v5081_v8  ;;  %v756_v57 = vpop.f32.mrb[25].mxu1  ;;  %5664 = vst [vmem:[#allocation24_spill] sm:$0xff] %v5097_v49  ;;  %v839_v28 = vmul.f32 0.1, %v741_v31  ;;  %vm807_vm0 = vcmp.ge.f32.partialorder %v741_v31, 0.0  ;;  %v765_v35 = vadd.f32 %v3657_v54, %v5015_v62 }
 0x350   :  { %v3658_v4 = vpop.f32.mrb[26].mxu1  ;;  %v5089_v51 = vsel %vm804_vm2, %v728_v21, %v836_v5  ;;  %v840_v34 = vmul.f32 0.1, %v744_v52  ;;  %v841_v21 = vmul.f32 0.1, %v749_v48  ;;  %vm808_vm7 = vcmp.ge.f32.partialorder %v744_v52, 0.0 }
 0x351   :  { %v759_v6 = vpop.f32.mrb[27].mxu1  ;;  %5662 = vst [vmem:[#allocation22_spill] sm:$0xff] %v5089_v51  ;;  %vm809_vm15 = vcmp.ge.f32.partialorder %v749_v48, 0.0  ;;  %v842_v5 = vmul.f32 0.1, %v752_v11  ;;  %vm810_vm8 = vcmp.ge.f32.partialorder %v752_v11, 0.0  ;;  %v757_v10 = vadd.f32 %v5015_v62, %v756_v57 }
 0x352   :  { %v3661_v20 = vpop.f32.mrb[28].mxu1  ;;  %v768_v40 = vadd.f32 %v3658_v4, %v5015_v62  ;;  %v760_v55 = vadd.f32 %v5015_v62, %v759_v6  ;;  %v5105_v25 = vsel %vm807_vm0, %v741_v31, %v839_v28  ;;  %v5107_v15 = vsel %vm808_vm7, %v744_v52, %v840_v34  ;;  %v4028_v49 = vld [vmem:[#allocation7 + $0x158] sm:$0xff]  }
 0x353   :  { %v772_v56 = vpop.f32.mrb[29].mxu1  ;;  %5665 = vst [vmem:[#allocation25_spill] sm:$0xff] %v5105_v25  ;;  %5666 = vst [vmem:[#allocation26_spill] sm:$0xff] %v5107_v15  ;;  %v5111_v22 = vsel %vm809_vm15, %v749_v48, %v841_v21  ;;  %v5113_v30 = vsel %vm810_vm8, %v752_v11, %v842_v5  ;;  %v845_v41 = vmul.f32 0.1, %v765_v35  ;;  %vm813_vm9 = vcmp.ge.f32.partialorder %v765_v35, 0.0 }
 0x354   :  { %v3662_v47 = vpop.f32.mrb[30].mxu1  ;;  %5667 = vst [vmem:[#allocation27_spill] sm:$0xff] %v5111_v22  ;;  %5668 = vst [vmem:[#allocation28_spill] sm:$0xff] %v5113_v30  ;;  %v843_v57 = vmul.f32 0.1, %v757_v10  ;;  %vm811_vm6 = vcmp.ge.f32.partialorder %v757_v10, 0.0  ;;  %v781_v6 = vadd.f32 %v3661_v20, %v5015_v62  ;;  %v773_v31 = vadd.f32 %v5015_v62, %v772_v56 }
 0x355   :  { %v775_v42 = vpop.f32.mrb[31].mxu1  ;;  %v846_v13 = vmul.f32 0.1, %v768_v40  ;;  %v844_v4 = vmul.f32 0.1, %v760_v55  ;;  %vm814_vm10 = vcmp.ge.f32.partialorder %v768_v40, 0.0  ;;  %v784_v52 = vadd.f32 %v3662_v47, %v5015_v62 }
 0x356   :  { %vm812_vm11 = vcmp.ge.f32.partialorder %v760_v55, 0.0  ;;  %v776_v48 = vadd.f32 %v5015_v62, %v775_v42  ;;  %v5121_v11 = vsel %vm811_vm6, %v757_v10, %v843_v57  ;;  %v5125_v34 = vsel %vm813_vm9, %v765_v35, %v845_v41  ;;  %v4019_v57 = vld [vmem:[#allocation7 + $0xd0] sm:$0xff]  }
 0x357   :  { %5669 = vst [vmem:[#allocation29_spill] sm:$0xff] %v5121_v11  ;;  %v5123_v28 = vsel %vm812_vm11, %v760_v55, %v844_v4  ;;  %5671 = vst [vmem:[#allocation31_spill] sm:$0xff] %v5125_v34  ;;  %v5127_v21 = vsel %vm814_vm10, %v768_v40, %v846_v13  ;;  %v849_v54 = vmul.f32 0.1, %v781_v6  ;;  %v847_v56 = vmul.f32 0.1, %v773_v31 }
 0x358   :  { %5670 = vst [vmem:[#allocation30_spill] sm:$0xff] %v5123_v28  ;;  %5672 = vst [vmem:[#allocation32_spill] sm:$0xff] %v5127_v21  ;;  %v850_v0 = vmul.f32 0.1, %v784_v52  ;;  %v848_v47 = vmul.f32 0.1, %v776_v48 }
 0x359   :  { %vm817_vm4 = vcmp.ge.f32.partialorder %v781_v6, 0.0  ;;  %vm815_vm12 = vcmp.ge.f32.partialorder %v773_v31, 0.0  ;;  %vm818_vm13 = vcmp.ge.f32.partialorder %v784_v52, 0.0  ;;  %vm816_vm14 = vcmp.ge.f32.partialorder %v776_v48, 0.0  ;;  %v4017_v40 = vld [vmem:[#allocation7 + $0xc0] sm:$0xff]   ;;  %v4018_v55 = vld [vmem:[#allocation7 + $0xc8] sm:$0xff]  }
 0x35a   :  { %v5133_v62 = vsel %vm815_vm12, %v773_v31, %v847_v56  ;;  %v5135_v41 = vsel %vm816_vm14, %v776_v48, %v848_v47  ;;  %v5137_v13 = vsel %vm817_vm4, %v781_v6, %v849_v54  ;;  %v5139_v42 = vsel %vm818_vm13, %v784_v52, %v850_v0  ;;  %3727 = vmatprep.subr.bf16.mxu0 %v4017_v40  ;;  %v4020_v4 = vld [vmem:[#allocation7 + $0xd8] sm:$0xff]   ;;  %v4021_v0 = vld [vmem:[#allocation7 + $0xe0] sm:$0xff]   ;;  %v4022_v54 = vld [vmem:[#allocation7 + $0xe8] sm:$0xff]  }
 0x35b   :  { %5673 = vst [vmem:[#allocation33_spill] sm:$0xff] %v5133_v62  ;;  %5674 = vst [vmem:[#allocation34_spill] sm:$0xff] %v5135_v41  ;;  %3728 = vmatpush3.bf16.msra.mxu0 %v4017_v40  ;;  %v4023_v6 = vld [vmem:[#allocation7 + $0xf0] sm:$0xff]   ;;  %v4024_v31 = vld [vmem:[#allocation7 + $0xf8] sm:$0xff]  }
 0x35c   :  { %5675 = vst [vmem:[#allocation35_spill] sm:$0xff] %v5137_v13  ;;  %5676 = vst [vmem:[#allocation36_spill] sm:$0xff] %v5139_v42  ;;  %3729 = vmatprep.subr.bf16.mxu0 %v4018_v55  ;;  %v5148_v52 = vld [vmem:[%s5579_s4 + $0x2] ss:$0 sm:$0xff]  ;;  %v4025_v28 = vld [vmem:[#allocation7 + $0x140] sm:$0xff]  }
 0x35d   :  { %3759 = vmatprep.subr.bf16.mxu1 %v4025_v28 }
 0x35e   :  { %3760 = vmatpush3.bf16.msra.mxu1 %v4025_v28 }
 0x35f   :  { %3730 = vmatpush3.bf16.msra.mxu0 %v4018_v55 }
 0x360   :  { %3731 = vmatprep.subr.bf16.mxu0 %v4019_v57 }
 0x363   :  { %3732 = vmatpush3.bf16.msra.mxu0 %v4019_v57 }
 0x364   :  { %3733 = vmatprep.subr.bf16.mxu0 %v4020_v4 }
 0x367   :  { %3734 = vmatpush3.bf16.msra.mxu0 %v4020_v4 }
 0x368   :  { %3735 = vmatprep.subr.bf16.mxu0 %v4021_v0 }
 0x36b   :  { %3736 = vmatpush3.bf16.msra.mxu0 %v4021_v0 }
 0x36c   :  { %3737 = vmatprep.subr.bf16.mxu0 %v4022_v54 }
 0x36f   :  { %3738 = vmatpush3.bf16.msra.mxu0 %v4022_v54 }
 0x370   :  { %3739 = vmatprep.subr.bf16.mxu0 %v4023_v6 }
 0x373   :  { %3740 = vmatpush3.bf16.msra.mxu0 %v4023_v6 }
 0x374   :  { %3741 = vmatprep.subr.bf16.mxu0 %v4024_v31 }
 0x377   :  { %3742 = vmatpush3.bf16.msra.mxu0 %v4024_v31 }
 0x407   :  { %v3713_v48 = vpop.f32.mrb[32].mxu1 }
 0x408   :  { %v1434_v56 = vpop.f32.mrb[33].mxu1  ;;  %v1443_v47 = vadd.f32 %v3713_v48, %v5148_v52 }
 0x409   :  { %v1435_v40 = vadd.f32 %v5148_v52, %v1434_v56  ;;  %v3714_v55 = vpop.f32.mrb[34].mxu1 }
 0x40a   :  { %v1446_v57 = vadd.f32 %v3714_v55, %v5148_v52  ;;  %v1437_v4 = vpop.f32.mrb[35].mxu1  ;;  %v1515_v10 = vmul.f32 0.1, %v1443_v47  ;;  %vm1499_vm1 = vcmp.ge.f32.partialorder %v1443_v47, 0.0 }
 0x40b   :  { %v1513_v0 = vmul.f32 0.1, %v1435_v40  ;;  %v1438_v54 = vadd.f32 %v5148_v52, %v1437_v4  ;;  %vm1497_vm5 = vcmp.ge.f32.partialorder %v1435_v40, 0.0 }
 0x40c   :  { %v1516_v6 = vmul.f32 0.1, %v1446_v57  ;;  %vm1500_vm3 = vcmp.ge.f32.partialorder %v1446_v57, 0.0  ;;  %v5160_v33 = vsel %vm1499_vm1, %v1443_v47, %v1515_v10 }
 0x40d   :  { %vm1498_vm2 = vcmp.ge.f32.partialorder %v1438_v54, 0.0  ;;  %v1514_v35 = vmul.f32 0.1, %v1438_v54  ;;  %v5154_v20 = vsel %vm1497_vm5, %v1435_v40, %v1513_v0  ;;  %vm5677_vm5 = vcmp.eq.s32.totalorder %v4319_v3, %v4386_v32 }
 0x40e   :  { %v5164_v27 = vsel %vm1500_vm3, %v1446_v57, %v1516_v6  ;;  %v5682_v3 = vpack.c.bf16 %v4571_v2, %v4553_v63 }
 0x40f   :  { %v5156_v48 = vsel %vm1498_vm2, %v1438_v54, %v1514_v35  ;;  %v3717_v56 = vpop.f32.mrb[36].mxu1  ;;  %vm5678_vm2 = vcmp.eq.s32.totalorder %v4322_v7, %v4386_v32  ;;  %v5683_v7 = vld [vmem:[#allocation13_spill] sm:$0xff]  ;;  %v5684_v32 = vld [vmem:[#allocation12_spill] sm:$0xff] }
 0x410   :  { %v1561_v55 = vadd.f32 %v5156_v48, %v5154_v20  ;;  %v1450_v5 = vpop.f32.mrb[37].mxu1  ;;  %v1459_v31 = vadd.f32 %v3717_v56, %v5148_v52 }
 0x411   :  { %v1451_v4 = vadd.f32 %v5148_v52, %v1450_v5  ;;  %v3718_v19 = vpop.f32.mrb[38].mxu1 }
 0x412   :  { %v1562_v40 = vadd.f32 %v1561_v55, %v5160_v33  ;;  %v1453_v0 = vpop.f32.mrb[39].mxu1  ;;  %v1462_v54 = vadd.f32 %v3718_v19, %v5148_v52  ;;  %v1519_v10 = vmul.f32 0.1, %v1459_v31  ;;  %vm1503_vm15 = vcmp.ge.f32.partialorder %v1459_v31, 0.0 }
 0x413   :  { %vm1501_vm0 = vcmp.ge.f32.partialorder %v1451_v4, 0.0  ;;  %v1517_v35 = vmul.f32 0.1, %v1451_v4  ;;  %v1454_v13 = vadd.f32 %v5148_v52, %v1453_v0 }
 0x414   :  { %v1563_v42 = vadd.f32 %v1562_v40, %v5164_v27  ;;  %v1520_v57 = vmul.f32 0.1, %v1462_v54  ;;  %vm1504_vm8 = vcmp.ge.f32.partialorder %v1462_v54, 0.0  ;;  %v5176_v41 = vsel %vm1503_vm15, %v1459_v31, %v1519_v10 }
 0x415   :  { %v5170_v47 = vsel %vm1501_vm0, %v1451_v4, %v1517_v35  ;;  %vm1502_vm7 = vcmp.ge.f32.partialorder %v1454_v13, 0.0  ;;  %v1518_v56 = vmul.f32 0.1, %v1454_v13 }
 0x416   :  { %v1564_v5 = vadd.f32 %v1563_v42, %v5170_v47  ;;  %v5182_v21 = vsel %vm1504_vm8, %v1462_v54, %v1520_v57 }
 0x417   :  { %v5173_v6 = vsel %vm1502_vm7, %v1454_v13, %v1518_v56  ;;  %v3721_v55 = vpop.f32.mrb[40].mxu1 }
 0x418   :  { %v1565_v62 = vadd.f32 %v1564_v5, %v5173_v6  ;;  %v1466_v19 = vpop.f32.mrb[41].mxu1  ;;  %v1475_v40 = vadd.f32 %v3721_v55, %v5148_v52 }
 0x419   :  { %v1467_v4 = vadd.f32 %v5148_v52, %v1466_v19  ;;  %v3722_v0 = vpop.f32.mrb[42].mxu1 }
 0x41a   :  { %v1566_v35 = vadd.f32 %v1565_v62, %v5176_v41  ;;  %v1478_v34 = vadd.f32 %v3722_v0, %v5148_v52  ;;  %v1469_v42 = vpop.f32.mrb[43].mxu1  ;;  %v1523_v31 = vmul.f32 0.1, %v1475_v40  ;;  %vm1507_vm10 = vcmp.ge.f32.partialorder %v1475_v40, 0.0 }
 0x41b   :  { %vm1505_vm9 = vcmp.ge.f32.partialorder %v1467_v4, 0.0  ;;  %v1521_v13 = vmul.f32 0.1, %v1467_v4  ;;  %v1470_v56 = vadd.f32 %v5148_v52, %v1469_v42 }
 0x41c   :  { %v1567_v5 = vadd.f32 %v1566_v35, %v5182_v21  ;;  %v1524_v62 = vmul.f32 0.1, %v1478_v34  ;;  %vm1508_vm11 = vcmp.ge.f32.partialorder %v1478_v34, 0.0  ;;  %v4026_v35 = vld [vmem:[#allocation7 + $0x148] sm:$0xff]   ;;  %v1539_v22 = vsel %vm1507_vm10, %v1475_v40, %v1523_v31 }
 0x41d   :  { %v5186_v10 = vsel %vm1505_vm9, %v1467_v4, %v1521_v13  ;;  %vm1506_vm6 = vcmp.ge.f32.partialorder %v1470_v56, 0.0  ;;  %v1522_v55 = vmul.f32 0.1, %v1470_v56  ;;  %3761 = vmatprep.subr.bf16.mxu1 %v4026_v35 }
 0x41e   :  { %v1568_v19 = vadd.f32 %v1567_v5, %v5186_v10  ;;  %v1540_v30 = vsel %vm1508_vm11, %v1478_v34, %v1524_v62  ;;  %3762 = vmatpush3.bf16.msra.mxu1 %v4026_v35 }
 0x41f   :  { %v5189_v0 = vsel %vm1506_vm6, %v1470_v56, %v1522_v55  ;;  %v3725_v54 = vpop.f32.mrb[44].mxu1  ;;  %3763 = vmatprep.subr.bf16.mxu1 %v4027_v29 }
 0x420   :  { %v1569_v57 = vadd.f32 %v1568_v19, %v5189_v0  ;;  %v1491_v11 = vadd.f32 %v3725_v54, %v5148_v52  ;;  %v1482_v42 = vpop.f32.mrb[45].mxu1 }
 0x421   :  { %v1483_v4 = vadd.f32 %v5148_v52, %v1482_v42  ;;  %v3726_v13 = vpop.f32.mrb[46].mxu1 }
 0x422   :  { %v1570_v25 = vadd.f32 %v1569_v57, %v1539_v22  ;;  %v1494_v5 = vadd.f32 %v3726_v13, %v5148_v52  ;;  %v1485_v15 = vpop.f32.mrb[47].mxu1  ;;  %v1527_v56 = vmul.f32 0.1, %v1491_v11  ;;  %vm1511_vm12 = vcmp.ge.f32.partialorder %v1491_v11, 0.0  ;;  %3764 = vmatpush3.bf16.msra.mxu1 %v4027_v29 }
 0x423   :  { %vm1509_vm4 = vcmp.ge.f32.partialorder %v1483_v4, 0.0  ;;  %v1525_v55 = vmul.f32 0.1, %v1483_v4  ;;  %v1486_v19 = vadd.f32 %v5148_v52, %v1485_v15  ;;  %3765 = vmatprep.subr.bf16.mxu1 %v4028_v49 }
 0x424   :  { %v1571_v54 = vadd.f32 %v1570_v25, %v1540_v30  ;;  %v1528_v31 = vmul.f32 0.1, %v1494_v5  ;;  %vm1512_vm14 = vcmp.ge.f32.partialorder %v1494_v5, 0.0  ;;  %v1543_v62 = vsel %vm1511_vm12, %v1491_v11, %v1527_v56 }
 0x425   :  { %v1541_v40 = vsel %vm1509_vm4, %v1483_v4, %v1525_v55  ;;  %vm1510_vm13 = vcmp.ge.f32.partialorder %v1486_v19, 0.0  ;;  %v1526_v42 = vmul.f32 0.1, %v1486_v19  ;;  %v1559_v15 = vmul.f32 0.0, %v1543_v62  ;;  %v4029_v4 = vld [vmem:[#allocation7 + $0x160] sm:$0xff]  }
 0x426   :  { %v1572_v34 = vadd.f32 %v1571_v54, %v1541_v40  ;;  %v1544_v39 = vsel %vm1512_vm14, %v1494_v5, %v1528_v31  ;;  %3766 = vmatpush3.bf16.msra.mxu1 %v4028_v49 }
 0x427   :  { %v1542_v57 = vsel %vm1510_vm13, %v1486_v19, %v1526_v42  ;;  %v1560_v25 = vmul.f32 0.0, %v1544_v39  ;;  %3767 = vmatprep.subr.bf16.mxu1 %v4029_v4 }
 0x428   :  { %v1558_v13 = vmul.f32 %v4936_v44, %v1542_v57 }
 0x42a   :  { %v1573_v28 = vadd.f32 %v1572_v34, %v1558_v13  ;;  %3768 = vmatpush3.bf16.msra.mxu1 %v4029_v4 }
 0x42c   :  { %v1574_v52 = vadd.f32 %v1573_v28, %v1559_v15 }
 0x42e   :  { %v1575_v55 = vadd.f32 %v1574_v52, %v1560_v25 }
 0x430   :  { %v1576_v51 = vrot.slane %v1575_v55, 4 }
 0x432   :  { %v1577_v54 = vadd.f32 %v1576_v51, %v1575_v55 }
 0x434   :  { %v1578_v11 = vrot.slane %v1577_v54, 2 }
 0x436   :  { %v1579_v35 = vadd.f32 %v1578_v11, %v1577_v54 }
 0x438   :  { %v1580_v56 = vrot.slane %v1579_v35, 1 }
 0x43a   :  { %v1581_v19 = vadd.f32 %v1580_v56, %v1579_v35 }
 0x43c   :  { %v1582_v42 = vmul.f32 0.009259259, %v1581_v19 }
 0x43e   :  { %v1583_v5 = vsub.f32 %v5154_v20, %v1582_v42  ;;  %v1584_v31 = vsub.f32 %v5156_v48, %v1582_v42  ;;  %v1585_v29 = vsub.f32 %v5160_v33, %v1582_v42  ;;  %v5201_v34 = vsub.f32 %v5164_v27, %v1582_v42 }
 0x43f   :  { %v5204_v49 = vsub.f32 %v5170_v47, %v1582_v42  ;;  %v5207_v51 = vsub.f32 %v5173_v6, %v1582_v42  ;;  %v5210_v13 = vsub.f32 %v5176_v41, %v1582_v42  ;;  %v5213_v15 = vsub.f32 %v5182_v21, %v1582_v42 }
 0x440   :  { %v5216_v20 = vsub.f32 %v5186_v10, %v1582_v42  ;;  %v5219_v33 = vsub.f32 %v5189_v0, %v1582_v42  ;;  %v5221_v27 = vsub.f32 %v1539_v22, %v1582_v42  ;;  %v5223_v48 = vsub.f32 %v1540_v30, %v1582_v42 }
 0x441   :  { %v5225_v47 = vsub.f32 %v1541_v40, %v1582_v42  ;;  %v1596_v6 = vsub.f32 %v1542_v57, %v1582_v42  ;;  %v5227_v28 = vsub.f32 %v1543_v62, %v1582_v42  ;;  %v5229_v41 = vsub.f32 %v1544_v39, %v1582_v42 }
 0x442   :  { %v1615_v25 = vmul.f32 %v1583_v5, %v1583_v5  ;;  %v1616_v21 = vmul.f32 %v1584_v31, %v1584_v31  ;;  %v1617_v52 = vmul.f32 %v1585_v29, %v1585_v29  ;;  %v1618_v10 = vmul.f32 %v5201_v34, %v5201_v34 }
 0x443   :  { %v1619_v22 = vmul.f32 %v5204_v49, %v5204_v49  ;;  %v1620_v40 = vmul.f32 %v5207_v51, %v5207_v51  ;;  %v1621_v39 = vmul.f32 %v5210_v13, %v5210_v13  ;;  %v1622_v55 = vmul.f32 %v5213_v15, %v5213_v15 }
 0x444   :  { %v1631_v4 = vadd.f32 %v1616_v21, %v1615_v25  ;;  %v1623_v11 = vmul.f32 %v5216_v20, %v5216_v20  ;;  %v1624_v56 = vmul.f32 %v5219_v33, %v5219_v33  ;;  %v1625_v42 = vmul.f32 %v5221_v27, %v5221_v27 }
 0x445   :  { %v1612_v21 = vmul.f32 %v4936_v44, %v1596_v6 }
 0x446   :  { %v1632_v0 = vadd.f32 %v1631_v4, %v1617_v52  ;;  %v1626_v52 = vmul.f32 %v5223_v48, %v5223_v48 }
 0x448   :  { %v1633_v30 = vadd.f32 %v1632_v0, %v1618_v10  ;;  %v1613_v10 = vmul.f32 0.0, %v5227_v28  ;;  %v1627_v0 = vmul.f32 %v5225_v47, %v5225_v47 }
 0x44a   :  { %v1634_v57 = vadd.f32 %v1633_v30, %v1619_v22  ;;  %v1614_v30 = vmul.f32 0.0, %v5229_v41 }
 0x44c   :  { %v1635_v62 = vadd.f32 %v1634_v57, %v1620_v40  ;;  %v1628_v40 = vmul.f32 %v1612_v21, %v1612_v21  ;;  %v3291_v21 = vld [vmem:[%s5580_s5 + $0x2] ss:$0 sm:$0xff] }
 0x44e   :  { %v1636_v54 = vadd.f32 %v1635_v62, %v1621_v39  ;;  %v1629_v39 = vmul.f32 %v1613_v10, %v1613_v10 }
 0x450   :  { %v1637_v35 = vadd.f32 %v1636_v54, %v1622_v55  ;;  %v1630_v55 = vmul.f32 %v1614_v30, %v1614_v30 }
 0x452   :  { %v1638_v19 = vadd.f32 %v1637_v35, %v1623_v11 }
 0x454   :  { %v1639_v25 = vadd.f32 %v1638_v19, %v1624_v56 }
 0x456   :  { %v1640_v4 = vadd.f32 %v1639_v25, %v1625_v42 }
 0x458   :  { %v1641_v22 = vadd.f32 %v1640_v4, %v1626_v52 }
 0x45a   :  { %v1642_v57 = vadd.f32 %v1641_v22, %v1627_v0  ;;  %v3292_v22 = vld [vmem:[%s5580_s5 + $0x3] ss:$0 sm:$0xff] }
 0x45c   :  { %v1643_v62 = vadd.f32 %v1642_v57, %v1628_v40 }
 0x45e   :  { %v1644_v54 = vadd.f32 %v1643_v62, %v1629_v39 }
 0x460   :  { %v1645_v11 = vadd.f32 %v1644_v54, %v1630_v55 }
 0x462   :  { %v1646_v44 = vrot.slane %v1645_v11, 4 }
 0x464   :  { %v1647_v35 = vadd.f32 %v1646_v44, %v1645_v11 }
 0x466   :  { %v1648_v56 = vrot.slane %v1647_v35, 2 }
 0x468   :  { %v1649_v19 = vadd.f32 %v1648_v56, %v1647_v35 }
 0x46a   :  { %v1650_v42 = vrot.slane %v1649_v19, 1 }
 0x46c   :  { %v1651_v25 = vadd.f32 %v1650_v42, %v1649_v19 }
 0x46e   :  { %v1652_v18 = vmul.f32 0.009259259, %v1651_v25 }
 0x470   :  { %v1655_v8 = vadd.f32 1e-05, %v1652_v18 }
 0x472   :  { %4104 = vrsqrt.f32 %v1655_v8 }
 0x47c   :  { %v4105_v37 = vpop.eup %4104 }
 0x47d   :  { %v1670_v52 = vmul.f32 %v4105_v37, %v1596_v6  ;;  %v1657_v4 = vmul.f32 %v4105_v37, %v1583_v5  ;;  %v1658_v10 = vmul.f32 %v4105_v37, %v1584_v31  ;;  %v1659_v0 = vmul.f32 %v4105_v37, %v1585_v29 }
 0x47e   :  { %v1660_v30 = vmul.f32 %v4105_v37, %v5201_v34  ;;  %v1661_v40 = vmul.f32 %v4105_v37, %v5204_v49  ;;  %v1662_v18 = vmul.f32 %v4105_v37, %v5207_v51  ;;  %v1663_v8 = vmul.f32 %v4105_v37, %v5210_v13 }
 0x47f   :  { %v1677_v57 = vmul.f32 %v3291_v21, %v1657_v4  ;;  %v1678_v39 = vmul.f32 %v3291_v21, %v1658_v10  ;;  %v1679_v62 = vmul.f32 %v3291_v21, %v1659_v0  ;;  %v1664_v6 = vmul.f32 %v4105_v37, %v5213_v15 }
 0x480   :  { %v1680_v5 = vmul.f32 %v3291_v21, %v1660_v30  ;;  %v1681_v31 = vmul.f32 %v3291_v21, %v1661_v40  ;;  %v1682_v29 = vmul.f32 %v3291_v21, %v1662_v18  ;;  %v1683_v55 = vmul.f32 %v3291_v21, %v1663_v8 }
 0x481   :  { %v1697_v54 = vadd.f32 %v3292_v22, %v1677_v57  ;;  %v1698_v11 = vadd.f32 %v3292_v22, %v1678_v39  ;;  %v1699_v44 = vadd.f32 %v3292_v22, %v1679_v62  ;;  %v1684_v35 = vmul.f32 %v3291_v21, %v1664_v6 }
 0x482   :  { %v1700_v34 = vadd.f32 %v3292_v22, %v1680_v5  ;;  %v1701_v56 = vadd.f32 %v3292_v22, %v1681_v31  ;;  %v1702_v49 = vadd.f32 %v3292_v22, %v1682_v29  ;;  %v1703_v19 = vadd.f32 %v3292_v22, %v1683_v55 }
 0x483   :  { %v1713_v51 = vpack.c.bf16 %v1698_v11, %v1697_v54  ;;  %v1704_v42 = vadd.f32 %v3292_v22, %v1684_v35  ;;  %v1665_v13 = vmul.f32 %v4105_v37, %v5216_v20  ;;  %v1666_v25 = vmul.f32 %v4105_v37, %v5219_v33 }
 0x484   :  { %v1714_v4 = vpack.c.bf16 %v1700_v34, %v1699_v44  ;;  %v1715_v15 = vpack.c.bf16 %v1702_v49, %v1701_v56  ;;  %v1667_v10 = vmul.f32 %v4105_v37, %v5221_v27  ;;  %v1668_v0 = vmul.f32 %v4105_v37, %v5223_v48 }
 0x485   :  { %3743 = vmatprep.mubr.bf16.mxu0 %v1713_v51  ;;  %v1716_v30 = vpack.c.bf16 %v1704_v42, %v1703_v19  ;;  %v1685_v40 = vmul.f32 %v3291_v21, %v1665_v13  ;;  %v1686_v18 = vmul.f32 %v3291_v21, %v1666_v25  ;;  %v1669_v8 = vmul.f32 %v4105_v37, %v5225_v47  ;;  %v5686_v25 = vld [vmem:[#allocation15_spill] sm:$0xff] }
 0x486   :  { %3744 = vmatmul.mubr.bf16.vlgmr.msra.gmra.mrb[48].mxu0 %v1714_v4  ;;  %v1687_v57 = vmul.f32 %v3291_v21, %v1667_v10  ;;  %v1688_v39 = vmul.f32 %v3291_v21, %v1668_v0  ;;  %v1690_v62 = vmul.f32 %v3291_v21, %v1670_v52  ;;  %v1671_v20 = vmul.f32 %v4105_v37, %v5227_v28  ;;  %v4030_v28 = vld [vmem:[#allocation7 + $0x168] sm:$0xff]   ;;  %v5687_v4 = vld [vmem:[#allocation14_spill] sm:$0xff] }
 0x487   :  { %3747 = vmatprep.mubr.bf16.mxu0 %v1715_v15  ;;  %v1705_v33 = vadd.f32 %v3292_v22, %v1685_v40  ;;  %v1706_v6 = vadd.f32 %v3292_v22, %v1686_v18  ;;  %v1689_v5 = vmul.f32 %v3291_v21, %v1669_v8  ;;  %v1672_v27 = vmul.f32 %v4105_v37, %v5229_v41  ;;  %v4031_v37 = vld [vmem:[#allocation7 + $0x170] sm:$0xff]   ;;  %v4032_v41 = vld [vmem:[#allocation7 + $0x178] sm:$0xff]  }
 0x488   :  { %v1707_v31 = vadd.f32 %v3292_v22, %v1687_v57  ;;  %v1708_v48 = vadd.f32 %v3292_v22, %v1688_v39  ;;  %v1710_v29 = vadd.f32 %v3292_v22, %v1690_v62  ;;  %v1691_v55 = vmul.f32 %v3291_v21, %v1671_v20  ;;  %3769 = vmatprep.subr.bf16.mxu1 %v4030_v28  ;;  %v5690_v15 = vld [vmem:[#allocation16_spill] sm:$0xff] }
 0x489   :  { %v1717_v54 = vpack.c.bf16 %v1706_v6, %v1705_v33  ;;  %v1709_v11 = vadd.f32 %v3292_v22, %v1689_v5  ;;  %v1692_v44 = vmul.f32 %v3291_v21, %v1672_v27  ;;  %3770 = vmatpush3.bf16.msra.mxu1 %v4030_v28  ;;  %v3181_v21 = vsel %vm5677_vm5, 1.0, %v5657_v23 }
 0x48a   :  { %v1718_v47 = vpack.c.bf16 %v1708_v48, %v1707_v31  ;;  %v1711_v35 = vadd.f32 %v3292_v22, %v1691_v55  ;;  %3771 = vmatprep.subr.bf16.mxu1 %v4031_v37  ;;  %v5679_v19 = vpack.c.bf16 %v4450_v46, %v4441_v45  ;;  %v5680_v51 = vpack.c.bf16 %v4487_v53, %v4477_v50  ;;  %v5689_v46 = vld [vmem:[#allocation17_spill] sm:$0xff]  ;;  %v5304_v53 = vld [vmem:[%s5579_s4 + $0x3] ss:$0 sm:$0xff] }
 0x48b   :  { %v1719_v34 = vpack.c.bf16 %v1710_v29, %v1709_v11  ;;  %v1712_v56 = vadd.f32 %v3292_v22, %v1692_v44  ;;  %v3183_v22 = vsel %vm5678_vm2, 1.0, %v5657_v23  ;;  %v5681_v42 = vpack.c.bf16 %v4527_v59, %v4518_v58 }
 0x48c   :  { %v220_v49 = vpack.c.bf16 %v3183_v22, %v3181_v21  ;;  %v5685_v13 = vpack.c.bf16 %v5683_v7, %v5684_v32  ;;  %v5688_v45 = vpack.c.bf16 %v5686_v25, %v5687_v4  ;;  %v5691_v50 = vpack.c.bf16 %v5689_v46, %v5690_v15 }
 0x48d   :  { %v1720_v52 = vpack.c.bf16 %v1712_v56, %v1711_v35  ;;  %3772 = vmatpush3.bf16.msra.mxu1 %v4031_v37 }
 0x48e   :  { %3748 = vmatmul.mubr.bf16.gmra.mrb[52].mxu0 %v1716_v30  ;;  %3773 = vmatprep.subr.bf16.mxu1 %v4032_v41 }
 0x48f   :  { %3751 = vmatprep.mubr.bf16.mxu0 %v1717_v54  ;;  %2114 = vxpose.xlu0.c.b16.start [1/8] %v220_v49, 128 }
 0x491   :  { %3774 = vmatpush3.bf16.msra.mxu1 %v4032_v41 }
 0x493   :  { %2115 = vxpose.xlu0.c.b16.cont [2/8] %v5679_v19, 128 }
 0x496   :  { %3752 = vmatmul.mubr.bf16.gmra.mrb[56].mxu0 %v1718_v47 }
 0x497   :  { %3755 = vmatprep.mubr.bf16.mxu0 %v1719_v34  ;;  %2116 = vxpose.xlu0.c.b16.cont [3/8] %v5680_v51, 128 }
 0x49b   :  { %2117 = vxpose.xlu0.c.b16.cont [4/8] %v5681_v42, 128 }
 0x49e   :  { %3756 = vmatmul.mubr.bf16.gmra.mrb[60].mxu0 %v1720_v52 }
 0x49f   :  { %2118 = vxpose.xlu0.c.b16.cont [5/8] %v5682_v3, 128 }
 0x4a3   :  { %2119 = vxpose.xlu0.c.b16.cont [6/8] %v5685_v13, 128 }
 0x4a7   :  { %2120 = vxpose.xlu0.c.b16.cont [7/8] %v5688_v45, 128 }
 0x4ab   :  { %2121 = vxpose.xlu0.c.b16.end [8/8] %v5691_v50, 128 }
 0x559   :  { %v3745_v58 = vpop.f32.mrb[48].mxu0 }
 0x55a   :  { %v1834_v59 = vadd.f32 %v3745_v58, %v5304_v53  ;;  %v1825_v63 = vpop.f32.mrb[49].mxu0 }
 0x55b   :  { %v1826_v2 = vadd.f32 %v5304_v53, %v1825_v63  ;;  %v3746_v10 = vpop.f32.mrb[50].mxu0 }
 0x55c   :  { %v1906_v0 = vmul.f32 0.1, %v1834_v59  ;;  %v1837_v30 = vadd.f32 %v3746_v10, %v5304_v53  ;;  %v1828_v40 = vpop.f32.mrb[51].mxu0  ;;  %vm1890_vm1 = vcmp.ge.f32.partialorder %v1834_v59, 0.0 }
 0x55d   :  { %v1904_v18 = vmul.f32 0.1, %v1826_v2  ;;  %v1829_v8 = vadd.f32 %v5304_v53, %v1828_v40  ;;  %vm1888_vm3 = vcmp.ge.f32.partialorder %v1826_v2, 0.0 }
 0x55e   :  { %vm1891_vm0 = vcmp.ge.f32.partialorder %v1837_v30, 0.0  ;;  %v1907_v57 = vmul.f32 0.1, %v1837_v30  ;;  %v1922_v62 = vsel %vm1890_vm1, %v1834_v59, %v1906_v0 }
 0x55f   :  { %vm1889_vm7 = vcmp.ge.f32.partialorder %v1829_v8, 0.0  ;;  %v1905_v39 = vmul.f32 0.1, %v1829_v8  ;;  %v1920_v5 = vsel %vm1888_vm3, %v1826_v2, %v1904_v18 }
 0x560   :  { %v1923_v20 = vsel %vm1891_vm0, %v1837_v30, %v1907_v57 }
 0x561   :  { %v1937_v33 = vpack.c.bf16 %v1923_v20, %v1922_v62  ;;  %v3749_v6 = vpop.f32.mrb[52].mxu0  ;;  %v1921_v27 = vsel %vm1889_vm7, %v1829_v8, %v1905_v39 }
 0x562   :  { %v1850_v31 = vadd.f32 %v3749_v6, %v5304_v53  ;;  %v1841_v48 = vpop.f32.mrb[53].mxu0  ;;  %v1936_v29 = vpack.c.bf16 %v1921_v27, %v1920_v5 }
 0x563   :  { %v1842_v55 = vadd.f32 %v5304_v53, %v1841_v48  ;;  %v3750_v54 = vpop.f32.mrb[54].mxu0 }
 0x564   :  { %v1910_v11 = vmul.f32 0.1, %v1850_v31  ;;  %v1853_v44 = vadd.f32 %v3750_v54, %v5304_v53  ;;  %v1844_v47 = vpop.f32.mrb[55].mxu0  ;;  %3775 = vmatprep.mubr.bf16.mxu1 %v1936_v29  ;;  %vm1894_vm15 = vcmp.ge.f32.partialorder %v1850_v31, 0.0 }
 0x565   :  { %v1908_v35 = vmul.f32 0.1, %v1842_v55  ;;  %v1845_v34 = vadd.f32 %v5304_v53, %v1844_v47  ;;  %3776 = vmatmul.mubr.bf16.vlgmr.msra.gmra.mrb[48].mxu1 %v1937_v33  ;;  %vm1892_vm8 = vcmp.ge.f32.partialorder %v1842_v55, 0.0 }
 0x566   :  { %vm1895_vm9 = vcmp.ge.f32.partialorder %v1853_v44, 0.0  ;;  %v1911_v56 = vmul.f32 0.1, %v1853_v44  ;;  %v1926_v28 = vsel %vm1894_vm15, %v1850_v31, %v1910_v11  ;;  %v2122_v11 = vpop.trf.xlu0 }
 0x567   :  { %vm1893_vm6 = vcmp.ge.f32.partialorder %v1845_v34, 0.0  ;;  %v1909_v52 = vmul.f32 0.1, %v1845_v34  ;;  %v1924_v21 = vsel %vm1892_vm8, %v1842_v55, %v1908_v35  ;;  %3807 = vmatprep.mubr.bf16.mxu0 %v2122_v11  ;;  %v5694_v11 = vpack.c.bf16 %v5041_v17, %v5039_v9  ;;  %v5703_v17 = vld [vmem:[#allocation22_spill] sm:$0xff] }
 0x568   :  { %v1927_v37 = vsel %vm1895_vm9, %v1853_v44, %v1911_v56 }
 0x569   :  { %v3753_v41 = vpop.f32.mrb[56].mxu0  ;;  %v1925_v22 = vsel %vm1893_vm6, %v1845_v34, %v1909_v52  ;;  %v1939_v49 = vpack.c.bf16 %v1927_v37, %v1926_v28 }
 0x56a   :  { %v1866_v19 = vadd.f32 %v3753_v41, %v5304_v53  ;;  %v1857_v51 = vpop.f32.mrb[57].mxu0  ;;  %v1938_v42 = vpack.c.bf16 %v1925_v22, %v1924_v21 }
 0x56b   :  { %v1858_v3 = vadd.f32 %v5304_v53, %v1857_v51  ;;  %v3754_v7 = vpop.f32.mrb[58].mxu0 }
 0x56c   :  { %v1914_v32 = vmul.f32 0.1, %v1866_v19  ;;  %v1869_v13 = vadd.f32 %v3754_v7, %v5304_v53  ;;  %v1860_v25 = vpop.f32.mrb[59].mxu0  ;;  %3779 = vmatprep.mubr.bf16.mxu1 %v1938_v42  ;;  %vm1898_vm10 = vcmp.ge.f32.partialorder %v1866_v19, 0.0 }
 0x56d   :  { %v1912_v4 = vmul.f32 0.1, %v1858_v3  ;;  %v1861_v45 = vadd.f32 %v5304_v53, %v1860_v25  ;;  %3780 = vmatmul.mubr.bf16.gmra.mrb[52].mxu1 %v1939_v49  ;;  %vm1896_vm11 = vcmp.ge.f32.partialorder %v1858_v3, 0.0 }
 0x56e   :  { %vm1899_vm4 = vcmp.ge.f32.partialorder %v1869_v13, 0.0  ;;  %v1915_v46 = vmul.f32 0.1, %v1869_v13  ;;  %v1930_v50 = vsel %vm1898_vm10, %v1866_v19, %v1914_v32  ;;  %v2123_v32 = vpop.trf.xlu0 }
 0x56f   :  { %vm1897_vm12 = vcmp.ge.f32.partialorder %v1861_v45, 0.0  ;;  %v1913_v15 = vmul.f32 0.1, %v1861_v45  ;;  %v1928_v63 = vsel %vm1896_vm11, %v1858_v3, %v1912_v4 }
 0x570   :  { %v1931_v58 = vsel %vm1899_vm4, %v1869_v13, %v1915_v46 }
 0x571   :  { %v3757_v59 = vpop.f32.mrb[60].mxu0  ;;  %v1929_v2 = vsel %vm1897_vm12, %v1861_v45, %v1913_v15  ;;  %v1941_v10 = vpack.c.bf16 %v1931_v58, %v1930_v50  ;;  %v4033_v58 = vld [vmem:[#allocation7 + $0x100] sm:$0xff]  }
 0x572   :  { %v1882_v0 = vadd.f32 %v3757_v59, %v5304_v53  ;;  %v1873_v30 = vpop.f32.mrb[61].mxu0  ;;  %v1940_v40 = vpack.c.bf16 %v1929_v2, %v1928_v63  ;;  %v2124_v50 = vpop.trf.xlu0  ;;  %v4034_v63 = vld [vmem:[#allocation7 + $0x108] sm:$0xff]  }
 0x573   :  { %v1874_v18 = vadd.f32 %v5304_v53, %v1873_v30  ;;  %v3758_v8 = vpop.f32.mrb[62].mxu0 }
 0x574   :  { %v1918_v57 = vmul.f32 0.1, %v1882_v0  ;;  %v1885_v39 = vadd.f32 %v3758_v8, %v5304_v53  ;;  %v1876_v62 = vpop.f32.mrb[63].mxu0  ;;  %3783 = vmatprep.mubr.bf16.mxu1 %v1940_v40  ;;  %vm1902_vm13 = vcmp.ge.f32.partialorder %v1882_v0, 0.0  ;;  %v2138_v40 = vpop.trf.xlu1 }
 0x575   :  { %v1916_v20 = vmul.f32 0.1, %v1874_v18  ;;  %v1877_v33 = vadd.f32 %v5304_v53, %v1876_v62  ;;  %3784 = vmatmul.mubr.bf16.gmra.mrb[56].mxu1 %v1941_v10  ;;  %vm1900_vm14 = vcmp.ge.f32.partialorder %v1874_v18, 0.0  ;;  %v4035_v10 = vld [vmem:[#allocation7 + $0x110] sm:$0xff]  }
 0x576   :  { %vm1903_vm5 = vcmp.ge.f32.partialorder %v1885_v39, 0.0  ;;  %v1919_v6 = vmul.f32 0.1, %v1885_v39  ;;  %v1934_v27 = vsel %vm1902_vm13, %v1882_v0, %v1918_v57  ;;  %v2125_v59 = vpop.trf.xlu0  ;;  %v4036_v0 = vld [vmem:[#allocation7 + $0x118] sm:$0xff]   ;;  %v4038_v57 = vld [vmem:[#allocation7 + $0x128] sm:$0xff]   ;;  %v4039_v62 = vld [vmem:[#allocation7 + $0x130] sm:$0xff]  }
 0x577   :  { %vm1901_vm2 = vcmp.ge.f32.partialorder %v1877_v33, 0.0  ;;  %v1917_v5 = vmul.f32 0.1, %v1877_v33  ;;  %v1932_v48 = vsel %vm1900_vm14, %v1874_v18, %v1916_v20  ;;  %v4037_v18 = vld [vmem:[#allocation7 + $0x120] sm:$0xff]  }
 0x578   :  { %v1935_v31 = vsel %vm1903_vm5, %v1885_v39, %v1919_v6  ;;  %v2139_v39 = vpop.trf.xlu1  ;;  %v4040_v6 = vld [vmem:[#allocation7 + $0x138] sm:$0xff]  }
 0x579   :  { %v1933_v29 = vsel %vm1901_vm2, %v1877_v33, %v1917_v5  ;;  %v1943_v55 = vpack.c.bf16 %v1935_v31, %v1934_v27 }
 0x57a   :  { %v1942_v54 = vpack.c.bf16 %v1933_v29, %v1932_v48  ;;  %v2126_v2 = vpop.trf.xlu0 }
 0x57c   :  { %3787 = vmatprep.mubr.bf16.mxu1 %v1942_v54  ;;  %v2140_v33 = vpop.trf.xlu1  ;;  %v5693_v54 = vpack.c.bf16 %v5021_v61, %v5019_v38  ;;  %v5700_v61 = vld [vmem:[#allocation20_spill] sm:$0xff] }
 0x57d   :  { %3788 = vmatmul.mubr.bf16.gmra.mrb[60].mxu1 %v1943_v55  ;;  %v5692_v55 = vpack.c.bf16 %v5031_v36, %v5029_v12  ;;  %v5697_v12 = vpack.c.bf16 %v5065_v26, %v5062_v14  ;;  %v5698_v36 = vld [vmem:[#allocation18_spill] sm:$0xff]  ;;  %v5712_v26 = vld [vmem:[#allocation28_spill] sm:$0xff] }
 0x57e   :  { %v2127_v30 = vpop.trf.xlu0  ;;  %v5699_v38 = vpack.c.bf16 %v5073_v60, %v5698_v36 }
 0x580   :  { %v2141_v5 = vpop.trf.xlu1 }
 0x582   :  { %v2128_v8 = vpop.trf.xlu0 }
 0x584   :  { %v2142_v27 = vpop.trf.xlu1 }
 0x586   :  { %v2129_v20 = vpop.trf.xlu0 }
 0x588   :  { %v2143_v31 = vpop.trf.xlu1 }
 0x58c   :  { %v2144_v48 = vpop.trf.xlu1 }
 0x590   :  { %v2145_v29 = vpop.trf.xlu1 }
 0x638   :  { %v3777_v44 = vpop.f32.mrb[48].mxu1 }
 0x639   :  { %v2043_v47 = vpop.f32.mrb[49].mxu1 }
 0x63a   :  { %v3778_v35 = vpop.f32.mrb[50].mxu1 }
 0x63b   :  { %v2107_v53 = vpack.c.bf16 %v3778_v35, %v3777_v44  ;;  %v2046_v34 = vpop.f32.mrb[51].mxu1  ;;  %v5695_v44 = vpack.c.bf16 %v5049_v16, %v5046_v43  ;;  %v5701_v35 = vld [vmem:[#allocation19_spill] sm:$0xff]  ;;  %v5706_v16 = vld [vmem:[#allocation24_spill] sm:$0xff] }
 0x63c   :  { %v2106_v56 = vpack.c.bf16 %v2046_v34, %v2043_v47  ;;  %v5696_v47 = vpack.c.bf16 %v5057_v1, %v5055_v24  ;;  %v5702_v9 = vpack.c.bf16 %v5700_v61, %v5701_v35  ;;  %v5707_v34 = vld [vmem:[#allocation23_spill] sm:$0xff]  ;;  %v5709_v1 = vld [vmem:[#allocation26_spill] sm:$0xff] }
 0x63d   :  { %v5708_v24 = vpack.c.bf16 %v5706_v16, %v5707_v34 }
 0x63e   :  { %3791 = vmatprep.subr.bf16.mxu0 %v2106_v56 }
 0x63f   :  { %3792 = vmatpush3.bf16.msra.mxu0 %v2106_v56  ;;  %v5710_v56 = vld [vmem:[#allocation25_spill] sm:$0xff] }
 0x640   :  { %v3781_v52 = vpop.f32.mrb[52].mxu1  ;;  %3793 = vmatprep.subr.bf16.mxu0 %v2107_v53  ;;  %v5711_v14 = vpack.c.bf16 %v5709_v1, %v5710_v56 }
 0x641   :  { %v2059_v28 = vpop.f32.mrb[53].mxu1 }
 0x642   :  { %v3782_v37 = vpop.f32.mrb[54].mxu1 }
 0x643   :  { %v2109_v41 = vpack.c.bf16 %v3782_v37, %v3781_v52  ;;  %v2062_v21 = vpop.f32.mrb[55].mxu1  ;;  %3794 = vmatpush3.bf16.msra.mxu0 %v2107_v53  ;;  %v5704_v53 = vld [vmem:[#allocation21_spill] sm:$0xff]  ;;  %v5713_v52 = vld [vmem:[#allocation27_spill] sm:$0xff] }
 0x644   :  { %v2108_v22 = vpack.c.bf16 %v2062_v21, %v2059_v28  ;;  %v5705_v43 = vpack.c.bf16 %v5703_v17, %v5704_v53  ;;  %v5714_v60 = vpack.c.bf16 %v5712_v26, %v5713_v52  ;;  %v5715_v28 = vld [vmem:[#allocation30_spill] sm:$0xff]  ;;  %v5716_v37 = vld [vmem:[#allocation29_spill] sm:$0xff]  ;;  %v5718_v21 = vld [vmem:[#allocation32_spill] sm:$0xff] }
 0x646   :  { %3795 = vmatprep.subr.bf16.mxu0 %v2108_v22 }
 0x647   :  { %3796 = vmatpush3.bf16.msra.mxu0 %v2108_v22  ;;  %v5719_v22 = vld [vmem:[#allocation31_spill] sm:$0xff] }
 0x648   :  { %v3785_v49 = vpop.f32.mrb[56].mxu1  ;;  %3797 = vmatprep.subr.bf16.mxu0 %v2109_v41 }
 0x649   :  { %v2075_v19 = vpop.f32.mrb[57].mxu1 }
 0x64a   :  { %v3786_v51 = vpop.f32.mrb[58].mxu1 }
 0x64b   :  { %v2111_v42 = vpack.c.bf16 %v3786_v51, %v3785_v49  ;;  %v2078_v3 = vpop.f32.mrb[59].mxu1  ;;  %3798 = vmatpush3.bf16.msra.mxu0 %v2109_v41  ;;  %v5717_v41 = vpack.c.bf16 %v5715_v28, %v5716_v37  ;;  %v5720_v49 = vpack.c.bf16 %v5718_v21, %v5719_v22  ;;  %v5722_v51 = vld [vmem:[#allocation33_spill] sm:$0xff] }
 0x64c   :  { %v2110_v7 = vpack.c.bf16 %v2078_v3, %v2075_v19  ;;  %v5721_v19 = vld [vmem:[#allocation34_spill] sm:$0xff]  ;;  %v5724_v3 = vld [vmem:[#allocation36_spill] sm:$0xff] }
 0x64e   :  { %3799 = vmatprep.subr.bf16.mxu0 %v2110_v7 }
 0x64f   :  { %3800 = vmatpush3.bf16.msra.mxu0 %v2110_v7  ;;  %v5725_v7 = vld [vmem:[#allocation35_spill] sm:$0xff] }
 0x650   :  { %v3789_v13 = vpop.f32.mrb[60].mxu1  ;;  %3801 = vmatprep.subr.bf16.mxu0 %v2111_v42 }
 0x651   :  { %v2091_v25 = vpop.f32.mrb[61].mxu1 }
 0x652   :  { %v3790_v4 = vpop.f32.mrb[62].mxu1 }
 0x653   :  { %v2113_v45 = vpack.c.bf16 %v3790_v4, %v3789_v13  ;;  %v2094_v46 = vpop.f32.mrb[63].mxu1  ;;  %3802 = vmatpush3.bf16.msra.mxu0 %v2111_v42  ;;  %v5723_v42 = vpack.c.bf16 %v5721_v19, %v5722_v51  ;;  %v4043_v13 = vld [vmem:[#allocation5 + $0x4] ss:$8 sps:$4 sm:$0xff]  }
 0x654   :  { %v2112_v15 = vpack.c.bf16 %v2094_v46, %v2091_v25  ;;  %2814 = vmatprep.mubr.bf16.mxu1 %v4043_v13  ;;  %v5373_v25 = vld [vmem:[%s5579_s4 + $0x4] ss:$0 sm:$0xff] }
 0x656   :  { %3803 = vmatprep.subr.bf16.mxu0 %v2112_v15 }
 0x657   :  { %3804 = vmatpush3.bf16.msra.mxu0 %v2112_v15 }
 0x658   :  { %3805 = vmatprep.subr.bf16.mxu0 %v2113_v45 }
 0x65b   :  { %3806 = vmatpush3.bf16.msra.mxu0 %v2113_v45 }
 0x65c   :  { %3839 = vmatprep.subr.bf16.mxu0 %v4033_v58 }
 0x65e   :  { %3808 = vmatmul.mubr.bf16.vlgmr.msra.gmra.mrb[64].mxu0 %v2123_v32  ;;  %v5726_v32 = vpack.c.bf16 %v5724_v3, %v5725_v7 }
 0x65f   :  { %3840 = vmatpush3.bf16.msra.mxu0 %v4033_v58  ;;  %3811 = vmatprep.mubr.bf16.mxu0 %v2124_v50 }
 0x660   :  { %3841 = vmatprep.subr.bf16.mxu0 %v4034_v63 }
 0x663   :  { %3842 = vmatpush3.bf16.msra.mxu0 %v4034_v63 }
 0x664   :  { %3843 = vmatprep.subr.bf16.mxu0 %v4035_v10 }
 0x666   :  { %3812 = vmatmul.mubr.bf16.gmra.mrb[68].mxu0 %v2125_v59 }
 0x667   :  { %3815 = vmatprep.mubr.bf16.mxu0 %v2126_v2  ;;  %3844 = vmatpush3.bf16.msra.mxu0 %v4035_v10 }
 0x668   :  { %3845 = vmatprep.subr.bf16.mxu0 %v4036_v0 }
 0x66b   :  { %3846 = vmatpush3.bf16.msra.mxu0 %v4036_v0 }
 0x66c   :  { %3847 = vmatprep.subr.bf16.mxu0 %v4037_v18 }
 0x66e   :  { %3816 = vmatmul.mubr.bf16.gmra.mrb[72].mxu0 %v2127_v30 }
 0x66f   :  { %3819 = vmatprep.mubr.bf16.mxu0 %v2128_v8  ;;  %3848 = vmatpush3.bf16.msra.mxu0 %v4037_v18 }
 0x670   :  { %3849 = vmatprep.subr.bf16.mxu0 %v4038_v57 }
 0x673   :  { %3850 = vmatpush3.bf16.msra.mxu0 %v4038_v57 }
 0x674   :  { %3851 = vmatprep.subr.bf16.mxu0 %v4039_v62 }
 0x676   :  { %3820 = vmatmul.mubr.bf16.gmra.mrb[76].mxu0 %v2129_v20 }
 0x677   :  { %3823 = vmatprep.mubr.bf16.mxu0 %v2138_v40  ;;  %3852 = vmatpush3.bf16.msra.mxu0 %v4039_v62 }
 0x678   :  { %3853 = vmatprep.subr.bf16.mxu0 %v4040_v6 }
 0x67b   :  { %3854 = vmatpush3.bf16.msra.mxu0 %v4040_v6 }
 0x67e   :  { %3824 = vmatmul.mubr.bf16.gmra.mrb[80].mxu0 %v2139_v39 }
 0x67f   :  { %3827 = vmatprep.mubr.bf16.mxu0 %v2140_v33 }
 0x686   :  { %3828 = vmatmul.mubr.bf16.gmra.mrb[84].mxu0 %v2141_v5 }
 0x687   :  { %3831 = vmatprep.mubr.bf16.mxu0 %v2142_v27 }
 0x68e   :  { %3832 = vmatmul.mubr.bf16.gmra.mrb[88].mxu0 %v2143_v31 }
 0x68f   :  { %3835 = vmatprep.mubr.bf16.mxu0 %v2144_v48 }
 0x696   :  { %3836 = vmatmul.mubr.bf16.gmra.mrb[92].mxu0 %v2145_v29 }
 0x697   :  { %3855 = vmatprep.mubr.bf16.mxu0 %v5692_v55 }
 0x69e   :  { %3856 = vmatmul.mubr.bf16.vlgmr.msra.gmra.mrb[64].mxu0 %v5693_v54 }
 0x69f   :  { %3859 = vmatprep.mubr.bf16.mxu0 %v5694_v11 }
 0x6a6   :  { %3860 = vmatmul.mubr.bf16.gmra.mrb[68].mxu0 %v5695_v44 }
 0x6a7   :  { %3863 = vmatprep.mubr.bf16.mxu0 %v5696_v47 }
 0x6ae   :  { %3864 = vmatmul.mubr.bf16.gmra.mrb[72].mxu0 %v5697_v12 }
 0x6af   :  { %3867 = vmatprep.mubr.bf16.mxu0 %v5699_v38 }
 0x6b6   :  { %3868 = vmatmul.mubr.bf16.gmra.mrb[76].mxu0 %v5702_v9 }
 0x6b7   :  { %3871 = vmatprep.mubr.bf16.mxu0 %v5705_v43 }
 0x6be   :  { %3872 = vmatmul.mubr.bf16.gmra.mrb[80].mxu0 %v5708_v24 }
 0x6bf   :  { %3875 = vmatprep.mubr.bf16.mxu0 %v5711_v14 }
 0x6c6   :  { %3876 = vmatmul.mubr.bf16.gmra.mrb[84].mxu0 %v5714_v60 }
 0x6c7   :  { %3879 = vmatprep.mubr.bf16.mxu0 %v5717_v41 }
 0x6ce   :  { %3880 = vmatmul.mubr.bf16.gmra.mrb[88].mxu0 %v5720_v49 }
 0x6cf   :  { %3883 = vmatprep.mubr.bf16.mxu0 %v5723_v42 }
 0x6d6   :  { %3884 = vmatmul.mubr.bf16.gmra.mrb[92].mxu0 %v5726_v32 }
 0x771   :  { %v3857_v4 = vpop.f32.mrb[64].mxu0 }
 0x772   :  { %v2556_v45 = vadd.f32 %v3857_v4, %v5373_v25  ;;  %v2422_v46 = vpop.f32.mrb[65].mxu0 }
 0x773   :  { %v2554_v15 = vadd.f32 %v5373_v25, %v2422_v46  ;;  %v3858_v50 = vpop.f32.mrb[66].mxu0 }
 0x774   :  { %v2620_v58 = vmul.f32 0.1, %v2556_v45  ;;  %v2557_v59 = vadd.f32 %v3858_v50, %v5373_v25  ;;  %v2425_v63 = vpop.f32.mrb[67].mxu0  ;;  %vm2588_vm1 = vcmp.ge.f32.partialorder %v2556_v45, 0.0 }
 0x775   :  { %v2618_v2 = vmul.f32 0.1, %v2554_v15  ;;  %v2555_v10 = vadd.f32 %v5373_v25, %v2425_v63  ;;  %vm2586_vm3 = vcmp.ge.f32.partialorder %v2554_v15, 0.0 }
 0x776   :  { %vm2589_vm0 = vcmp.ge.f32.partialorder %v2557_v59, 0.0  ;;  %v2621_v0 = vmul.f32 0.1, %v2557_v59  ;;  %v5379_v40 = vsel %vm2588_vm1, %v2556_v45, %v2620_v58 }
 0x777   :  { %vm2587_vm7 = vcmp.ge.f32.partialorder %v2555_v10, 0.0  ;;  %v2619_v30 = vmul.f32 0.1, %v2555_v10  ;;  %v5383_v8 = vsel %vm2586_vm3, %v2554_v15, %v2618_v2 }
 0x778   :  { %v5381_v18 = vsel %vm2589_vm0, %v2557_v59, %v2621_v0 }
 0x779   :  { %v2697_v57 = vpack.c.bf16 %v5381_v18, %v5379_v40  ;;  %v5387_v39 = vsel %vm2587_vm7, %v2555_v10, %v2619_v30  ;;  %v3861_v62 = vpop.f32.mrb[68].mxu0 }
 0x77a   :  { %v2696_v20 = vpack.c.bf16 %v5387_v39, %v5383_v8  ;;  %v2560_v33 = vadd.f32 %v3861_v62, %v5373_v25  ;;  %v2438_v6 = vpop.f32.mrb[69].mxu0 }
 0x77b   :  { %v2558_v5 = vadd.f32 %v5373_v25, %v2438_v6  ;;  %v3862_v27 = vpop.f32.mrb[70].mxu0 }
 0x77c   :  { %v2624_v31 = vmul.f32 0.1, %v2560_v33  ;;  %v2561_v48 = vadd.f32 %v3862_v27, %v5373_v25  ;;  %v2441_v29 = vpop.f32.mrb[71].mxu0  ;;  %vm2592_vm15 = vcmp.ge.f32.partialorder %v2560_v33, 0.0 }
 0x77d   :  { %v2622_v55 = vmul.f32 0.1, %v2558_v5  ;;  %v2559_v54 = vadd.f32 %v5373_v25, %v2441_v29  ;;  %vm2590_vm8 = vcmp.ge.f32.partialorder %v2558_v5, 0.0 }
 0x77e   :  { %vm2593_vm9 = vcmp.ge.f32.partialorder %v2561_v48, 0.0  ;;  %v2625_v11 = vmul.f32 0.1, %v2561_v48  ;;  %v5395_v47 = vsel %vm2592_vm15, %v2560_v33, %v2624_v31 }
 0x77f   :  { %vm2591_vm6 = vcmp.ge.f32.partialorder %v2559_v54, 0.0  ;;  %v2623_v44 = vmul.f32 0.1, %v2559_v54  ;;  %v5399_v36 = vsel %vm2590_vm8, %v2558_v5, %v2622_v55 }
 0x780   :  { %v5397_v12 = vsel %vm2593_vm9, %v2561_v48, %v2625_v11 }
 0x781   :  { %v2699_v38 = vpack.c.bf16 %v5397_v12, %v5395_v47  ;;  %v5403_v61 = vsel %vm2591_vm6, %v2559_v54, %v2623_v44  ;;  %v3865_v35 = vpop.f32.mrb[72].mxu0 }
 0x782   :  { %v2698_v9 = vpack.c.bf16 %v5403_v61, %v5399_v36  ;;  %v2564_v17 = vadd.f32 %v3865_v35, %v5373_v25  ;;  %v2454_v53 = vpop.f32.mrb[73].mxu0 }
 0x783   :  { %v2562_v43 = vadd.f32 %v5373_v25, %v2454_v53  ;;  %v3866_v16 = vpop.f32.mrb[74].mxu0 }
 0x784   :  { %v2628_v34 = vmul.f32 0.1, %v2564_v17  ;;  %v2565_v24 = vadd.f32 %v3866_v16, %v5373_v25  ;;  %v2457_v1 = vpop.f32.mrb[75].mxu0  ;;  %vm2596_vm10 = vcmp.ge.f32.partialorder %v2564_v17, 0.0 }
 0x785   :  { %v2626_v56 = vmul.f32 0.1, %v2562_v43  ;;  %v2563_v14 = vadd.f32 %v5373_v25, %v2457_v1  ;;  %vm2594_vm11 = vcmp.ge.f32.partialorder %v2562_v43, 0.0 }
 0x786   :  { %vm2597_vm4 = vcmp.ge.f32.partialorder %v2565_v24, 0.0  ;;  %v2629_v26 = vmul.f32 0.1, %v2565_v24  ;;  %v5411_v60 = vsel %vm2596_vm10, %v2564_v17, %v2628_v34 }
 0x787   :  { %vm2595_vm12 = vcmp.ge.f32.partialorder %v2563_v14, 0.0  ;;  %v2627_v52 = vmul.f32 0.1, %v2563_v14  ;;  %v5415_v37 = vsel %vm2594_vm11, %v2562_v43, %v2626_v56 }
 0x788   :  { %v5413_v28 = vsel %vm2597_vm4, %v2565_v24, %v2629_v26 }
 0x789   :  { %v2701_v41 = vpack.c.bf16 %v5413_v28, %v5411_v60  ;;  %v5419_v21 = vsel %vm2595_vm12, %v2563_v14, %v2627_v52  ;;  %v3869_v22 = vpop.f32.mrb[76].mxu0  ;;  %v4046_v60 = vld [vmem:[#allocation5 + $0x10] ss:$8 sps:$4 sm:$0xff]   ;;  %v4047_v28 = vld [vmem:[#allocation5 + $0x24] ss:$8 sps:$4 sm:$0xff]  }
 0x78a   :  { %v2700_v49 = vpack.c.bf16 %v5419_v21, %v5415_v37  ;;  %v2568_v19 = vadd.f32 %v3869_v22, %v5373_v25  ;;  %v2470_v51 = vpop.f32.mrb[77].mxu0  ;;  %v4041_v37 = vld [vmem:[#allocation5] ss:$8 sps:$4 sm:$0xff]   ;;  %v4044_v21 = vld [vmem:[#allocation5 + $0x14] ss:$8 sps:$4 sm:$0xff]  }
 0x78b   :  { %v2566_v42 = vadd.f32 %v5373_v25, %v2470_v51  ;;  %v3870_v3 = vpop.f32.mrb[78].mxu0 }
 0x78c   :  { %v2632_v7 = vmul.f32 0.1, %v2568_v19  ;;  %v2569_v32 = vadd.f32 %v3870_v3, %v5373_v25  ;;  %v2473_v13 = vpop.f32.mrb[79].mxu0  ;;  %vm2600_vm13 = vcmp.ge.f32.partialorder %v2568_v19, 0.0 }
 0x78d   :  { %v2630_v4 = vmul.f32 0.1, %v2566_v42  ;;  %v2567_v45 = vadd.f32 %v5373_v25, %v2473_v13  ;;  %vm2598_vm14 = vcmp.ge.f32.partialorder %v2566_v42, 0.0 }
 0x78e   :  { %vm2601_vm5 = vcmp.ge.f32.partialorder %v2569_v32, 0.0  ;;  %v2633_v46 = vmul.f32 0.1, %v2569_v32  ;;  %v5427_v50 = vsel %vm2600_vm13, %v2568_v19, %v2632_v7 }
 0x78f   :  { %vm2599_vm2 = vcmp.ge.f32.partialorder %v2567_v45, 0.0  ;;  %v2631_v15 = vmul.f32 0.1, %v2567_v45  ;;  %v5431_v59 = vsel %vm2598_vm14, %v2566_v42, %v2630_v4 }
 0x790   :  { %v5429_v58 = vsel %vm2601_vm5, %v2569_v32, %v2633_v46 }
 0x791   :  { %v2703_v63 = vpack.c.bf16 %v5429_v58, %v5427_v50  ;;  %v5435_v2 = vsel %vm2599_vm2, %v2567_v45, %v2631_v15  ;;  %v3873_v10 = vpop.f32.mrb[80].mxu0  ;;  %v4056_v50 = vld [vmem:[#allocation5 + $0x54] ss:$8 sps:$4 sm:$0xff]   ;;  %v4058_v58 = vld [vmem:[#allocation5 + $0x50] ss:$8 sps:$4 sm:$0xff]  }
 0x792   :  { %v2702_v0 = vpack.c.bf16 %v5435_v2, %v5431_v59  ;;  %v2572_v30 = vadd.f32 %v3873_v10, %v5373_v25  ;;  %v2486_v62 = vpop.f32.mrb[81].mxu0  ;;  %v4052_v59 = vld [vmem:[#allocation5 + $0x30] ss:$8 sps:$4 sm:$0xff]   ;;  %v4053_v2 = vld [vmem:[#allocation5 + $0x44] ss:$8 sps:$4 sm:$0xff]  }
 0x793   :  { %v2570_v33 = vadd.f32 %v5373_v25, %v2486_v62  ;;  %v3874_v6 = vpop.f32.mrb[82].mxu0 }
 0x794   :  { %v2636_v5 = vmul.f32 0.1, %v2572_v30  ;;  %v2573_v27 = vadd.f32 %v3874_v6, %v5373_v25  ;;  %v2489_v31 = vpop.f32.mrb[83].mxu0  ;;  %vm2604_vm1 = vcmp.ge.f32.partialorder %v2572_v30, 0.0 }
 0x795   :  { %v2634_v48 = vmul.f32 0.1, %v2570_v33  ;;  %v2571_v29 = vadd.f32 %v5373_v25, %v2489_v31  ;;  %vm2602_vm3 = vcmp.ge.f32.partialorder %v2570_v33, 0.0 }
 0x796   :  { %vm2605_vm0 = vcmp.ge.f32.partialorder %v2573_v27, 0.0  ;;  %v2637_v55 = vmul.f32 0.1, %v2573_v27  ;;  %v2668_v11 = vsel %vm2604_vm1, %v2572_v30, %v2636_v5  ;;  %vm4243_vm1 = vmmov 0  }
 0x797   :  { %vm2603_vm7 = vcmp.ge.f32.partialorder %v2571_v29, 0.0  ;;  %v2635_v54 = vmul.f32 0.1, %v2571_v29  ;;  %v2666_v17 = vsel %vm2602_vm3, %v2570_v33, %v2634_v48 }
 0x798   :  { %v2669_v44 = vsel %vm2605_vm0, %v2573_v27, %v2637_v55 }
 0x799   :  { %v3877_v35 = vpop.f32.mrb[84].mxu0  ;;  %v2667_v53 = vsel %vm2603_vm7, %v2571_v29, %v2635_v54  ;;  %v2705_v43 = vpack.c.bf16 %v2669_v44, %v2668_v11 }
 0x79a   :  { %v2576_v16 = vadd.f32 %v3877_v35, %v5373_v25  ;;  %v2502_v34 = vpop.f32.mrb[85].mxu0  ;;  %v2704_v24 = vpack.c.bf16 %v2667_v53, %v2666_v17 }
 0x79b   :  { %v2574_v1 = vadd.f32 %v5373_v25, %v2502_v34  ;;  %v3878_v56 = vpop.f32.mrb[86].mxu0 }
 0x79c   :  { %v2640_v14 = vmul.f32 0.1, %v2576_v16  ;;  %v2577_v26 = vadd.f32 %v3878_v56, %v5373_v25  ;;  %v2505_v52 = vpop.f32.mrb[87].mxu0  ;;  %3542 = vmatprep.subr.bf16.mxu1 %v2704_v24  ;;  %vm2608_vm15 = vcmp.ge.f32.partialorder %v2576_v16, 0.0  ;;  %v4062_v56 = vld [vmem:[#allocation7 + $0x180] sm:$0xff]  }
 0x79d   :  { %v2638_v22 = vmul.f32 0.1, %v2574_v1  ;;  %v2575_v19 = vadd.f32 %v5373_v25, %v2505_v52  ;;  %3543 = vmatpush3.bf16.msra.mxu1 %v2696_v20  ;;  %vm2606_vm8 = vcmp.ge.f32.partialorder %v2574_v1, 0.0  ;;  %v4065_v52 = vld [vmem:[#allocation7 + $0x198] sm:$0xff]  }
 0x79e   :  { %vm2609_vm9 = vcmp.ge.f32.partialorder %v2577_v26, 0.0  ;;  %v2641_v51 = vmul.f32 0.1, %v2577_v26  ;;  %3544 = vmatprep.subr.bf16.mxu1 %v2705_v43  ;;  %v2672_v3 = vsel %vm2608_vm15, %v2576_v16, %v2640_v14  ;;  %v4063_v14 = vld [vmem:[#allocation7 + $0x188] sm:$0xff]  }
 0x79f   :  { %vm2607_vm6 = vcmp.ge.f32.partialorder %v2575_v19, 0.0  ;;  %v2639_v42 = vmul.f32 0.1, %v2575_v19  ;;  %v2670_v13 = vsel %vm2606_vm8, %v2574_v1, %v2638_v22  ;;  %v4061_v1 = vld [vmem:[#allocation5 + $0x60] ss:$8 sps:$4 sm:$0xff]   ;;  %v4066_v22 = vld [vmem:[#allocation7 + $0x1a0] sm:$0xff]  }
 0x7a0   :  { %v2673_v7 = vsel %vm2609_vm9, %v2577_v26, %v2641_v51  ;;  %v4064_v26 = vld [vmem:[#allocation7 + $0x190] sm:$0xff]  }
 0x7a1   :  { %v3881_v32 = vpop.f32.mrb[88].mxu0  ;;  %3545 = vmatpush3.bf16.msra.mxu1 %v2697_v57  ;;  %v2671_v4 = vsel %vm2607_vm6, %v2575_v19, %v2639_v42  ;;  %v2707_v45 = vpack.c.bf16 %v2673_v7, %v2672_v3  ;;  %v4067_v19 = vld [vmem:[#allocation7 + $0x1a8] sm:$0xff]  }
 0x7a2   :  { %v2580_v46 = vadd.f32 %v3881_v32, %v5373_v25  ;;  %v2518_v8 = vpop.f32.mrb[89].mxu0  ;;  %v2706_v39 = vpack.c.bf16 %v2671_v4, %v2670_v13 }
 0x7a3   :  { %v2578_v20 = vadd.f32 %v5373_v25, %v2518_v8  ;;  %v3882_v15 = vpop.f32.mrb[90].mxu0 }
 0x7a4   :  { %v2644_v10 = vmul.f32 0.1, %v2580_v46  ;;  %v2581_v30 = vadd.f32 %v3882_v15, %v5373_v25  ;;  %v2521_v62 = vpop.f32.mrb[91].mxu0  ;;  %3546 = vmatprep.subr.bf16.mxu1 %v2706_v39  ;;  %vm2612_vm10 = vcmp.ge.f32.partialorder %v2580_v46, 0.0 }
 0x7a5   :  { %v2642_v33 = vmul.f32 0.1, %v2578_v20  ;;  %v2579_v40 = vadd.f32 %v5373_v25, %v2521_v62  ;;  %3547 = vmatpush3.bf16.msra.mxu1 %v2698_v9  ;;  %vm2610_vm11 = vcmp.ge.f32.partialorder %v2578_v20, 0.0 }
 0x7a6   :  { %vm2613_vm4 = vcmp.ge.f32.partialorder %v2581_v30, 0.0  ;;  %v2645_v18 = vmul.f32 0.1, %v2581_v30  ;;  %3548 = vmatprep.subr.bf16.mxu1 %v2707_v45  ;;  %v2676_v6 = vsel %vm2612_vm10, %v2580_v46, %v2644_v10 }
 0x7a7   :  { %vm2611_vm12 = vcmp.ge.f32.partialorder %v2579_v40, 0.0  ;;  %v2643_v57 = vmul.f32 0.1, %v2579_v40  ;;  %v2674_v31 = vsel %vm2610_vm11, %v2578_v20, %v2642_v33 }
 0x7a8   :  { %v2677_v5 = vsel %vm2613_vm4, %v2581_v30, %v2645_v18 }
 0x7a9   :  { %v3885_v27 = vpop.f32.mrb[92].mxu0  ;;  %3549 = vmatpush3.bf16.msra.mxu1 %v2699_v38  ;;  %v2675_v48 = vsel %vm2611_vm12, %v2579_v40, %v2643_v57  ;;  %v2709_v29 = vpack.c.bf16 %v2677_v5, %v2676_v6  ;;  %v4068_v5 = vld [vmem:[#allocation7 + $0x1b0] sm:$0xff]  }
 0x7aa   :  { %v2584_v55 = vadd.f32 %v3885_v27, %v5373_v25  ;;  %v2534_v36 = vpop.f32.mrb[93].mxu0  ;;  %v2708_v61 = vpack.c.bf16 %v2675_v48, %v2674_v31  ;;  %v4069_v48 = vld [vmem:[#allocation7 + $0x1b8] sm:$0xff]  }
 0x7ab   :  { %v2582_v9 = vadd.f32 %v5373_v25, %v2534_v36  ;;  %v3886_v54 = vpop.f32.mrb[94].mxu0 }
 0x7ac   :  { %v2648_v11 = vmul.f32 0.1, %v2584_v55  ;;  %v2585_v44 = vadd.f32 %v3886_v54, %v5373_v25  ;;  %v2537_v35 = vpop.f32.mrb[95].mxu0  ;;  %3550 = vmatprep.subr.bf16.mxu1 %v2708_v61  ;;  %vm2616_vm13 = vcmp.ge.f32.partialorder %v2584_v55, 0.0 }
 0x7ad   :  { %v2646_v17 = vmul.f32 0.1, %v2582_v9  ;;  %v2583_v47 = vadd.f32 %v5373_v25, %v2537_v35  ;;  %3551 = vmatpush3.bf16.msra.mxu1 %v2700_v49  ;;  %vm2614_vm14 = vcmp.ge.f32.partialorder %v2582_v9, 0.0  ;;  %v4050_v49 = vld [vmem:[#allocation5 + $0x34] ss:$8 sps:$4 sm:$0xff]  }
 0x7ae   :  { %vm2617_vm5 = vcmp.ge.f32.partialorder %v2585_v44, 0.0  ;;  %v2649_v12 = vmul.f32 0.1, %v2585_v44  ;;  %3552 = vmatprep.subr.bf16.mxu1 %v2709_v29  ;;  %v2680_v53 = vsel %vm2616_vm13, %v2584_v55, %v2648_v11 }
 0x7af   :  { %vm2615_vm2 = vcmp.ge.f32.partialorder %v2583_v47, 0.0  ;;  %v2647_v38 = vmul.f32 0.1, %v2583_v47  ;;  %v2678_v16 = vsel %vm2614_vm14, %v2582_v9, %v2646_v17 }
 0x7b0   :  { %v2681_v43 = vsel %vm2617_vm5, %v2585_v44, %v2649_v12 }
 0x7b1   :  { %3553 = vmatpush3.bf16.msra.mxu1 %v2701_v41  ;;  %v2679_v34 = vsel %vm2615_vm2, %v2583_v47, %v2647_v38  ;;  %v2711_v24 = vpack.c.bf16 %v2681_v43, %v2680_v53  ;;  %v4049_v41 = vld [vmem:[#allocation5 + $0x20] ss:$8 sps:$4 sm:$0xff]  }
 0x7b2   :  { %v2710_v25 = vpack.c.bf16 %v2679_v34, %v2678_v16 }
 0x7b4   :  { %3554 = vmatprep.subr.bf16.mxu1 %v2710_v25 }
 0x7b5   :  { %3555 = vmatpush3.bf16.msra.mxu1 %v2702_v0  ;;  %v4055_v0 = vld [vmem:[#allocation5 + $0x40] ss:$8 sps:$4 sm:$0xff]  }
 0x7b6   :  { %3556 = vmatprep.subr.bf16.mxu1 %v2711_v24 }
 0x7b9   :  { %3557 = vmatpush3.bf16.msra.mxu1 %v2703_v63  ;;  %v4059_v63 = vld [vmem:[#allocation5 + $0x64] ss:$8 sps:$4 sm:$0xff]  }
 0x7ba   :  { %3887 = vmatprep.subr.bf16.mxu1 %v5657_v23 }
 0x7bc   :  { %2815 = vmatmul.mubr.bf16.vlgmr.msra.gmra.mrb[64].mxu1 %v4041_v37 }
 0x7bd   :  { %2822 = vmatprep.mubr.bf16.mxu1 %v4044_v21  ;;  %3888 = vmatpush3.bf16.msra.mxu1 %v4062_v56 }
 0x7be   :  { %3889 = vmatprep.subr.bf16.mxu1 %v5657_v23 }
 0x7c1   :  { %3890 = vmatpush3.bf16.msra.mxu1 %v4063_v14 }
 0x7c2   :  { %3891 = vmatprep.subr.bf16.mxu1 %v5657_v23 }
 0x7c4   :  { %2823 = vmatmul.mubr.bf16.gmra.mrb[68].mxu1 %v4046_v60 }
 0x7c5   :  { %2830 = vmatprep.mubr.bf16.mxu1 %v4047_v28  ;;  %3892 = vmatpush3.bf16.msra.mxu1 %v4064_v26 }
 0x7c6   :  { %3893 = vmatprep.subr.bf16.mxu1 %v5657_v23 }
 0x7c9   :  { %3894 = vmatpush3.bf16.msra.mxu1 %v4065_v52 }
 0x7ca   :  { %3895 = vmatprep.subr.bf16.mxu1 %v5657_v23 }
 0x7cc   :  { %2831 = vmatmul.mubr.bf16.gmra.mrb[72].mxu1 %v4049_v41 }
 0x7cd   :  { %2838 = vmatprep.mubr.bf16.mxu1 %v4050_v49  ;;  %3896 = vmatpush3.bf16.msra.mxu1 %v4066_v22 }
 0x7ce   :  { %3897 = vmatprep.subr.bf16.mxu1 %v5657_v23 }
 0x7d1   :  { %3898 = vmatpush3.bf16.msra.mxu1 %v4067_v19 }
 0x7d2   :  { %3899 = vmatprep.subr.bf16.mxu1 %v5657_v23 }
 0x7d4   :  { %2839 = vmatmul.mubr.bf16.gmra.mrb[76].mxu1 %v4052_v59 }
 0x7d5   :  { %2846 = vmatprep.mubr.bf16.mxu1 %v4053_v2  ;;  %3900 = vmatpush3.bf16.msra.mxu1 %v4068_v5 }
 0x7d6   :  { %3901 = vmatprep.subr.bf16.mxu1 %v5657_v23 }
 0x7d9   :  { %3902 = vmatpush3.bf16.msra.mxu1 %v4069_v48 }
 0x7dc   :  { %2847 = vmatmul.mubr.bf16.gmra.mrb[80].mxu1 %v4055_v0 }
 0x7dd   :  { %2854 = vmatprep.mubr.bf16.mxu1 %v4056_v50 }
 0x7e4   :  { %2855 = vmatmul.mubr.bf16.gmra.mrb[84].mxu1 %v4058_v58 }
 0x7e5   :  { %2862 = vmatprep.mubr.bf16.mxu1 %v4059_v63 }
 0x7ec   :  { %2863 = vmatmul.mubr.bf16.gmra.mrb[88].mxu1 %v4061_v1 }
 0x7ed   :  { %3903 = vmatprep.mubr.msk.bf16.mxu1 %vm4243_vm1, %v5657_v23 }
 0x88f   :  { %v3558_v51 = vpop.f32.mrb[64].mxu1 }
 0x890   :  { %v3559_v42 = vpop.f32.mrb[65].mxu1 }
 0x891   :  { %v5486_v3 = vadd.f32 %v3559_v42, %v3558_v51  ;;  %v3561_v7 = vpop.f32.mrb[66].mxu1 }
 0x892   :  { %v3562_v32 = vpop.f32.mrb[67].mxu1 }
 0x893   :  { %v2871_v13 = vmax.f32 %v5486_v3, 1.0  ;;  %v5489_v4 = vadd.f32 %v3562_v32, %v3561_v7 }
 0x895   :  { %v2872_v45 = vmax.f32 %v5489_v4, 1.0  ;;  %2887 = vperm.xlu0 %3975, %v2871_v13  }
 0x897   :  { %v3564_v46 = vpop.f32.mrb[68].mxu1  ;;  %2892 = vperm.xlu1 %3976, %v2872_v45  }
 0x898   :  { %v3565_v8 = vpop.f32.mrb[69].mxu1 }
 0x899   :  { %v5492_v39 = vadd.f32 %v3565_v8, %v3564_v46  ;;  %v3567_v20 = vpop.f32.mrb[70].mxu1 }
 0x89a   :  { %v3568_v15 = vpop.f32.mrb[71].mxu1 }
 0x89b   :  { %v2873_v10 = vmax.f32 %v5492_v39, 1.0  ;;  %v5495_v30 = vadd.f32 %v3568_v15, %v3567_v20 }
 0x89d   :  { %v2874_v62 = vmax.f32 %v5495_v30, 1.0  ;;  %2897 = vperm.xlu0 %3975, %v2873_v10  }
 0x89f   :  { %v3570_v33 = vpop.f32.mrb[72].mxu1  ;;  %2902 = vperm.xlu1 %3976, %v2874_v62  }
 0x8a0   :  { %v3571_v40 = vpop.f32.mrb[73].mxu1 }
 0x8a1   :  { %v5498_v18 = vadd.f32 %v3571_v40, %v3570_v33  ;;  %v3573_v57 = vpop.f32.mrb[74].mxu1 }
 0x8a2   :  { %v3574_v6 = vpop.f32.mrb[75].mxu1 }
 0x8a3   :  { %v2875_v27 = vmax.f32 %v5498_v18, 1.0  ;;  %v5501_v31 = vadd.f32 %v3574_v6, %v3573_v57 }
 0x8a5   :  { %v2876_v29 = vmax.f32 %v5501_v31, 1.0  ;;  %2907 = vperm.xlu0 %3975, %v2875_v27  }
 0x8a7   :  { %v3576_v55 = vpop.f32.mrb[76].mxu1  ;;  %2912 = vperm.xlu1 %3976, %v2876_v29  }
 0x8a8   :  { %v3577_v36 = vpop.f32.mrb[77].mxu1 }
 0x8a9   :  { %v5507_v61 = vadd.f32 %v3577_v36, %v3576_v55  ;;  %v3579_v9 = vpop.f32.mrb[78].mxu1 }
 0x8aa   :  { %v3580_v54 = vpop.f32.mrb[79].mxu1 }
 0x8ab   :  { %v2877_v11 = vmax.f32 %v5507_v61, 1.0  ;;  %v5510_v44 = vadd.f32 %v3580_v54, %v3579_v9 }
 0x8ad   :  { %v2878_v35 = vmax.f32 %v5510_v44, 1.0  ;;  %2917 = vperm.xlu0 %3975, %v2877_v11  }
 0x8af   :  { %v3582_v17 = vpop.f32.mrb[80].mxu1  ;;  %2922 = vperm.xlu1 %3976, %v2878_v35  }
 0x8b0   :  { %v3583_v47 = vpop.f32.mrb[81].mxu1 }
 0x8b1   :  { %v5513_v12 = vadd.f32 %v3583_v47, %v3582_v17  ;;  %v3585_v38 = vpop.f32.mrb[82].mxu1 }
 0x8b2   :  { %v3586_v53 = vpop.f32.mrb[83].mxu1 }
 0x8b3   :  { %v2879_v43 = vmax.f32 %v5513_v12, 1.0  ;;  %v5516_v16 = vadd.f32 %v3586_v53, %v3585_v38 }
 0x8b5   :  { %v2880_v34 = vmax.f32 %v5516_v16, 1.0  ;;  %2927 = vperm.xlu0 %3975, %v2879_v43  }
 0x8b7   :  { %v3588_v24 = vpop.f32.mrb[84].mxu1  ;;  %2932 = vperm.xlu1 %3976, %v2880_v34  }
 0x8b8   :  { %v3589_v25 = vpop.f32.mrb[85].mxu1 }
 0x8b9   :  { %v5519_v37 = vadd.f32 %v3589_v25, %v3588_v24  ;;  %v3591_v21 = vpop.f32.mrb[86].mxu1 }
 0x8ba   :  { %v3592_v60 = vpop.f32.mrb[87].mxu1 }
 0x8bb   :  { %v2881_v28 = vmax.f32 %v5519_v37, 1.0  ;;  %v5522_v41 = vadd.f32 %v3592_v60, %v3591_v21  ;;  %v3333_v21 = vld [vmem:[%s5579_s4 + $0x5] ss:$0 sm:$0xff]  ;;  %s4244_s4 = smov [#allocation8]  }
 0x8bc   :  { %s3168_s9 = sshll.u32 %s4244_s4, 4  ;;  %s3169_s9 = int_to_ptr.vmem [resolvable:$true] %s3168_s9 }
 0x8bd   :  { %v2882_v49 = vmax.f32 %v5522_v41, 1.0  ;;  %2937 = vperm.xlu0 %3975, %v2881_v28   ;;  %s4205_s10 = scalar_lea.vmem %s3169_s9, 1792  ;;  %p4210_p11 = scmp.lt.s32.totalorder %s3169_s9, %s3169_s9 }
 0x8be   :  { %p4206_p10 = scmp.ne.s32.totalorder %s3169_s9, %s4205_s10  ;;  %p4211_p12 = scmp.lt.s32.totalorder %s4205_s10, %s4205_s10 }
 0x8bf   :  { %v3594_v59 = vpop.f32.mrb[88].mxu1  ;;  %2942 = vperm.xlu1 %3976, %v2882_v49  }
 0x8c0   :  { %v3595_v2 = vpop.f32.mrb[89].mxu1  ;;  %p4212_p13 = por %p4211_p12, %p4210_p11 }
 0x8c1   :  { %v5525_v0 = vadd.f32 %v3595_v2, %v3594_v59  ;;  %v3597_v50 = vpop.f32.mrb[90].mxu1 }
 0x8c2   :  { %v3598_v58 = vpop.f32.mrb[91].mxu1  ;;  %p4213_p0 = pnand %p4212_p13, %p4206_p10 }
 0x8c3   :  { %v2883_v63 = vmax.f32 %v5525_v0, 1.0  ;;  %v5528_v1 = vadd.f32 %v3598_v58, %v3597_v50 }
 0x8c5   :  { %v2884_v56 = vmax.f32 %v5528_v1, 1.0  ;;  %2947 = vperm.xlu0 %3975, %v2883_v63  }
 0x8c7   :  { %2952 = vperm.xlu1 %3976, %v2884_v56  }
 0x914   :  { %v2888_v14 = vpop.permute.xlu0 %2887 }
 0x915   :  { %4106 = vrcp.f32 %v2888_v14 }
 0x916   :  { %v2893_v26 = vpop.permute.xlu1 %2892 }
 0x917   :  { %4108 = vrcp.f32 %v2893_v26 }
 0x91c   :  { %v2898_v52 = vpop.permute.xlu0 %2897 }
 0x91d   :  { %4110 = vrcp.f32 %v2898_v52 }
 0x91e   :  { %v2903_v22 = vpop.permute.xlu1 %2902 }
 0x91f   :  { %v4107_v19 = vpop.eup %4106  ;;  %4112 = vrcp.f32 %v2903_v22 }
 0x920   :  { %v2956_v42 = vmul.f32 %v4107_v19, %v5486_v3 }
 0x921   :  { %v4109_v51 = vpop.eup %4108 }
 0x922   :  { %v2958_v7 = vmul.f32 %v4109_v51, %v5489_v4 }
 0x924   :  { %v2908_v32 = vpop.permute.xlu0 %2907  ;;  %v2983_v13 = vpack.c.bf16 %v2958_v7, %v2956_v42 }
 0x925   :  { %4114 = vrcp.f32 %v2908_v32 }
 0x926   :  { %v2913_v45 = vpop.permute.xlu1 %2912  ;;  %3904 = vmatmul.mubr.bf16.vlgmr.msra.gmra.mrb[92].mxu1 %v2983_v13 }
 0x927   :  { %v4111_v46 = vpop.eup %4110  ;;  %4116 = vrcp.f32 %v2913_v45  ;;  %3907 = vmatprep.mubr.msk.bf16.mxu1 %vm4243_vm1, %v5657_v23 }
 0x928   :  { %v2960_v20 = vmul.f32 %v4111_v46, %v5492_v39 }
 0x929   :  { %v4113_v8 = vpop.eup %4112 }
 0x92a   :  { %v2962_v15 = vmul.f32 %v4113_v8, %v5495_v30 }
 0x92c   :  { %v2918_v10 = vpop.permute.xlu0 %2917  ;;  %v2984_v62 = vpack.c.bf16 %v2962_v15, %v2960_v20 }
 0x92d   :  { %4118 = vrcp.f32 %v2918_v10 }
 0x92e   :  { %v2923_v3 = vpop.permute.xlu1 %2922  ;;  %3908 = vmatmul.mubr.bf16.gmra.mrb[96].mxu1 %v2984_v62 }
 0x92f   :  { %v4115_v4 = vpop.eup %4114  ;;  %4120 = vrcp.f32 %v2923_v3  ;;  %3911 = vmatprep.mubr.msk.bf16.mxu1 %vm4243_vm1, %v5657_v23 }
 0x930   :  { %v2964_v40 = vmul.f32 %v4115_v4, %v5498_v18 }
 0x931   :  { %v4117_v33 = vpop.eup %4116 }
 0x932   :  { %v2966_v57 = vmul.f32 %v4117_v33, %v5501_v31 }
 0x934   :  { %v2928_v6 = vpop.permute.xlu0 %2927  ;;  %v2985_v5 = vpack.c.bf16 %v2966_v57, %v2964_v40 }
 0x935   :  { %4122 = vrcp.f32 %v2928_v6 }
 0x936   :  { %v2933_v39 = vpop.permute.xlu1 %2932  ;;  %3912 = vmatmul.mubr.bf16.gmra.mrb[100].mxu1 %v2985_v5 }
 0x937   :  { %v4119_v30 = vpop.eup %4118  ;;  %4124 = vrcp.f32 %v2933_v39  ;;  %3915 = vmatprep.mubr.msk.bf16.mxu1 %vm4243_vm1, %v5657_v23 }
 0x938   :  { %v2968_v48 = vmul.f32 %v4119_v30, %v5507_v61 }
 0x939   :  { %v4121_v27 = vpop.eup %4120 }
 0x93a   :  { %v2970_v29 = vmul.f32 %v4121_v27, %v5510_v44 }
 0x93c   :  { %v2938_v55 = vpop.permute.xlu0 %2937  ;;  %v2986_v36 = vpack.c.bf16 %v2970_v29, %v2968_v48 }
 0x93d   :  { %4126 = vrcp.f32 %v2938_v55 }
 0x93e   :  { %v2943_v18 = vpop.permute.xlu1 %2942  ;;  %3916 = vmatmul.mubr.bf16.gmra.mrb[104].mxu1 %v2986_v36 }
 0x93f   :  { %v4123_v31 = vpop.eup %4122  ;;  %4128 = vrcp.f32 %v2943_v18  ;;  %3919 = vmatprep.mubr.msk.bf16.mxu1 %vm4243_vm1, %v5657_v23 }
 0x940   :  { %v2972_v54 = vmul.f32 %v4123_v31, %v5513_v12 }
 0x941   :  { %v4125_v9 = vpop.eup %4124 }
 0x942   :  { %v2974_v11 = vmul.f32 %v4125_v9, %v5516_v16 }
 0x944   :  { %v2948_v35 = vpop.permute.xlu0 %2947  ;;  %v2987_v17 = vpack.c.bf16 %v2974_v11, %v2972_v54 }
 0x945   :  { %4130 = vrcp.f32 %v2948_v35 }
 0x946   :  { %v2953_v61 = vpop.permute.xlu1 %2952  ;;  %3920 = vmatmul.mubr.bf16.gmra.mrb[108].mxu1 %v2987_v17 }
 0x947   :  { %v4127_v44 = vpop.eup %4126  ;;  %4132 = vrcp.f32 %v2953_v61  ;;  %3923 = vmatprep.mubr.msk.bf16.mxu1 %vm4243_vm1, %v5657_v23 }
 0x948   :  { %v2976_v38 = vmul.f32 %v4127_v44, %v5519_v37 }
 0x949   :  { %v4129_v47 = vpop.eup %4128 }
 0x94a   :  { %v2978_v53 = vmul.f32 %v4129_v47, %v5522_v41 }
 0x94c   :  { %v2988_v43 = vpack.c.bf16 %v2978_v53, %v2976_v38 }
 0x94e   :  { %3924 = vmatmul.mubr.bf16.gmra.mrb[112].mxu1 %v2988_v43 }
 0x94f   :  { %v4131_v12 = vpop.eup %4130  ;;  %3927 = vmatprep.mubr.msk.bf16.mxu1 %vm4243_vm1, %v5657_v23 }
 0x950   :  { %v2980_v34 = vmul.f32 %v4131_v12, %v5525_v0 }
 0x951   :  { %v4133_v16 = vpop.eup %4132 }
 0x952   :  { %v2982_v24 = vmul.f32 %v4133_v16, %v5528_v1 }
 0x954   :  { %v2989_v25 = vpack.c.bf16 %v2982_v24, %v2980_v34 }
 0x956   :  { %3928 = vmatmul.mubr.bf16.gmra.mrb[116].mxu1 %v2989_v25 }
 0x9f9   :  { %v3094_v37 = vpop.f32.mrb[92].mxu1 }
 0x9fa   :  { %v3095_v60 = vadd.f32 %v3333_v21, %v3094_v37  ;;  %v3905_v28 = vpop.f32.mrb[93].mxu1 }
 0x9fb   :  { %v3097_v41 = vpop.f32.mrb[94].mxu1 }
 0x9fc   :  { %3149 = vst [vmem:[#allocation8] sm:$0xff] %v3095_v60  ;;  %v3098_v49 = vadd.f32 %v3333_v21, %v3097_v41  ;;  %v3906_v59 = vpop.f32.mrb[95].mxu1 }
 0x9fe   :  { %3150 = vst [vmem:[#allocation8 + $0x8] sm:$0xff] %v3098_v49 }
 0xa01   :  { %v3102_v23 = vpop.f32.mrb[96].mxu1 }
 0xa02   :  { %v3103_v2 = vadd.f32 %v3333_v21, %v3102_v23  ;;  %v3909_v50 = vpop.f32.mrb[97].mxu1 }
 0xa03   :  { %v3105_v0 = vpop.f32.mrb[98].mxu1 }
 0xa04   :  { %3151 = vst [vmem:[#allocation8 + $0x10] sm:$0xff] %v3103_v2  ;;  %v3106_v58 = vadd.f32 %v3333_v21, %v3105_v0  ;;  %v3910_v63 = vpop.f32.mrb[99].mxu1 }
 0xa06   :  { %3152 = vst [vmem:[#allocation8 + $0x18] sm:$0xff] %v3106_v58 }
 0xa09   :  { %v3110_v1 = vpop.f32.mrb[100].mxu1 }
 0xa0a   :  { %v3111_v56 = vadd.f32 %v3333_v21, %v3110_v1  ;;  %v3913_v14 = vpop.f32.mrb[101].mxu1 }
 0xa0b   :  { %v3113_v26 = vpop.f32.mrb[102].mxu1 }
 0xa0c   :  { %3153 = vst [vmem:[#allocation8 + $0x20] sm:$0xff] %v3111_v56  ;;  %v3114_v52 = vadd.f32 %v3333_v21, %v3113_v26  ;;  %v3914_v22 = vpop.f32.mrb[103].mxu1 }
 0xa0e   :  { %3154 = vst [vmem:[#allocation8 + $0x28] sm:$0xff] %v3114_v52 }
 0xa11   :  { %v3118_v19 = vpop.f32.mrb[104].mxu1 }
 0xa12   :  { %v3119_v51 = vadd.f32 %v3333_v21, %v3118_v19  ;;  %v3917_v42 = vpop.f32.mrb[105].mxu1 }
 0xa13   :  { %v3121_v7 = vpop.f32.mrb[106].mxu1 }
 0xa14   :  { %3155 = vst [vmem:[#allocation8 + $0x30] sm:$0xff] %v3119_v51  ;;  %v3122_v32 = vadd.f32 %v3333_v21, %v3121_v7  ;;  %v3918_v13 = vpop.f32.mrb[107].mxu1 }
 0xa16   :  { %3156 = vst [vmem:[#allocation8 + $0x38] sm:$0xff] %v3122_v32 }
 0xa19   :  { %v3126_v45 = vpop.f32.mrb[108].mxu1 }
 0xa1a   :  { %v3127_v46 = vadd.f32 %v3333_v21, %v3126_v45  ;;  %v3921_v8 = vpop.f32.mrb[109].mxu1 }
 0xa1b   :  { %v3129_v20 = vpop.f32.mrb[110].mxu1 }
 0xa1c   :  { %3157 = vst [vmem:[#allocation8 + $0x40] sm:$0xff] %v3127_v46  ;;  %v3130_v15 = vadd.f32 %v3333_v21, %v3129_v20  ;;  %v3922_v10 = vpop.f32.mrb[111].mxu1 }
 0xa1e   :  { %3158 = vst [vmem:[#allocation8 + $0x48] sm:$0xff] %v3130_v15 }
 0xa21   :  { %v3134_v62 = vpop.f32.mrb[112].mxu1 }
 0xa22   :  { %v3135_v3 = vadd.f32 %v3333_v21, %v3134_v62  ;;  %v3925_v4 = vpop.f32.mrb[113].mxu1 }
 0xa23   :  { %v3137_v33 = vpop.f32.mrb[114].mxu1 }
 0xa24   :  { %3159 = vst [vmem:[#allocation8 + $0x50] sm:$0xff] %v3135_v3  ;;  %v3138_v40 = vadd.f32 %v3333_v21, %v3137_v33  ;;  %v3926_v57 = vpop.f32.mrb[115].mxu1 }
 0xa26   :  { %3160 = vst [vmem:[#allocation8 + $0x58] sm:$0xff] %v3138_v40 }
 0xa29   :  { %v3142_v6 = vpop.f32.mrb[116].mxu1 }
 0xa2a   :  { %v3143_v5 = vadd.f32 %v3333_v21, %v3142_v6  ;;  %v3929_v39 = vpop.f32.mrb[117].mxu1 }
 0xa2b   :  { %v3145_v30 = vpop.f32.mrb[118].mxu1 }
 0xa2c   :  { %3161 = vst [vmem:[#allocation8 + $0x60] sm:$0xff] %v3143_v5  ;;  %v3146_v27 = vadd.f32 %v3333_v21, %v3145_v30  ;;  %v3930_v48 = vpop.f32.mrb[119].mxu1 }
 0xa2e   :  { %3162 = vst [vmem:[#allocation8 + $0x68] sm:$0xff] %v3146_v27 }
 0xa2f   :  { %4216 = shalt.err (!%p4213_p0)
}
 0xa30   :  { %s4217_s12 = scalar_lea.hbm %s5581_s6, 1792 }
 0xa31   :  { %p4218_p1 = scmp.ne.s32.totalorder %s5581_s6, %s4217_s12  ;;  %p4221_p2 = scmp.lt.u32.totalorder %s4217_s12, %s5581_s6 }
 0xa33   :  { %p4223_p3 = pnand %p4221_p2, %p4218_p1 }
 0xa35   :  { %4226 = shalt.err (!%p4223_p3)
}
 0xa36   :  { %3174 = dma.vmem_to_hbm [thread:$0]  %s3169_s9, 1792, %s5581_s6, [#allocation4], %s4234_s7, %s4234_s7, %s4235_s8  }
 0xa37   :  { %4231 = dma.done.wait [#allocation4], 1792  }
 0xa38   :  { %4232 = vsyncadd [#allocation4], 4294965504 }
 0xa39   :  { %3178 = vsyncpa [#allocation3], 1 }
 0xa3a   :  { %3179 = vsyncpa [#allocation6], 1 }
 0xa3b   :  { %3180 = vsyncpa [#allocation4], 1 }

</bundles_post_ra>
